<compile_context>
chip_gen: v7x
topology: tpu7x:2x2x1
jax: 0.10.0
libtpu: 0.0.40
codegen_flags: <defaults>
</compile_context>

<pallas_src>
import functools
import math

import jax
import jax.numpy as jnp
from jax.experimental import pallas as pl
from jax.experimental.pallas import tpu as pltpu


def _round_up(n, m):
    return ((n + m - 1) // m) * m


def _vmem_capacity_bytes():
    """Per-TensorCore VMEM capacity; conservative 64 MiB fallback (v7x)."""
    try:
        info = pltpu.get_tpu_info()
        for name in ("vmem_capacity_bytes", "vmem_size_bytes", "vmem_bytes"):
            cap = getattr(info, name, None)
            if cap:
                return int(cap)
    except Exception:
        pass
    return 64 * 1024 * 1024


def gru_kernel(x_ref, wcat_ref, ucat_ref, wph_ref, bp_ref, out_ref, h_ref,
               *, seq_len, n_chains):
    # x_ref:   (tile_t, tile_b, Dp)  time-major input tile (zero-padded)
    # wcat_ref:(Dp, 3Hp)  ucat_ref:(Hp, 3Hp)  wph_ref:(Hp, Cp)  bp_ref:(1, Cp)
    # out_ref: (tile_b, Cp)          log-softmax output for this batch block
    # h_ref:   (tile_b, Hp)          hidden-state carry (VMEM scratch)
    t_idx = pl.program_id(1)
    tile_t, tile_b, Dp = x_ref.shape
    Hp = h_ref.shape[1]
    sub = tile_b // n_chains

    @pl.when(t_idx == 0)
    def _init():
        h_ref[...] = jnp.zeros_like(h_ref)

    # Hoisted + fused input projection: one big MXU-friendly GEMM per time tile.
    # (tile_t, tile_b, Dp) -> (tile_t*tile_b, Dp) is a layout-preserving collapse
    # (tile_b is a multiple of 8 sublanes).
    x_flat = x_ref[...].reshape(tile_t * tile_b, Dp)
    xp = jnp.dot(x_flat, wcat_ref[...], preferred_element_type=jnp.float32)  # (tt*tb, 3Hp)

    rem = seq_len % tile_t  # 0 -> no padded timesteps anywhere in the grid

    # Split the batch tile into independent sub-chains (rows are independent),
    # advanced in lockstep so the scheduler can hide per-step matmul/EUP latency.
    hs = [h_ref[i * sub:(i + 1) * sub, :] for i in range(n_chains)]

    # tile_t is static -> fully unrolled serial recurrence; static slices are free.
    for t in range(tile_t):
        new_hs = []
        for i in range(n_chains):
            h = hs[i]
            row0 = t * tile_b + i * sub
            xp_t = xp[row0:row0 + sub, :]                                   # (sub, 3Hp)
            # Index the ref inside the dot (keep U_cat out of vregs; review hint).
            hu = jnp.dot(h, ucat_ref[...], preferred_element_type=jnp.float32)
            # One fused sigmoid over the concatenated z|r slab.
            zr = jax.nn.sigmoid(xp_t[:, :2 * Hp] + hu[:, :2 * Hp])
            z = zr[:, :Hp]
            r = zr[:, Hp:2 * Hp]
            # h_hat = tanh(x@W + (h@U) * r)   (matches the reference's precedence)
            h_hat = jnp.tanh(xp_t[:, 2 * Hp:] + hu[:, 2 * Hp:] * r)
            h_new = z * h + (1.0 - z) * h_hat
            if rem and t >= rem:
                # Only the last time tile can contain padded (invalid) steps.
                valid = (t_idx * tile_t + t) < seq_len
                h_new = jnp.where(valid, h_new, h)
            new_hs.append(h_new)
        hs = new_hs

    h_all = jnp.concatenate(hs, axis=0) if n_chains > 1 else hs[0]
    h_ref[...] = h_all

    @pl.when(t_idx == pl.num_programs(1) - 1)
    def _final():
        # Output projection + numerically-stable log-softmax over classes.
        # Padded class columns carry a -1e30 bias -> exp underflows to exactly 0.
        p = jnp.dot(h_all, wph_ref[...], preferred_element_type=jnp.float32) + bp_ref[...]
        m = jnp.max(p, axis=1, keepdims=True)
        lse = jnp.log(jnp.sum(jnp.exp(p - m), axis=1, keepdims=True)) + m
        out_ref[...] = p - lse


def gru_forward(x, params, *, tile_t=16):
    """x: (B, T, D) float32. Returns (B, C) log-softmax."""
    B, T, D = x.shape
    W_z, W_r, W, W_ph, U_z, U_r, U, b_p = params
    H = U.shape[0]
    C = W_ph.shape[1]
    f32 = jnp.float32

    # Lane-dense padded sizes.
    Dp = _round_up(D, 128)
    Hp = _round_up(H, 128)
    Cp = _round_up(C, 128)

    # --- batch tiling: pad UP to an MXU-friendly tile, never shrink tile_b ---
    Bp0 = _round_up(B, 8)
    tile_b = Bp0 if Bp0 <= 128 else 128
    Bp = _round_up(Bp0, tile_b)
    n_b = Bp // tile_b
    # Two independent recurrence chains per tile when sublane alignment allows.
    n_chains = 2 if (tile_b % 16 == 0) else 1

    # --- VMEM budget (clamped to the chip; v7x has only 64 MiB/TC) ---
    budget = int(0.8 * _vmem_capacity_bytes())

    def vmem_estimate(tt, single_buffer_weights=True):
        wbuf = 1 if single_buffer_weights else 2
        weights = wbuf * (Dp * 3 * Hp + Hp * 3 * Hp + Hp * Cp + Cp)
        xbuf = 2 * tt * tile_b * Dp            # double-buffered input tile
        xp_tmp = tt * tile_b * 3 * Hp          # hoisted projection slab
        state = tile_b * Hp                    # hidden-state carry
        outbuf = 2 * tile_b * Cp
        work = 6 * tile_b * 3 * Hp             # hu / zr / h_hat temporaries
        return 4 * (weights + xbuf + xp_tmp + state + outbuf + work)

    # --- time tiling: shrink tile_t first if over budget (never tile_b) ---
    tile_t = max(1, min(int(tile_t), T))
    while vmem_estimate(tile_t) > budget and tile_t > 8:
        tile_t = max(8, tile_t - 8)
    Tp = _round_up(T, tile_t)
    n_t = Tp // tile_t

    def pad2(a, rows, cols):
        a = a.astype(f32)
        return jnp.pad(a, ((0, rows - a.shape[0]), (0, cols - a.shape[1])))

    # Fused + padded weights.
    W_cat = jnp.concatenate([pad2(W_z, Dp, Hp), pad2(W_r, Dp, Hp), pad2(W, Dp, Hp)], axis=1)
    U_cat = jnp.concatenate([pad2(U_z, Hp, Hp), pad2(U_r, Hp, Hp), pad2(U, Hp, Hp)], axis=1)
    W_ph_p = pad2(W_ph, Hp, Cp)
    b_p_p = jnp.full((1, Cp), -1e30, dtype=f32).at[0, :C].set(b_p.astype(f32))

    # Time-major, zero-padded input: (Tp, Bp, Dp).
    x_tm = jnp.transpose(x.astype(f32), (1, 0, 2))
    x_tm = jnp.pad(x_tm, ((0, Tp - T), (0, Bp - B), (0, Dp - D)))

    kernel = functools.partial(gru_kernel, seq_len=T, n_chains=n_chains)

    flops = 2 * Tp * Bp * (Dp + Hp) * 3 * Hp + 2 * Bp * Hp * Cp
    transcendentals = Tp * Bp * 3 * Hp + Bp * Cp
    bytes_accessed = 4 * (Tp * Bp * Dp + Dp * 3 * Hp + Hp * 3 * Hp + Hp * Cp + Cp + Bp * Cp)

    def build(single_buffer_weights):
        wkw = {"pipeline_mode": pl.Buffered(1)} if single_buffer_weights else {}
        est = vmem_estimate(tile_t, single_buffer_weights)
        vmem_limit = int(min(budget, max(2 * est, 32 * 1024 * 1024)))
        grid_spec = pltpu.PrefetchScalarGridSpec(
            num_scalar_prefetch=0,
            grid=(n_b, n_t),
            in_specs=[
                pl.BlockSpec((tile_t, tile_b, Dp), lambda b, t: (t, b, 0)),
                pl.BlockSpec((Dp, 3 * Hp), lambda b, t: (0, 0), **wkw),
                pl.BlockSpec((Hp, 3 * Hp), lambda b, t: (0, 0), **wkw),
                pl.BlockSpec((Hp, Cp), lambda b, t: (0, 0), **wkw),
                pl.BlockSpec((1, Cp), lambda b, t: (0, 0), **wkw),
            ],
            out_specs=pl.BlockSpec((tile_b, Cp), lambda b, t: (b, 0)),
            scratch_shapes=[pltpu.VMEM((tile_b, Hp), jnp.float32)],
        )
        return pl.pallas_call(
            kernel,
            out_shape=jax.ShapeDtypeStruct((Bp, Cp), f32),
            grid_spec=grid_spec,
            compiler_params=pltpu.CompilerParams(
                dimension_semantics=("parallel", "arbitrary"),
                vmem_limit_bytes=vmem_limit,
            ),
            cost_estimate=pl.CostEstimate(
                flops=int(flops),
                transcendentals=int(transcendentals),
                bytes_accessed=int(bytes_accessed),
            ),
        )

    try:
        out = jax.block_until_ready(build(True)(x_tm, W_cat, U_cat, W_ph_p, b_p_p))
    except Exception:
        # pipeline_mode=pl.Buffered(1) not supported by this JAX build ->
        # fall back to default (double-buffered) weight operands.
        out = jax.block_until_ready(build(False)(x_tm, W_cat, U_cat, W_ph_p, b_p_p))

    return out[:B, :C]


def gru_reference(x, params):
    """Pure-JAX reference matching the PyTorch module (f32, HIGHEST matmul precision)."""
    W_z, W_r, W, W_ph, U_z, U_r, U, b_p = params
    hi = jax.lax.Precision.HIGHEST
    dot = lambda a, b: jnp.dot(a, b, precision=hi)
    B, T, _ = x.shape
    H = U.shape[0]
    h = jnp.zeros((B, H), jnp.float32)
    for t in range(T):
        x_t = x[:, t, :]
        z = jax.nn.sigmoid(dot(x_t, W_z) + dot(h, U_z))
        r = jax.nn.sigmoid(dot(x_t, W_r) + dot(h, U_r))
        h_hat = jnp.tanh(dot(x_t, W) + dot(h, U) * r)
        h = z * h + (1.0 - z) * h_hat
    p = dot(h, W_ph) + b_p
    return jax.nn.log_softmax(p, axis=1)


def xavier_normal(key, shape):
    fan_in, fan_out = shape
    std = math.sqrt(2.0 / (fan_in + fan_out))
    return std * jax.random.normal(key, shape, dtype=jnp.float32)


def init_params(key, input_dim, hidden_dim, num_classes):
    ks = jax.random.split(key, 7)
    W_z = xavier_normal(ks[0], (input_dim, hidden_dim))
    W_r = xavier_normal(ks[1], (input_dim, hidden_dim))
    W = xavier_normal(ks[2], (input_dim, hidden_dim))
    W_ph = xavier_normal(ks[3], (hidden_dim, num_classes))
    U_z = xavier_normal(ks[4], (hidden_dim, hidden_dim))
    U_r = xavier_normal(ks[5], (hidden_dim, hidden_dim))
    U = xavier_normal(ks[6], (hidden_dim, hidden_dim))
    b_p = jnp.zeros((num_classes,), jnp.float32)
    return (W_z, W_r, W, W_ph, U_z, U_r, U, b_p)


if __name__ == "__main__":
    batch = 2
    seq_length = 8
    input_dim = 4
    hidden_dim = 32
    num_classes = 8

    key = jax.random.PRNGKey(0)
    k_x, k_p = jax.random.split(key)
    x = jax.random.normal(k_x, (batch, seq_length, input_dim), dtype=jnp.float32)
    params = init_params(k_p, input_dim, hidden_dim, num_classes)

    out = gru_forward(x, params)
    out = jax.block_until_ready(out)
    assert out.shape == (batch, num_classes)

    ref = gru_reference(x, params)
    # f32 (vs the module's f64) + MXU pass precision -> modest tolerance; gate-wiring
    # bugs would show up as O(0.1-1) errors, so this still validates correctness.
    assert bool(jnp.allclose(out, ref, atol=2e-3, rtol=2e-3)), "mismatch vs. JAX reference"
    assert bool(jnp.allclose(jnp.sum(jnp.exp(out), axis=1), 1.0, atol=1e-3))
    print("KERNEL_OK")
</pallas_src>

<mosaic_0001>
module attributes {stable_mosaic.version = 11 : i64} {
  func.func @gru_kernel(%arg0: i32, %arg1: i32, %arg2: memref<8x8x128xf32, #tpu.memory_space<vmem>>, %arg3: memref<128x384xf32, #tpu.memory_space<vmem>>, %arg4: memref<128x384xf32, #tpu.memory_space<vmem>>, %arg5: memref<128x128xf32, #tpu.memory_space<vmem>>, %arg6: memref<1x128xf32, #tpu.memory_space<vmem>>, %arg7: memref<8x128xf32, #tpu.memory_space<vmem>>, %arg8: memref<8x128xf32, #tpu.memory_space<vmem>>) attributes {dimension_semantics = [#tpu.dimension_semantics<parallel>, #tpu.dimension_semantics<arbitrary>], iteration_bounds = array<i64: 1, 1>, scalar_prefetch = 0 : i64, scratch_operands = 1 : i64, tpu.core_type = #tpu.core_type<tc>, window_params = [{transform_indices = @transform_0, window_bounds = array<i64: 8, 8, 128>}, {pipeline_mode = #tpu.pipeline_mode<synchronous>, transform_indices = @transform_1, window_bounds = array<i64: 128, 384>}, {pipeline_mode = #tpu.pipeline_mode<synchronous>, transform_indices = @transform_2, window_bounds = array<i64: 128, 384>}, {pipeline_mode = #tpu.pipeline_mode<synchronous>, transform_indices = @transform_3, window_bounds = array<i64: 128, 128>}, {pipeline_mode = #tpu.pipeline_mode<synchronous>, transform_indices = @transform_4, window_bounds = array<i64: 1, 128>}, {transform_indices = @transform_5, window_bounds = array<i64: 8, 128>}]} {
    %c0_i32 = arith.constant 0 : i32
    %0 = arith.cmpi eq, %arg1, %c0_i32 : i32
    %1 = arith.extui %0 : i1 to i32
    %c0_i32_0 = arith.constant 0 : i32
    %2 = arith.cmpi ne, %1, %c0_i32_0 : i32
    scf.if %2 {
      %cst_51 = arith.constant 0.000000e+00 : f32
      %196 = vector.broadcast %cst_51 : f32 to vector<8x128xf32>
      %c0_52 = arith.constant 0 : index
      %c0_53 = arith.constant 0 : index
      %197 = vector.load %arg8[%c0_52, %c0_53] : memref<8x128xf32, #tpu.memory_space<vmem>>, vector<8x128xf32>
      tpu.vector_store %arg8[%c0_52, %c0_53], %196 {strides = array<i32>} : memref<8x128xf32, #tpu.memory_space<vmem>>, vector<8x128xf32>,
    } else {
    }
    %c0 = arith.constant 0 : index
    %c0_1 = arith.constant 0 : index
    %c0_2 = arith.constant 0 : index
    %3 = vector.load %arg2[%c0, %c0_1, %c0_2] : memref<8x8x128xf32, #tpu.memory_space<vmem>>, vector<8x8x128xf32>
    %4 = vector.shape_cast %3 : vector<8x8x128xf32> to vector<64x128xf32>
    %c0_3 = arith.constant 0 : index
    %c0_4 = arith.constant 0 : index
    %5 = vector.load %arg3[%c0_3, %c0_4] : memref<128x384xf32, #tpu.memory_space<vmem>>, vector<128x384xf32>
    %cst = arith.constant dense<0.000000e+00> : vector<64x384xf32>
    %6 = tpu.matmul %4, %5, %cst {dimension_numbers = #tpu.dot_dimension_numbers<[1], [0], [0], [1], [0, 0, 1, 1], [], []>} : vector<64x128xf32>, vector<128x384xf32>, vector<64x384xf32> -> vector<64x384xf32>
    %c0_5 = arith.constant 0 : index
    %c0_6 = arith.constant 0 : index
    %7 = vector.load %arg8[%c0_5, %c0_6] : memref<8x128xf32, #tpu.memory_space<vmem>>, vector<8x128xf32>
    %8 = vector.extract_strided_slice %6 {offsets = [0, 0], sizes = [8, 384], strides = [1, 1]} : vector<64x384xf32> to vector<8x384xf32>
    %c0_7 = arith.constant 0 : index
    %c0_8 = arith.constant 0 : index
    %9 = vector.load %arg4[%c0_7, %c0_8] : memref<128x384xf32, #tpu.memory_space<vmem>>, vector<128x384xf32>
    %cst_9 = arith.constant dense<0.000000e+00> : vector<8x384xf32>
    %10 = tpu.matmul %7, %9, %cst_9 {dimension_numbers = #tpu.dot_dimension_numbers<[1], [0], [0], [1], [0, 0, 1, 1], [], []>} : vector<8x128xf32>, vector<128x384xf32>, vector<8x384xf32> -> vector<8x384xf32>
    %11 = vector.extract_strided_slice %8 {offsets = [0, 0], sizes = [8, 256], strides = [1, 1]} : vector<8x384xf32> to vector<8x256xf32>
    %12 = vector.extract_strided_slice %10 {offsets = [0, 0], sizes = [8, 256], strides = [1, 1]} : vector<8x384xf32> to vector<8x256xf32>
    %13 = arith.addf %11, %12 : vector<8x256xf32>
    %14 = arith.negf %13 : vector<8x256xf32>
    %15 = math.exp %14 : vector<8x256xf32>
    %cst_10 = arith.constant 1.000000e+00 : f32
    %16 = vector.broadcast %cst_10 : f32 to vector<8x256xf32>
    %17 = arith.addf %16, %15 : vector<8x256xf32>
    %18 = arith.divf %16, %17 : vector<8x256xf32>
    %19 = vector.extract_strided_slice %18 {offsets = [0, 0], sizes = [8, 128], strides = [1, 1]} : vector<8x256xf32> to vector<8x128xf32>
    %20 = vector.extract_strided_slice %18 {offsets = [0, 128], sizes = [8, 128], strides = [1, 1]} : vector<8x256xf32> to vector<8x128xf32>
    %21 = vector.extract_strided_slice %8 {offsets = [0, 256], sizes = [8, 128], strides = [1, 1]} : vector<8x384xf32> to vector<8x128xf32>
    %22 = vector.extract_strided_slice %10 {offsets = [0, 256], sizes = [8, 128], strides = [1, 1]} : vector<8x384xf32> to vector<8x128xf32>
    %23 = arith.mulf %22, %20 : vector<8x128xf32>
    %24 = arith.addf %21, %23 : vector<8x128xf32>
    %25 = math.tanh %24 : vector<8x128xf32>
    %26 = arith.mulf %19, %7 : vector<8x128xf32>
    %cst_11 = arith.constant 1.000000e+00 : f32
    %27 = vector.broadcast %cst_11 : f32 to vector<8x128xf32>
    %28 = arith.subf %27, %19 : vector<8x128xf32>
    %29 = arith.mulf %28, %25 : vector<8x128xf32>
    %30 = arith.addf %26, %29 : vector<8x128xf32>
    %31 = vector.extract_strided_slice %6 {offsets = [8, 0], sizes = [8, 384], strides = [1, 1]} : vector<64x384xf32> to vector<8x384xf32>
    %c0_12 = arith.constant 0 : index
    %c0_13 = arith.constant 0 : index
    %32 = vector.load %arg4[%c0_12, %c0_13] : memref<128x384xf32, #tpu.memory_space<vmem>>, vector<128x384xf32>
    %cst_14 = arith.constant dense<0.000000e+00> : vector<8x384xf32>
    %33 = tpu.matmul %30, %32, %cst_14 {dimension_numbers = #tpu.dot_dimension_numbers<[1], [0], [0], [1], [0, 0, 1, 1], [], []>} : vector<8x128xf32>, vector<128x384xf32>, vector<8x384xf32> -> vector<8x384xf32>
    %34 = vector.extract_strided_slice %31 {offsets = [0, 0], sizes = [8, 256], strides = [1, 1]} : vector<8x384xf32> to vector<8x256xf32>
    %35 = vector.extract_strided_slice %33 {offsets = [0, 0], sizes = [8, 256], strides = [1, 1]} : vector<8x384xf32> to vector<8x256xf32>
    %36 = arith.addf %34, %35 : vector<8x256xf32>
    %37 = arith.negf %36 : vector<8x256xf32>
    %38 = math.exp %37 : vector<8x256xf32>
    %cst_15 = arith.constant 1.000000e+00 : f32
    %39 = vector.broadcast %cst_15 : f32 to vector<8x256xf32>
    %40 = arith.addf %39, %38 : vector<8x256xf32>
    %41 = arith.divf %39, %40 : vector<8x256xf32>
    %42 = vector.extract_strided_slice %41 {offsets = [0, 0], sizes = [8, 128], strides = [1, 1]} : vector<8x256xf32> to vector<8x128xf32>
    %43 = vector.extract_strided_slice %41 {offsets = [0, 128], sizes = [8, 128], strides = [1, 1]} : vector<8x256xf32> to vector<8x128xf32>
    %44 = vector.extract_strided_slice %31 {offsets = [0, 256], sizes = [8, 128], strides = [1, 1]} : vector<8x384xf32> to vector<8x128xf32>
    %45 = vector.extract_strided_slice %33 {offsets = [0, 256], sizes = [8, 128], strides = [1, 1]} : vector<8x384xf32> to vector<8x128xf32>
    %46 = arith.mulf %45, %43 : vector<8x128xf32>
    %47 = arith.addf %44, %46 : vector<8x128xf32>
    %48 = math.tanh %47 : vector<8x128xf32>
    %49 = arith.mulf %42, %30 : vector<8x128xf32>
    %cst_16 = arith.constant 1.000000e+00 : f32
    %50 = vector.broadcast %cst_16 : f32 to vector<8x128xf32>
    %51 = arith.subf %50, %42 : vector<8x128xf32>
    %52 = arith.mulf %51, %48 : vector<8x128xf32>
    %53 = arith.addf %49, %52 : vector<8x128xf32>
    %54 = vector.extract_strided_slice %6 {offsets = [16, 0], sizes = [8, 384], strides = [1, 1]} : vector<64x384xf32> to vector<8x384xf32>
    %c0_17 = arith.constant 0 : index
    %c0_18 = arith.constant 0 : index
    %55 = vector.load %arg4[%c0_17, %c0_18] : memref<128x384xf32, #tpu.memory_space<vmem>>, vector<128x384xf32>
    %cst_19 = arith.constant dense<0.000000e+00> : vector<8x384xf32>
    %56 = tpu.matmul %53, %55, %cst_19 {dimension_numbers = #tpu.dot_dimension_numbers<[1], [0], [0], [1], [0, 0, 1, 1], [], []>} : vector<8x128xf32>, vector<128x384xf32>, vector<8x384xf32> -> vector<8x384xf32>
    %57 = vector.extract_strided_slice %54 {offsets = [0, 0], sizes = [8, 256], strides = [1, 1]} : vector<8x384xf32> to vector<8x256xf32>
    %58 = vector.extract_strided_slice %56 {offsets = [0, 0], sizes = [8, 256], strides = [1, 1]} : vector<8x384xf32> to vector<8x256xf32>
    %59 = arith.addf %57, %58 : vector<8x256xf32>
    %60 = arith.negf %59 : vector<8x256xf32>
    %61 = math.exp %60 : vector<8x256xf32>
    %cst_20 = arith.constant 1.000000e+00 : f32
    %62 = vector.broadcast %cst_20 : f32 to vector<8x256xf32>
    %63 = arith.addf %62, %61 : vector<8x256xf32>
    %64 = arith.divf %62, %63 : vector<8x256xf32>
    %65 = vector.extract_strided_slice %64 {offsets = [0, 0], sizes = [8, 128], strides = [1, 1]} : vector<8x256xf32> to vector<8x128xf32>
    %66 = vector.extract_strided_slice %64 {offsets = [0, 128], sizes = [8, 128], strides = [1, 1]} : vector<8x256xf32> to vector<8x128xf32>
    %67 = vector.extract_strided_slice %54 {offsets = [0, 256], sizes = [8, 128], strides = [1, 1]} : vector<8x384xf32> to vector<8x128xf32>
    %68 = vector.extract_strided_slice %56 {offsets = [0, 256], sizes = [8, 128], strides = [1, 1]} : vector<8x384xf32> to vector<8x128xf32>
    %69 = arith.mulf %68, %66 : vector<8x128xf32>
    %70 = arith.addf %67, %69 : vector<8x128xf32>
    %71 = math.tanh %70 : vector<8x128xf32>
    %72 = arith.mulf %65, %53 : vector<8x128xf32>
    %cst_21 = arith.constant 1.000000e+00 : f32
    %73 = vector.broadcast %cst_21 : f32 to vector<8x128xf32>
    %74 = arith.subf %73, %65 : vector<8x128xf32>
    %75 = arith.mulf %74, %71 : vector<8x128xf32>
    %76 = arith.addf %72, %75 : vector<8x128xf32>
    %77 = vector.extract_strided_slice %6 {offsets = [24, 0], sizes = [8, 384], strides = [1, 1]} : vector<64x384xf32> to vector<8x384xf32>
    %c0_22 = arith.constant 0 : index
    %c0_23 = arith.constant 0 : index
    %78 = vector.load %arg4[%c0_22, %c0_23] : memref<128x384xf32, #tpu.memory_space<vmem>>, vector<128x384xf32>
    %cst_24 = arith.constant dense<0.000000e+00> : vector<8x384xf32>
    %79 = tpu.matmul %76, %78, %cst_24 {dimension_numbers = #tpu.dot_dimension_numbers<[1], [0], [0], [1], [0, 0, 1, 1], [], []>} : vector<8x128xf32>, vector<128x384xf32>, vector<8x384xf32> -> vector<8x384xf32>
    %80 = vector.extract_strided_slice %77 {offsets = [0, 0], sizes = [8, 256], strides = [1, 1]} : vector<8x384xf32> to vector<8x256xf32>
    %81 = vector.extract_strided_slice %79 {offsets = [0, 0], sizes = [8, 256], strides = [1, 1]} : vector<8x384xf32> to vector<8x256xf32>
    %82 = arith.addf %80, %81 : vector<8x256xf32>
    %83 = arith.negf %82 : vector<8x256xf32>
    %84 = math.exp %83 : vector<8x256xf32>
    %cst_25 = arith.constant 1.000000e+00 : f32
    %85 = vector.broadcast %cst_25 : f32 to vector<8x256xf32>
    %86 = arith.addf %85, %84 : vector<8x256xf32>
    %87 = arith.divf %85, %86 : vector<8x256xf32>
    %88 = vector.extract_strided_slice %87 {offsets = [0, 0], sizes = [8, 128], strides = [1, 1]} : vector<8x256xf32> to vector<8x128xf32>
    %89 = vector.extract_strided_slice %87 {offsets = [0, 128], sizes = [8, 128], strides = [1, 1]} : vector<8x256xf32> to vector<8x128xf32>
    %90 = vector.extract_strided_slice %77 {offsets = [0, 256], sizes = [8, 128], strides = [1, 1]} : vector<8x384xf32> to vector<8x128xf32>
    %91 = vector.extract_strided_slice %79 {offsets = [0, 256], sizes = [8, 128], strides = [1, 1]} : vector<8x384xf32> to vector<8x128xf32>
    %92 = arith.mulf %91, %89 : vector<8x128xf32>
    %93 = arith.addf %90, %92 : vector<8x128xf32>
    %94 = math.tanh %93 : vector<8x128xf32>
    %95 = arith.mulf %88, %76 : vector<8x128xf32>
    %cst_26 = arith.constant 1.000000e+00 : f32
    %96 = vector.broadcast %cst_26 : f32 to vector<8x128xf32>
    %97 = arith.subf %96, %88 : vector<8x128xf32>
    %98 = arith.mulf %97, %94 : vector<8x128xf32>
    %99 = arith.addf %95, %98 : vector<8x128xf32>
    %100 = vector.extract_strided_slice %6 {offsets = [32, 0], sizes = [8, 384], strides = [1, 1]} : vector<64x384xf32> to vector<8x384xf32>
    %c0_27 = arith.constant 0 : index
    %c0_28 = arith.constant 0 : index
    %101 = vector.load %arg4[%c0_27, %c0_28] : memref<128x384xf32, #tpu.memory_space<vmem>>, vector<128x384xf32>
    %cst_29 = arith.constant dense<0.000000e+00> : vector<8x384xf32>
    %102 = tpu.matmul %99, %101, %cst_29 {dimension_numbers = #tpu.dot_dimension_numbers<[1], [0], [0], [1], [0, 0, 1, 1], [], []>} : vector<8x128xf32>, vector<128x384xf32>, vector<8x384xf32> -> vector<8x384xf32>
    %103 = vector.extract_strided_slice %100 {offsets = [0, 0], sizes = [8, 256], strides = [1, 1]} : vector<8x384xf32> to vector<8x256xf32>
    %104 = vector.extract_strided_slice %102 {offsets = [0, 0], sizes = [8, 256], strides = [1, 1]} : vector<8x384xf32> to vector<8x256xf32>
    %105 = arith.addf %103, %104 : vector<8x256xf32>
    %106 = arith.negf %105 : vector<8x256xf32>
    %107 = math.exp %106 : vector<8x256xf32>
    %cst_30 = arith.constant 1.000000e+00 : f32
    %108 = vector.broadcast %cst_30 : f32 to vector<8x256xf32>
    %109 = arith.addf %108, %107 : vector<8x256xf32>
    %110 = arith.divf %108, %109 : vector<8x256xf32>
    %111 = vector.extract_strided_slice %110 {offsets = [0, 0], sizes = [8, 128], strides = [1, 1]} : vector<8x256xf32> to vector<8x128xf32>
    %112 = vector.extract_strided_slice %110 {offsets = [0, 128], sizes = [8, 128], strides = [1, 1]} : vector<8x256xf32> to vector<8x128xf32>
    %113 = vector.extract_strided_slice %100 {offsets = [0, 256], sizes = [8, 128], strides = [1, 1]} : vector<8x384xf32> to vector<8x128xf32>
    %114 = vector.extract_strided_slice %102 {offsets = [0, 256], sizes = [8, 128], strides = [1, 1]} : vector<8x384xf32> to vector<8x128xf32>
    %115 = arith.mulf %114, %112 : vector<8x128xf32>
    %116 = arith.addf %113, %115 : vector<8x128xf32>
    %117 = math.tanh %116 : vector<8x128xf32>
    %118 = arith.mulf %111, %99 : vector<8x128xf32>
    %cst_31 = arith.constant 1.000000e+00 : f32
    %119 = vector.broadcast %cst_31 : f32 to vector<8x128xf32>
    %120 = arith.subf %119, %111 : vector<8x128xf32>
    %121 = arith.mulf %120, %117 : vector<8x128xf32>
    %122 = arith.addf %118, %121 : vector<8x128xf32>
    %123 = vector.extract_strided_slice %6 {offsets = [40, 0], sizes = [8, 384], strides = [1, 1]} : vector<64x384xf32> to vector<8x384xf32>
    %c0_32 = arith.constant 0 : index
    %c0_33 = arith.constant 0 : index
    %124 = vector.load %arg4[%c0_32, %c0_33] : memref<128x384xf32, #tpu.memory_space<vmem>>, vector<128x384xf32>
    %cst_34 = arith.constant dense<0.000000e+00> : vector<8x384xf32>
    %125 = tpu.matmul %122, %124, %cst_34 {dimension_numbers = #tpu.dot_dimension_numbers<[1], [0], [0], [1], [0, 0, 1, 1], [], []>} : vector<8x128xf32>, vector<128x384xf32>, vector<8x384xf32> -> vector<8x384xf32>
    %126 = vector.extract_strided_slice %123 {offsets = [0, 0], sizes = [8, 256], strides = [1, 1]} : vector<8x384xf32> to vector<8x256xf32>
    %127 = vector.extract_strided_slice %125 {offsets = [0, 0], sizes = [8, 256], strides = [1, 1]} : vector<8x384xf32> to vector<8x256xf32>
    %128 = arith.addf %126, %127 : vector<8x256xf32>
    %129 = arith.negf %128 : vector<8x256xf32>
    %130 = math.exp %129 : vector<8x256xf32>
    %cst_35 = arith.constant 1.000000e+00 : f32
    %131 = vector.broadcast %cst_35 : f32 to vector<8x256xf32>
    %132 = arith.addf %131, %130 : vector<8x256xf32>
    %133 = arith.divf %131, %132 : vector<8x256xf32>
    %134 = vector.extract_strided_slice %133 {offsets = [0, 0], sizes = [8, 128], strides = [1, 1]} : vector<8x256xf32> to vector<8x128xf32>
    %135 = vector.extract_strided_slice %133 {offsets = [0, 128], sizes = [8, 128], strides = [1, 1]} : vector<8x256xf32> to vector<8x128xf32>
    %136 = vector.extract_strided_slice %123 {offsets = [0, 256], sizes = [8, 128], strides = [1, 1]} : vector<8x384xf32> to vector<8x128xf32>
    %137 = vector.extract_strided_slice %125 {offsets = [0, 256], sizes = [8, 128], strides = [1, 1]} : vector<8x384xf32> to vector<8x128xf32>
    %138 = arith.mulf %137, %135 : vector<8x128xf32>
    %139 = arith.addf %136, %138 : vector<8x128xf32>
    %140 = math.tanh %139 : vector<8x128xf32>
    %141 = arith.mulf %134, %122 : vector<8x128xf32>
    %cst_36 = arith.constant 1.000000e+00 : f32
    %142 = vector.broadcast %cst_36 : f32 to vector<8x128xf32>
    %143 = arith.subf %142, %134 : vector<8x128xf32>
    %144 = arith.mulf %143, %140 : vector<8x128xf32>
    %145 = arith.addf %141, %144 : vector<8x128xf32>
    %146 = vector.extract_strided_slice %6 {offsets = [48, 0], sizes = [8, 384], strides = [1, 1]} : vector<64x384xf32> to vector<8x384xf32>
    %c0_37 = arith.constant 0 : index
    %c0_38 = arith.constant 0 : index
    %147 = vector.load %arg4[%c0_37, %c0_38] : memref<128x384xf32, #tpu.memory_space<vmem>>, vector<128x384xf32>
    %cst_39 = arith.constant dense<0.000000e+00> : vector<8x384xf32>
    %148 = tpu.matmul %145, %147, %cst_39 {dimension_numbers = #tpu.dot_dimension_numbers<[1], [0], [0], [1], [0, 0, 1, 1], [], []>} : vector<8x128xf32>, vector<128x384xf32>, vector<8x384xf32> -> vector<8x384xf32>
    %149 = vector.extract_strided_slice %146 {offsets = [0, 0], sizes = [8, 256], strides = [1, 1]} : vector<8x384xf32> to vector<8x256xf32>
    %150 = vector.extract_strided_slice %148 {offsets = [0, 0], sizes = [8, 256], strides = [1, 1]} : vector<8x384xf32> to vector<8x256xf32>
    %151 = arith.addf %149, %150 : vector<8x256xf32>
    %152 = arith.negf %151 : vector<8x256xf32>
    %153 = math.exp %152 : vector<8x256xf32>
    %cst_40 = arith.constant 1.000000e+00 : f32
    %154 = vector.broadcast %cst_40 : f32 to vector<8x256xf32>
    %155 = arith.addf %154, %153 : vector<8x256xf32>
    %156 = arith.divf %154, %155 : vector<8x256xf32>
    %157 = vector.extract_strided_slice %156 {offsets = [0, 0], sizes = [8, 128], strides = [1, 1]} : vector<8x256xf32> to vector<8x128xf32>
    %158 = vector.extract_strided_slice %156 {offsets = [0, 128], sizes = [8, 128], strides = [1, 1]} : vector<8x256xf32> to vector<8x128xf32>
    %159 = vector.extract_strided_slice %146 {offsets = [0, 256], sizes = [8, 128], strides = [1, 1]} : vector<8x384xf32> to vector<8x128xf32>
    %160 = vector.extract_strided_slice %148 {offsets = [0, 256], sizes = [8, 128], strides = [1, 1]} : vector<8x384xf32> to vector<8x128xf32>
    %161 = arith.mulf %160, %158 : vector<8x128xf32>
    %162 = arith.addf %159, %161 : vector<8x128xf32>
    %163 = math.tanh %162 : vector<8x128xf32>
    %164 = arith.mulf %157, %145 : vector<8x128xf32>
    %cst_41 = arith.constant 1.000000e+00 : f32
    %165 = vector.broadcast %cst_41 : f32 to vector<8x128xf32>
    %166 = arith.subf %165, %157 : vector<8x128xf32>
    %167 = arith.mulf %166, %163 : vector<8x128xf32>
    %168 = arith.addf %164, %167 : vector<8x128xf32>
    %169 = vector.extract_strided_slice %6 {offsets = [56, 0], sizes = [8, 384], strides = [1, 1]} : vector<64x384xf32> to vector<8x384xf32>
    %c0_42 = arith.constant 0 : index
    %c0_43 = arith.constant 0 : index
    %170 = vector.load %arg4[%c0_42, %c0_43] : memref<128x384xf32, #tpu.memory_space<vmem>>, vector<128x384xf32>
    %cst_44 = arith.constant dense<0.000000e+00> : vector<8x384xf32>
    %171 = tpu.matmul %168, %170, %cst_44 {dimension_numbers = #tpu.dot_dimension_numbers<[1], [0], [0], [1], [0, 0, 1, 1], [], []>} : vector<8x128xf32>, vector<128x384xf32>, vector<8x384xf32> -> vector<8x384xf32>
    %172 = vector.extract_strided_slice %169 {offsets = [0, 0], sizes = [8, 256], strides = [1, 1]} : vector<8x384xf32> to vector<8x256xf32>
    %173 = vector.extract_strided_slice %171 {offsets = [0, 0], sizes = [8, 256], strides = [1, 1]} : vector<8x384xf32> to vector<8x256xf32>
    %174 = arith.addf %172, %173 : vector<8x256xf32>
    %175 = arith.negf %174 : vector<8x256xf32>
    %176 = math.exp %175 : vector<8x256xf32>
    %cst_45 = arith.constant 1.000000e+00 : f32
    %177 = vector.broadcast %cst_45 : f32 to vector<8x256xf32>
    %178 = arith.addf %177, %176 : vector<8x256xf32>
    %179 = arith.divf %177, %178 : vector<8x256xf32>
    %180 = vector.extract_strided_slice %179 {offsets = [0, 0], sizes = [8, 128], strides = [1, 1]} : vector<8x256xf32> to vector<8x128xf32>
    %181 = vector.extract_strided_slice %179 {offsets = [0, 128], sizes = [8, 128], strides = [1, 1]} : vector<8x256xf32> to vector<8x128xf32>
    %182 = vector.extract_strided_slice %169 {offsets = [0, 256], sizes = [8, 128], strides = [1, 1]} : vector<8x384xf32> to vector<8x128xf32>
    %183 = vector.extract_strided_slice %171 {offsets = [0, 256], sizes = [8, 128], strides = [1, 1]} : vector<8x384xf32> to vector<8x128xf32>
    %184 = arith.mulf %183, %181 : vector<8x128xf32>
    %185 = arith.addf %182, %184 : vector<8x128xf32>
    %186 = math.tanh %185 : vector<8x128xf32>
    %187 = arith.mulf %180, %168 : vector<8x128xf32>
    %cst_46 = arith.constant 1.000000e+00 : f32
    %188 = vector.broadcast %cst_46 : f32 to vector<8x128xf32>
    %189 = arith.subf %188, %180 : vector<8x128xf32>
    %190 = arith.mulf %189, %186 : vector<8x128xf32>
    %191 = arith.addf %187, %190 : vector<8x128xf32>
    %c0_47 = arith.constant 0 : index
    %c0_48 = arith.constant 0 : index
    %192 = vector.load %arg8[%c0_47, %c0_48] : memref<8x128xf32, #tpu.memory_space<vmem>>, vector<8x128xf32>
    tpu.vector_store %arg8[%c0_47, %c0_48], %191 {strides = array<i32>} : memref<8x128xf32, #tpu.memory_space<vmem>>, vector<8x128xf32>,
    %c0_i32_49 = arith.constant 0 : i32
    %193 = arith.cmpi eq, %arg1, %c0_i32_49 : i32
    %194 = arith.extui %193 : i1 to i32
    %c0_i32_50 = arith.constant 0 : i32
    %195 = arith.cmpi ne, %194, %c0_i32_50 : i32
    scf.if %195 {
      %c0_51 = arith.constant 0 : index
      %c0_52 = arith.constant 0 : index
      %196 = vector.load %arg5[%c0_51, %c0_52] : memref<128x128xf32, #tpu.memory_space<vmem>>, vector<128x128xf32>
      %cst_53 = arith.constant dense<0.000000e+00> : vector<8x128xf32>
      %197 = tpu.matmul %191, %196, %cst_53 {dimension_numbers = #tpu.dot_dimension_numbers<[1], [0], [0], [1], [0, 0, 1, 1], [], []>} : vector<8x128xf32>, vector<128x128xf32>, vector<8x128xf32> -> vector<8x128xf32>
      %c0_54 = arith.constant 0 : index
      %c0_55 = arith.constant 0 : index
      %198 = vector.load %arg6[%c0_54, %c0_55] : memref<1x128xf32, #tpu.memory_space<vmem>>, vector<1x128xf32>
      %199 = vector.broadcast %198 : vector<1x128xf32> to vector<8x128xf32>
      %200 = arith.addf %197, %199 : vector<8x128xf32>
      %cst_56 = arith.constant dense<0xFF800000> : vector<8xf32>
      %201 = vector.multi_reduction <maximumf>, %200, %cst_56 [1] : vector<8x128xf32> to vector<8xf32>
      %202 = vector.shape_cast %201 : vector<8xf32> to vector<8x1xf32>
      %203 = vector.broadcast %202 : vector<8x1xf32> to vector<8x128xf32>
      %204 = arith.subf %200, %203 : vector<8x128xf32>
      %205 = math.exp %204 : vector<8x128xf32>
      %cst_57 = arith.constant dense<0.000000e+00> : vector<8xf32>
      %206 = vector.multi_reduction <add>, %205, %cst_57 [1] : vector<8x128xf32> to vector<8xf32>
      %207 = vector.shape_cast %206 : vector<8xf32> to vector<8x1xf32>
      %208 = math.log %207 : vector<8x1xf32>
      %209 = arith.addf %208, %202 : vector<8x1xf32>
      %210 = vector.broadcast %209 : vector<8x1xf32> to vector<8x128xf32>
      %211 = arith.subf %200, %210 : vector<8x128xf32>
      %c0_58 = arith.constant 0 : index
      %c0_59 = arith.constant 0 : index
      %212 = vector.load %arg7[%c0_58, %c0_59] : memref<8x128xf32, #tpu.memory_space<vmem>>, vector<8x128xf32>
      tpu.vector_store %arg7[%c0_58, %c0_59], %211 {strides = array<i32>} : memref<8x128xf32, #tpu.memory_space<vmem>>, vector<8x128xf32>,
    } else {
    }
    return
  }
  func.func @transform_0(%arg0: i32, %arg1: i32) -> (i32, i32, i32) {
    %c0_i32 = arith.constant 0 : i32
    %c0_i32_0 = arith.constant 0 : i32
    return %arg1, %arg0, %c0_i32 : i32, i32, i32
  }
  func.func @transform_1(%arg0: i32, %arg1: i32) -> (i32, i32) {
    %c0_i32 = arith.constant 0 : i32
    %c0_i32_0 = arith.constant 0 : i32
    %c0_i32_1 = arith.constant 0 : i32
    return %c0_i32, %c0_i32_0 : i32, i32
  }
  func.func @transform_2(%arg0: i32, %arg1: i32) -> (i32, i32) {
    %c0_i32 = arith.constant 0 : i32
    %c0_i32_0 = arith.constant 0 : i32
    %c0_i32_1 = arith.constant 0 : i32
    return %c0_i32, %c0_i32_0 : i32, i32
  }
  func.func @transform_3(%arg0: i32, %arg1: i32) -> (i32, i32) {
    %c0_i32 = arith.constant 0 : i32
    %c0_i32_0 = arith.constant 0 : i32
    %c0_i32_1 = arith.constant 0 : i32
    return %c0_i32, %c0_i32_0 : i32, i32
  }
  func.func @transform_4(%arg0: i32, %arg1: i32) -> (i32, i32) {
    %c0_i32 = arith.constant 0 : i32
    %c0_i32_0 = arith.constant 0 : i32
    %c0_i32_1 = arith.constant 0 : i32
    return %c0_i32, %c0_i32_0 : i32, i32
  }
  func.func @transform_5(%arg0: i32, %arg1: i32) -> (i32, i32) {
    %c0_i32 = arith.constant 0 : i32
    %c0_i32_0 = arith.constant 0 : i32
    return %arg0, %c0_i32 : i32, i32
  }
}

module attributes {stable_mosaic.version = 11 : i64} {
  func.func @gru_kernel(%arg0: i32, %arg1: i32, %arg2: memref<8x8x128xf32, #tpu.memory_space<vmem>>, %arg3: memref<128x384xf32, #tpu.memory_space<vmem>>, %arg4: memref<128x384xf32, #tpu.memory_space<vmem>>, %arg5: memref<128x128xf32, #tpu.memory_space<vmem>>, %arg6: memref<1x128xf32, #tpu.memory_space<vmem>>, %arg7: memref<8x128xf32, #tpu.memory_space<vmem>>, %arg8: memref<8x128xf32, #tpu.memory_space<vmem>>) attributes {dimension_semantics = [#tpu.dimension_semantics<parallel>, #tpu.dimension_semantics<arbitrary>], iteration_bounds = array<i64: 1, 1>, scalar_prefetch = 0 : i64, scratch_operands = 1 : i64, tpu.core_type = #tpu.core_type<tc>, window_params = [{transform_indices = @transform_0, window_bounds = array<i64: 8, 8, 128>}, {pipeline_mode = #tpu.pipeline_mode<synchronous>, transform_indices = @transform_1, window_bounds = array<i64: 128, 384>}, {pipeline_mode = #tpu.pipeline_mode<synchronous>, transform_indices = @transform_2, window_bounds = array<i64: 128, 384>}, {pipeline_mode = #tpu.pipeline_mode<synchronous>, transform_indices = @transform_3, window_bounds = array<i64: 128, 128>}, {pipeline_mode = #tpu.pipeline_mode<synchronous>, transform_indices = @transform_4, window_bounds = array<i64: 1, 128>}, {transform_indices = @transform_5, window_bounds = array<i64: 8, 128>}]} {
    %c0_i32 = arith.constant 0 : i32
    %0 = arith.cmpi eq, %arg1, %c0_i32 : i32
    %1 = arith.extui %0 : i1 to i32
    %c0_i32_0 = arith.constant 0 : i32
    %2 = arith.cmpi ne, %1, %c0_i32_0 : i32
    scf.if %2 {
      %cst_51 = arith.constant 0.000000e+00 : f32
      %196 = vector.broadcast %cst_51 : f32 to vector<8x128xf32>
      %c0_52 = arith.constant 0 : index
      %c0_53 = arith.constant 0 : index
      %197 = vector.load %arg8[%c0_52, %c0_53] : memref<8x128xf32, #tpu.memory_space<vmem>>, vector<8x128xf32>
      tpu.vector_store %arg8[%c0_52, %c0_53], %196 {strides = array<i32>} : memref<8x128xf32, #tpu.memory_space<vmem>>, vector<8x128xf32>,
    } else {
    }
    %c0 = arith.constant 0 : index
    %c0_1 = arith.constant 0 : index
    %c0_2 = arith.constant 0 : index
    %3 = vector.load %arg2[%c0, %c0_1, %c0_2] : memref<8x8x128xf32, #tpu.memory_space<vmem>>, vector<8x8x128xf32>
    %4 = vector.shape_cast %3 : vector<8x8x128xf32> to vector<64x128xf32>
    %c0_3 = arith.constant 0 : index
    %c0_4 = arith.constant 0 : index
    %5 = vector.load %arg3[%c0_3, %c0_4] : memref<128x384xf32, #tpu.memory_space<vmem>>, vector<128x384xf32>
    %cst = arith.constant dense<0.000000e+00> : vector<64x384xf32>
    %6 = tpu.matmul %4, %5, %cst {dimension_numbers = #tpu.dot_dimension_numbers<[1], [0], [0], [1], [0, 0, 1, 1], [], []>} : vector<64x128xf32>, vector<128x384xf32>, vector<64x384xf32> -> vector<64x384xf32>
    %c0_5 = arith.constant 0 : index
    %c0_6 = arith.constant 0 : index
    %7 = vector.load %arg8[%c0_5, %c0_6] : memref<8x128xf32, #tpu.memory_space<vmem>>, vector<8x128xf32>
    %8 = vector.extract_strided_slice %6 {offsets = [0, 0], sizes = [8, 384], strides = [1, 1]} : vector<64x384xf32> to vector<8x384xf32>
    %c0_7 = arith.constant 0 : index
    %c0_8 = arith.constant 0 : index
    %9 = vector.load %arg4[%c0_7, %c0_8] : memref<128x384xf32, #tpu.memory_space<vmem>>, vector<128x384xf32>
    %cst_9 = arith.constant dense<0.000000e+00> : vector<8x384xf32>
    %10 = tpu.matmul %7, %9, %cst_9 {dimension_numbers = #tpu.dot_dimension_numbers<[1], [0], [0], [1], [0, 0, 1, 1], [], []>} : vector<8x128xf32>, vector<128x384xf32>, vector<8x384xf32> -> vector<8x384xf32>
    %11 = vector.extract_strided_slice %8 {offsets = [0, 0], sizes = [8, 256], strides = [1, 1]} : vector<8x384xf32> to vector<8x256xf32>
    %12 = vector.extract_strided_slice %10 {offsets = [0, 0], sizes = [8, 256], strides = [1, 1]} : vector<8x384xf32> to vector<8x256xf32>
    %13 = arith.addf %11, %12 : vector<8x256xf32>
    %14 = arith.negf %13 : vector<8x256xf32>
    %15 = math.exp %14 : vector<8x256xf32>
    %cst_10 = arith.constant 1.000000e+00 : f32
    %16 = vector.broadcast %cst_10 : f32 to vector<8x256xf32>
    %17 = arith.addf %16, %15 : vector<8x256xf32>
    %18 = arith.divf %16, %17 : vector<8x256xf32>
    %19 = vector.extract_strided_slice %18 {offsets = [0, 0], sizes = [8, 128], strides = [1, 1]} : vector<8x256xf32> to vector<8x128xf32>
    %20 = vector.extract_strided_slice %18 {offsets = [0, 128], sizes = [8, 128], strides = [1, 1]} : vector<8x256xf32> to vector<8x128xf32>
    %21 = vector.extract_strided_slice %8 {offsets = [0, 256], sizes = [8, 128], strides = [1, 1]} : vector<8x384xf32> to vector<8x128xf32>
    %22 = vector.extract_strided_slice %10 {offsets = [0, 256], sizes = [8, 128], strides = [1, 1]} : vector<8x384xf32> to vector<8x128xf32>
    %23 = arith.mulf %22, %20 : vector<8x128xf32>
    %24 = arith.addf %21, %23 : vector<8x128xf32>
    %25 = math.tanh %24 : vector<8x128xf32>
    %26 = arith.mulf %19, %7 : vector<8x128xf32>
    %cst_11 = arith.constant 1.000000e+00 : f32
    %27 = vector.broadcast %cst_11 : f32 to vector<8x128xf32>
    %28 = arith.subf %27, %19 : vector<8x128xf32>
    %29 = arith.mulf %28, %25 : vector<8x128xf32>
    %30 = arith.addf %26, %29 : vector<8x128xf32>
    %31 = vector.extract_strided_slice %6 {offsets = [8, 0], sizes = [8, 384], strides = [1, 1]} : vector<64x384xf32> to vector<8x384xf32>
    %c0_12 = arith.constant 0 : index
    %c0_13 = arith.constant 0 : index
    %32 = vector.load %arg4[%c0_12, %c0_13] : memref<128x384xf32, #tpu.memory_space<vmem>>, vector<128x384xf32>
    %cst_14 = arith.constant dense<0.000000e+00> : vector<8x384xf32>
    %33 = tpu.matmul %30, %32, %cst_14 {dimension_numbers = #tpu.dot_dimension_numbers<[1], [0], [0], [1], [0, 0, 1, 1], [], []>} : vector<8x128xf32>, vector<128x384xf32>, vector<8x384xf32> -> vector<8x384xf32>
    %34 = vector.extract_strided_slice %31 {offsets = [0, 0], sizes = [8, 256], strides = [1, 1]} : vector<8x384xf32> to vector<8x256xf32>
    %35 = vector.extract_strided_slice %33 {offsets = [0, 0], sizes = [8, 256], strides = [1, 1]} : vector<8x384xf32> to vector<8x256xf32>
    %36 = arith.addf %34, %35 : vector<8x256xf32>
    %37 = arith.negf %36 : vector<8x256xf32>
    %38 = math.exp %37 : vector<8x256xf32>
    %cst_15 = arith.constant 1.000000e+00 : f32
    %39 = vector.broadcast %cst_15 : f32 to vector<8x256xf32>
    %40 = arith.addf %39, %38 : vector<8x256xf32>
    %41 = arith.divf %39, %40 : vector<8x256xf32>
    %42 = vector.extract_strided_slice %41 {offsets = [0, 0], sizes = [8, 128], strides = [1, 1]} : vector<8x256xf32> to vector<8x128xf32>
    %43 = vector.extract_strided_slice %41 {offsets = [0, 128], sizes = [8, 128], strides = [1, 1]} : vector<8x256xf32> to vector<8x128xf32>
    %44 = vector.extract_strided_slice %31 {offsets = [0, 256], sizes = [8, 128], strides = [1, 1]} : vector<8x384xf32> to vector<8x128xf32>
    %45 = vector.extract_strided_slice %33 {offsets = [0, 256], sizes = [8, 128], strides = [1, 1]} : vector<8x384xf32> to vector<8x128xf32>
    %46 = arith.mulf %45, %43 : vector<8x128xf32>
    %47 = arith.addf %44, %46 : vector<8x128xf32>
    %48 = math.tanh %47 : vector<8x128xf32>
    %49 = arith.mulf %42, %30 : vector<8x128xf32>
    %cst_16 = arith.constant 1.000000e+00 : f32
    %50 = vector.broadcast %cst_16 : f32 to vector<8x128xf32>
    %51 = arith.subf %50, %42 : vector<8x128xf32>
    %52 = arith.mulf %51, %48 : vector<8x128xf32>
    %53 = arith.addf %49, %52 : vector<8x128xf32>
    %54 = vector.extract_strided_slice %6 {offsets = [16, 0], sizes = [8, 384], strides = [1, 1]} : vector<64x384xf32> to vector<8x384xf32>
    %c0_17 = arith.constant 0 : index
    %c0_18 = arith.constant 0 : index
    %55 = vector.load %arg4[%c0_17, %c0_18] : memref<128x384xf32, #tpu.memory_space<vmem>>, vector<128x384xf32>
    %cst_19 = arith.constant dense<0.000000e+00> : vector<8x384xf32>
    %56 = tpu.matmul %53, %55, %cst_19 {dimension_numbers = #tpu.dot_dimension_numbers<[1], [0], [0], [1], [0, 0, 1, 1], [], []>} : vector<8x128xf32>, vector<128x384xf32>, vector<8x384xf32> -> vector<8x384xf32>
    %57 = vector.extract_strided_slice %54 {offsets = [0, 0], sizes = [8, 256], strides = [1, 1]} : vector<8x384xf32> to vector<8x256xf32>
    %58 = vector.extract_strided_slice %56 {offsets = [0, 0], sizes = [8, 256], strides = [1, 1]} : vector<8x384xf32> to vector<8x256xf32>
    %59 = arith.addf %57, %58 : vector<8x256xf32>
    %60 = arith.negf %59 : vector<8x256xf32>
    %61 = math.exp %60 : vector<8x256xf32>
    %cst_20 = arith.constant 1.000000e+00 : f32
    %62 = vector.broadcast %cst_20 : f32 to vector<8x256xf32>
    %63 = arith.addf %62, %61 : vector<8x256xf32>
    %64 = arith.divf %62, %63 : vector<8x256xf32>
    %65 = vector.extract_strided_slice %64 {offsets = [0, 0], sizes = [8, 128], strides = [1, 1]} : vector<8x256xf32> to vector<8x128xf32>
    %66 = vector.extract_strided_slice %64 {offsets = [0, 128], sizes = [8, 128], strides = [1, 1]} : vector<8x256xf32> to vector<8x128xf32>
    %67 = vector.extract_strided_slice %54 {offsets = [0, 256], sizes = [8, 128], strides = [1, 1]} : vector<8x384xf32> to vector<8x128xf32>
    %68 = vector.extract_strided_slice %56 {offsets = [0, 256], sizes = [8, 128], strides = [1, 1]} : vector<8x384xf32> to vector<8x128xf32>
    %69 = arith.mulf %68, %66 : vector<8x128xf32>
    %70 = arith.addf %67, %69 : vector<8x128xf32>
    %71 = math.tanh %70 : vector<8x128xf32>
    %72 = arith.mulf %65, %53 : vector<8x128xf32>
    %cst_21 = arith.constant 1.000000e+00 : f32
    %73 = vector.broadcast %cst_21 : f32 to vector<8x128xf32>
    %74 = arith.subf %73, %65 : vector<8x128xf32>
    %75 = arith.mulf %74, %71 : vector<8x128xf32>
    %76 = arith.addf %72, %75 : vector<8x128xf32>
    %77 = vector.extract_strided_slice %6 {offsets = [24, 0], sizes = [8, 384], strides = [1, 1]} : vector<64x384xf32> to vector<8x384xf32>
    %c0_22 = arith.constant 0 : index
    %c0_23 = arith.constant 0 : index
    %78 = vector.load %arg4[%c0_22, %c0_23] : memref<128x384xf32, #tpu.memory_space<vmem>>, vector<128x384xf32>
    %cst_24 = arith.constant dense<0.000000e+00> : vector<8x384xf32>
    %79 = tpu.matmul %76, %78, %cst_24 {dimension_numbers = #tpu.dot_dimension_numbers<[1], [0], [0], [1], [0, 0, 1, 1], [], []>} : vector<8x128xf32>, vector<128x384xf32>, vector<8x384xf32> -> vector<8x384xf32>
    %80 = vector.extract_strided_slice %77 {offsets = [0, 0], sizes = [8, 256], strides = [1, 1]} : vector<8x384xf32> to vector<8x256xf32>
    %81 = vector.extract_strided_slice %79 {offsets = [0, 0], sizes = [8, 256], strides = [1, 1]} : vector<8x384xf32> to vector<8x256xf32>
    %82 = arith.addf %80, %81 : vector<8x256xf32>
    %83 = arith.negf %82 : vector<8x256xf32>
    %84 = math.exp %83 : vector<8x256xf32>
    %cst_25 = arith.constant 1.000000e+00 : f32
    %85 = vector.broadcast %cst_25 : f32 to vector<8x256xf32>
    %86 = arith.addf %85, %84 : vector<8x256xf32>
    %87 = arith.divf %85, %86 : vector<8x256xf32>
    %88 = vector.extract_strided_slice %87 {offsets = [0, 0], sizes = [8, 128], strides = [1, 1]} : vector<8x256xf32> to vector<8x128xf32>
    %89 = vector.extract_strided_slice %87 {offsets = [0, 128], sizes = [8, 128], strides = [1, 1]} : vector<8x256xf32> to vector<8x128xf32>
    %90 = vector.extract_strided_slice %77 {offsets = [0, 256], sizes = [8, 128], strides = [1, 1]} : vector<8x384xf32> to vector<8x128xf32>
    %91 = vector.extract_strided_slice %79 {offsets = [0, 256], sizes = [8, 128], strides = [1, 1]} : vector<8x384xf32> to vector<8x128xf32>
    %92 = arith.mulf %91, %89 : vector<8x128xf32>
    %93 = arith.addf %90, %92 : vector<8x128xf32>
    %94 = math.tanh %93 : vector<8x128xf32>
    %95 = arith.mulf %88, %76 : vector<8x128xf32>
    %cst_26 = arith.constant 1.000000e+00 : f32
    %96 = vector.broadcast %cst_26 : f32 to vector<8x128xf32>
    %97 = arith.subf %96, %88 : vector<8x128xf32>
    %98 = arith.mulf %97, %94 : vector<8x128xf32>
    %99 = arith.addf %95, %98 : vector<8x128xf32>
    %100 = vector.extract_strided_slice %6 {offsets = [32, 0], sizes = [8, 384], strides = [1, 1]} : vector<64x384xf32> to vector<8x384xf32>
    %c0_27 = arith.constant 0 : index
    %c0_28 = arith.constant 0 : index
    %101 = vector.load %arg4[%c0_27, %c0_28] : memref<128x384xf32, #tpu.memory_space<vmem>>, vector<128x384xf32>
    %cst_29 = arith.constant dense<0.000000e+00> : vector<8x384xf32>
    %102 = tpu.matmul %99, %101, %cst_29 {dimension_numbers = #tpu.dot_dimension_numbers<[1], [0], [0], [1], [0, 0, 1, 1], [], []>} : vector<8x128xf32>, vector<128x384xf32>, vector<8x384xf32> -> vector<8x384xf32>
    %103 = vector.extract_strided_slice %100 {offsets = [0, 0], sizes = [8, 256], strides = [1, 1]} : vector<8x384xf32> to vector<8x256xf32>
    %104 = vector.extract_strided_slice %102 {offsets = [0, 0], sizes = [8, 256], strides = [1, 1]} : vector<8x384xf32> to vector<8x256xf32>
    %105 = arith.addf %103, %104 : vector<8x256xf32>
    %106 = arith.negf %105 : vector<8x256xf32>
    %107 = math.exp %106 : vector<8x256xf32>
    %cst_30 = arith.constant 1.000000e+00 : f32
    %108 = vector.broadcast %cst_30 : f32 to vector<8x256xf32>
    %109 = arith.addf %108, %107 : vector<8x256xf32>
    %110 = arith.divf %108, %109 : vector<8x256xf32>
    %111 = vector.extract_strided_slice %110 {offsets = [0, 0], sizes = [8, 128], strides = [1, 1]} : vector<8x256xf32> to vector<8x128xf32>
    %112 = vector.extract_strided_slice %110 {offsets = [0, 128], sizes = [8, 128], strides = [1, 1]} : vector<8x256xf32> to vector<8x128xf32>
    %113 = vector.extract_strided_slice %100 {offsets = [0, 256], sizes = [8, 128], strides = [1, 1]} : vector<8x384xf32> to vector<8x128xf32>
    %114 = vector.extract_strided_slice %102 {offsets = [0, 256], sizes = [8, 128], strides = [1, 1]} : vector<8x384xf32> to vector<8x128xf32>
    %115 = arith.mulf %114, %112 : vector<8x128xf32>
    %116 = arith.addf %113, %115 : vector<8x128xf32>
    %117 = math.tanh %116 : vector<8x128xf32>
    %118 = arith.mulf %111, %99 : vector<8x128xf32>
    %cst_31 = arith.constant 1.000000e+00 : f32
    %119 = vector.broadcast %cst_31 : f32 to vector<8x128xf32>
    %120 = arith.subf %119, %111 : vector<8x128xf32>
    %121 = arith.mulf %120, %117 : vector<8x128xf32>
    %122 = arith.addf %118, %121 : vector<8x128xf32>
    %123 = vector.extract_strided_slice %6 {offsets = [40, 0], sizes = [8, 384], strides = [1, 1]} : vector<64x384xf32> to vector<8x384xf32>
    %c0_32 = arith.constant 0 : index
    %c0_33 = arith.constant 0 : index
    %124 = vector.load %arg4[%c0_32, %c0_33] : memref<128x384xf32, #tpu.memory_space<vmem>>, vector<128x384xf32>
    %cst_34 = arith.constant dense<0.000000e+00> : vector<8x384xf32>
    %125 = tpu.matmul %122, %124, %cst_34 {dimension_numbers = #tpu.dot_dimension_numbers<[1], [0], [0], [1], [0, 0, 1, 1], [], []>} : vector<8x128xf32>, vector<128x384xf32>, vector<8x384xf32> -> vector<8x384xf32>
    %126 = vector.extract_strided_slice %123 {offsets = [0, 0], sizes = [8, 256], strides = [1, 1]} : vector<8x384xf32> to vector<8x256xf32>
    %127 = vector.extract_strided_slice %125 {offsets = [0, 0], sizes = [8, 256], strides = [1, 1]} : vector<8x384xf32> to vector<8x256xf32>
    %128 = arith.addf %126, %127 : vector<8x256xf32>
    %129 = arith.negf %128 : vector<8x256xf32>
    %130 = math.exp %129 : vector<8x256xf32>
    %cst_35 = arith.constant 1.000000e+00 : f32
    %131 = vector.broadcast %cst_35 : f32 to vector<8x256xf32>
    %132 = arith.addf %131, %130 : vector<8x256xf32>
    %133 = arith.divf %131, %132 : vector<8x256xf32>
    %134 = vector.extract_strided_slice %133 {offsets = [0, 0], sizes = [8, 128], strides = [1, 1]} : vector<8x256xf32> to vector<8x128xf32>
    %135 = vector.extract_strided_slice %133 {offsets = [0, 128], sizes = [8, 128], strides = [1, 1]} : vector<8x256xf32> to vector<8x128xf32>
    %136 = vector.extract_strided_slice %123 {offsets = [0, 256], sizes = [8, 128], strides = [1, 1]} : vector<8x384xf32> to vector<8x128xf32>
    %137 = vector.extract_strided_slice %125 {offsets = [0, 256], sizes = [8, 128], strides = [1, 1]} : vector<8x384xf32> to vector<8x128xf32>
    %138 = arith.mulf %137, %135 : vector<8x128xf32>
    %139 = arith.addf %136, %138 : vector<8x128xf32>
    %140 = math.tanh %139 : vector<8x128xf32>
    %141 = arith.mulf %134, %122 : vector<8x128xf32>
    %cst_36 = arith.constant 1.000000e+00 : f32
    %142 = vector.broadcast %cst_36 : f32 to vector<8x128xf32>
    %143 = arith.subf %142, %134 : vector<8x128xf32>
    %144 = arith.mulf %143, %140 : vector<8x128xf32>
    %145 = arith.addf %141, %144 : vector<8x128xf32>
    %146 = vector.extract_strided_slice %6 {offsets = [48, 0], sizes = [8, 384], strides = [1, 1]} : vector<64x384xf32> to vector<8x384xf32>
    %c0_37 = arith.constant 0 : index
    %c0_38 = arith.constant 0 : index
    %147 = vector.load %arg4[%c0_37, %c0_38] : memref<128x384xf32, #tpu.memory_space<vmem>>, vector<128x384xf32>
    %cst_39 = arith.constant dense<0.000000e+00> : vector<8x384xf32>
    %148 = tpu.matmul %145, %147, %cst_39 {dimension_numbers = #tpu.dot_dimension_numbers<[1], [0], [0], [1], [0, 0, 1, 1], [], []>} : vector<8x128xf32>, vector<128x384xf32>, vector<8x384xf32> -> vector<8x384xf32>
    %149 = vector.extract_strided_slice %146 {offsets = [0, 0], sizes = [8, 256], strides = [1, 1]} : vector<8x384xf32> to vector<8x256xf32>
    %150 = vector.extract_strided_slice %148 {offsets = [0, 0], sizes = [8, 256], strides = [1, 1]} : vector<8x384xf32> to vector<8x256xf32>
    %151 = arith.addf %149, %150 : vector<8x256xf32>
    %152 = arith.negf %151 : vector<8x256xf32>
    %153 = math.exp %152 : vector<8x256xf32>
    %cst_40 = arith.constant 1.000000e+00 : f32
    %154 = vector.broadcast %cst_40 : f32 to vector<8x256xf32>
    %155 = arith.addf %154, %153 : vector<8x256xf32>
    %156 = arith.divf %154, %155 : vector<8x256xf32>
    %157 = vector.extract_strided_slice %156 {offsets = [0, 0], sizes = [8, 128], strides = [1, 1]} : vector<8x256xf32> to vector<8x128xf32>
    %158 = vector.extract_strided_slice %156 {offsets = [0, 128], sizes = [8, 128], strides = [1, 1]} : vector<8x256xf32> to vector<8x128xf32>
    %159 = vector.extract_strided_slice %146 {offsets = [0, 256], sizes = [8, 128], strides = [1, 1]} : vector<8x384xf32> to vector<8x128xf32>
    %160 = vector.extract_strided_slice %148 {offsets = [0, 256], sizes = [8, 128], strides = [1, 1]} : vector<8x384xf32> to vector<8x128xf32>
    %161 = arith.mulf %160, %158 : vector<8x128xf32>
    %162 = arith.addf %159, %161 : vector<8x128xf32>
    %163 = math.tanh %162 : vector<8x128xf32>
    %164 = arith.mulf %157, %145 : vector<8x128xf32>
    %cst_41 = arith.constant 1.000000e+00 : f32
    %165 = vector.broadcast %cst_41 : f32 to vector<8x128xf32>
    %166 = arith.subf %165, %157 : vector<8x128xf32>
    %167 = arith.mulf %166, %163 : vector<8x128xf32>
    %168 = arith.addf %164, %167 : vector<8x128xf32>
    %169 = vector.extract_strided_slice %6 {offsets = [56, 0], sizes = [8, 384], strides = [1, 1]} : vector<64x384xf32> to vector<8x384xf32>
    %c0_42 = arith.constant 0 : index
    %c0_43 = arith.constant 0 : index
    %170 = vector.load %arg4[%c0_42, %c0_43] : memref<128x384xf32, #tpu.memory_space<vmem>>, vector<128x384xf32>
    %cst_44 = arith.constant dense<0.000000e+00> : vector<8x384xf32>
    %171 = tpu.matmul %168, %170, %cst_44 {dimension_numbers = #tpu.dot_dimension_numbers<[1], [0], [0], [1], [0, 0, 1, 1], [], []>} : vector<8x128xf32>, vector<128x384xf32>, vector<8x384xf32> -> vector<8x384xf32>
    %172 = vector.extract_strided_slice %169 {offsets = [0, 0], sizes = [8, 256], strides = [1, 1]} : vector<8x384xf32> to vector<8x256xf32>
    %173 = vector.extract_strided_slice %171 {offsets = [0, 0], sizes = [8, 256], strides = [1, 1]} : vector<8x384xf32> to vector<8x256xf32>
    %174 = arith.addf %172, %173 : vector<8x256xf32>
    %175 = arith.negf %174 : vector<8x256xf32>
    %176 = math.exp %175 : vector<8x256xf32>
    %cst_45 = arith.constant 1.000000e+00 : f32
    %177 = vector.broadcast %cst_45 : f32 to vector<8x256xf32>
    %178 = arith.addf %177, %176 : vector<8x256xf32>
    %179 = arith.divf %177, %178 : vector<8x256xf32>
    %180 = vector.extract_strided_slice %179 {offsets = [0, 0], sizes = [8, 128], strides = [1, 1]} : vector<8x256xf32> to vector<8x128xf32>
    %181 = vector.extract_strided_slice %179 {offsets = [0, 128], sizes = [8, 128], strides = [1, 1]} : vector<8x256xf32> to vector<8x128xf32>
    %182 = vector.extract_strided_slice %169 {offsets = [0, 256], sizes = [8, 128], strides = [1, 1]} : vector<8x384xf32> to vector<8x128xf32>
    %183 = vector.extract_strided_slice %171 {offsets = [0, 256], sizes = [8, 128], strides = [1, 1]} : vector<8x384xf32> to vector<8x128xf32>
    %184 = arith.mulf %183, %181 : vector<8x128xf32>
    %185 = arith.addf %182, %184 : vector<8x128xf32>
    %186 = math.tanh %185 : vector<8x128xf32>
    %187 = arith.mulf %180, %168 : vector<8x128xf32>
    %cst_46 = arith.constant 1.000000e+00 : f32
    %188 = vector.broadcast %cst_46 : f32 to vector<8x128xf32>
    %189 = arith.subf %188, %180 : vector<8x128xf32>
    %190 = arith.mulf %189, %186 : vector<8x128xf32>
    %191 = arith.addf %187, %190 : vector<8x128xf32>
    %c0_47 = arith.constant 0 : index
    %c0_48 = arith.constant 0 : index
    %192 = vector.load %arg8[%c0_47, %c0_48] : memref<8x128xf32, #tpu.memory_space<vmem>>, vector<8x128xf32>
    tpu.vector_store %arg8[%c0_47, %c0_48], %191 {strides = array<i32>} : memref<8x128xf32, #tpu.memory_space<vmem>>, vector<8x128xf32>,
    %c0_i32_49 = arith.constant 0 : i32
    %193 = arith.cmpi eq, %arg1, %c0_i32_49 : i32
    %194 = arith.extui %193 : i1 to i32
    %c0_i32_50 = arith.constant 0 : i32
    %195 = arith.cmpi ne, %194, %c0_i32_50 : i32
    scf.if %195 {
      %c0_51 = arith.constant 0 : index
      %c0_52 = arith.constant 0 : index
      %196 = vector.load %arg5[%c0_51, %c0_52] : memref<128x128xf32, #tpu.memory_space<vmem>>, vector<128x128xf32>
      %cst_53 = arith.constant dense<0.000000e+00> : vector<8x128xf32>
      %197 = tpu.matmul %191, %196, %cst_53 {dimension_numbers = #tpu.dot_dimension_numbers<[1], [0], [0], [1], [0, 0, 1, 1], [], []>} : vector<8x128xf32>, vector<128x128xf32>, vector<8x128xf32> -> vector<8x128xf32>
      %c0_54 = arith.constant 0 : index
      %c0_55 = arith.constant 0 : index
      %198 = vector.load %arg6[%c0_54, %c0_55] : memref<1x128xf32, #tpu.memory_space<vmem>>, vector<1x128xf32>
      %199 = vector.broadcast %198 : vector<1x128xf32> to vector<8x128xf32>
      %200 = arith.addf %197, %199 : vector<8x128xf32>
      %cst_56 = arith.constant dense<0xFF800000> : vector<8xf32>
      %201 = vector.multi_reduction <maximumf>, %200, %cst_56 [1] : vector<8x128xf32> to vector<8xf32>
      %202 = vector.shape_cast %201 : vector<8xf32> to vector<8x1xf32>
      %203 = vector.broadcast %202 : vector<8x1xf32> to vector<8x128xf32>
      %204 = arith.subf %200, %203 : vector<8x128xf32>
      %205 = math.exp %204 : vector<8x128xf32>
      %cst_57 = arith.constant dense<0.000000e+00> : vector<8xf32>
      %206 = vector.multi_reduction <add>, %205, %cst_57 [1] : vector<8x128xf32> to vector<8xf32>
      %207 = vector.shape_cast %206 : vector<8xf32> to vector<8x1xf32>
      %208 = math.log %207 : vector<8x1xf32>
      %209 = arith.addf %208, %202 : vector<8x1xf32>
      %210 = vector.broadcast %209 : vector<8x1xf32> to vector<8x128xf32>
      %211 = arith.subf %200, %210 : vector<8x128xf32>
      %c0_58 = arith.constant 0 : index
      %c0_59 = arith.constant 0 : index
      %212 = vector.load %arg7[%c0_58, %c0_59] : memref<8x128xf32, #tpu.memory_space<vmem>>, vector<8x128xf32>
      tpu.vector_store %arg7[%c0_58, %c0_59], %211 {strides = array<i32>} : memref<8x128xf32, #tpu.memory_space<vmem>>, vector<8x128xf32>,
    } else {
    }
    return
  }
  func.func @transform_0(%arg0: i32, %arg1: i32) -> (i32, i32, i32) {
    %c0_i32 = arith.constant 0 : i32
    %c0_i32_0 = arith.constant 0 : i32
    return %arg1, %arg0, %c0_i32 : i32, i32, i32
  }
  func.func @transform_1(%arg0: i32, %arg1: i32) -> (i32, i32) {
    %c0_i32 = arith.constant 0 : i32
    %c0_i32_0 = arith.constant 0 : i32
    %c0_i32_1 = arith.constant 0 : i32
    return %c0_i32, %c0_i32_0 : i32, i32
  }
  func.func @transform_2(%arg0: i32, %arg1: i32) -> (i32, i32) {
    %c0_i32 = arith.constant 0 : i32
    %c0_i32_0 = arith.constant 0 : i32
    %c0_i32_1 = arith.constant 0 : i32
    return %c0_i32, %c0_i32_0 : i32, i32
  }
  func.func @transform_3(%arg0: i32, %arg1: i32) -> (i32, i32) {
    %c0_i32 = arith.constant 0 : i32
    %c0_i32_0 = arith.constant 0 : i32
    %c0_i32_1 = arith.constant 0 : i32
    return %c0_i32, %c0_i32_0 : i32, i32
  }
  func.func @transform_4(%arg0: i32, %arg1: i32) -> (i32, i32) {
    %c0_i32 = arith.constant 0 : i32
    %c0_i32_0 = arith.constant 0 : i32
    %c0_i32_1 = arith.constant 0 : i32
    return %c0_i32, %c0_i32_0 : i32, i32
  }
  func.func @transform_5(%arg0: i32, %arg1: i32) -> (i32, i32) {
    %c0_i32 = arith.constant 0 : i32
    %c0_i32_0 = arith.constant 0 : i32
    return %arg0, %c0_i32 : i32, i32
  }
}

</mosaic_0001>

<bundles_post_ra>
// kernel: tpu_custom_call.1
= control target key start
LH: loop header
LB: loop body
LE: loop exit
PB: predicated region body
PF: predicated region fallthrough
CT: control target
= control target key end

     0   :  { %10 = vsyncpa [#allocation4], 0  ;;  %s3647_s0 = inlined_call_operand.hbm [shape: f32[8,8,128], index: 0, kind: input, shape index: {}]   ;;  %s3648_s1 = inlined_call_operand.hbm [shape: f32[128,384], index: 1, kind: input, shape index: {}]   ;;  %s3649_s2 = inlined_call_operand.hbm [shape: f32[128,384], index: 2, kind: input, shape index: {}]   ;;  %s3650_s3 = inlined_call_operand.hbm [shape: f32[128,128], index: 3, kind: input, shape index: {}]   ;;  %s3651_s4 = inlined_call_operand.vmem [shape: f32[1,128], index: 4, kind: input, shape index: {}]   ;;  %s3652_s5 = inlined_call_operand.hbm [shape: f32[8,128], index: 5, kind: output, shape index: {}]  }
   0x1   :  { %11 = vsyncpa [#allocation7], 0 }
   0x2   :  { %12 = vsyncpa [#allocation10], 0 }
   0x3   :  { %13 = vsyncpa [#allocation5], 0  ;;  %s3145_s18 = smov [#allocation6]   ;;  %s3027_s22 = scalar_lea.hbm %s3648_s1, 6144 }
   0x4   :  { %s31_s19 = sshll.u32 %s3145_s18, 4  ;;  %p3028_p0 = scmp.ne.s32.totalorder %s3648_s1, %s3027_s22  ;;  %s32_s19 = int_to_ptr.vmem [resolvable:$true] %s31_s19 }
   0x5   :  { %p3031_p1 = scmp.lt.u32.totalorder %s3027_s22, %s3648_s1 }
   0x7   :  { %p3033_p2 = pnand %p3031_p1, %p3028_p0 }
   0x9   :  { %3036 = shalt.err (!%p3033_p2)
}
   0xa   :  { %s3037_s27 = scalar_lea.vmem %s32_s19, 6144  ;;  %p3042_p4 = scmp.lt.s32.totalorder %s32_s19, %s32_s19 }
   0xb   :  { %p3038_p3 = scmp.ne.s32.totalorder %s32_s19, %s3037_s27  ;;  %p3043_p5 = scmp.lt.s32.totalorder %s3037_s27, %s3037_s27 }
   0xd   :  { %p3044_p6 = por %p3043_p5, %p3042_p4 }
   0xf   :  { %p3045_p7 = pnand %p3044_p6, %p3038_p3 }
  0x11   :  { %3048 = shalt.err (!%p3045_p7)
}
  0x12   :  { %s3146_s28 = smov 384   ;;  %s3147_s29 = smov 24  }
  0x13   :  { %37 = dma.hbm_to_vmem [thread:$0]  %s3648_s1, 6144, %s32_s19, [#allocation7], %s3146_s28, %s3146_s28, %s3147_s29  }
  0x14   :  { %s3148_s7 = smov [#allocation3]   ;;  %s3049_s11 = scalar_lea.hbm %s3647_s0, 1024 }
  0x15   :  { %s19_s8 = sshll.u32 %s3148_s7, 4  ;;  %p3050_p8 = scmp.ne.s32.totalorder %s3647_s0, %s3049_s11  ;;  %s20_s8 = int_to_ptr.vmem [resolvable:$true] %s19_s8 }
  0x16   :  { %p3053_p9 = scmp.lt.u32.totalorder %s3049_s11, %s3647_s0 }
  0x18   :  { %p3055_p10 = pnand %p3053_p9, %p3050_p8 }
  0x1a   :  { %3058 = shalt.err (!%p3055_p10)
}
  0x1b   :  { %s3059_s16 = scalar_lea.vmem %s20_s8, 1024  ;;  %p3064_p12 = scmp.lt.s32.totalorder %s20_s8, %s20_s8 }
  0x1c   :  { %p3060_p11 = scmp.ne.s32.totalorder %s20_s8, %s3059_s16  ;;  %p3065_p13 = scmp.lt.s32.totalorder %s3059_s16, %s3059_s16 }
  0x1e   :  { %p3066_p0 = por %p3065_p13, %p3064_p12 }
  0x20   :  { %p3067_p1 = pnand %p3066_p0, %p3060_p11 }
  0x22   :  { %3070 = shalt.err (!%p3067_p1)
}
  0x23   :  { %s3149_s1 = smov 128   ;;  %s3150_s17 = smov 8  }
  0x24   :  { %25 = dma.hbm_to_vmem [thread:$0]  %s3647_s0, 1024, %s20_s8, [#allocation4], %s3149_s1, %s3149_s1, %s3150_s17  }
  0x25   :  { %s3151_s20 = smov [#allocation8]   ;;  %s3152_s22 = smov [#allocation9]  }
  0x26   :  { %s43_s21 = sshll.u32 %s3151_s20, 4  ;;  %s55_s23 = sshll.u32 %s3152_s22, 4  ;;  %s44_s21 = int_to_ptr.vmem [resolvable:$true] %s43_s21  ;;  %s3217_s23 = int_to_ptr.vmem [resolvable:$true] %s55_s23 }
  0x27   :  { %s3071_s26 = scalar_lea.hbm %s3649_s2, 6144 }
  0x28   :  { %p3072_p2 = scmp.ne.s32.totalorder %s3649_s2, %s3071_s26  ;;  %p3075_p3 = scmp.lt.u32.totalorder %s3071_s26, %s3649_s2 }
  0x2a   :  { %p3077_p4 = pnand %p3075_p3, %p3072_p2 }
  0x2c   :  { %3080 = shalt.err (!%p3077_p4)
}
  0x2d   :  { %s3081_s0 = scalar_lea.vmem %s44_s21, 6144  ;;  %p3086_p6 = scmp.lt.s32.totalorder %s44_s21, %s44_s21 }
  0x2e   :  { %p3082_p5 = scmp.ne.s32.totalorder %s44_s21, %s3081_s0  ;;  %p3087_p7 = scmp.lt.s32.totalorder %s3081_s0, %s3081_s0 }
  0x30   :  { %p3088_p8 = por %p3087_p7, %p3086_p6 }
  0x32   :  { %p3089_p9 = pnand %p3088_p8, %p3082_p5 }
  0x34   :  { %3092 = shalt.err (!%p3089_p9)
}
  0x35   :  { %49 = dma.hbm_to_vmem [thread:$0]  %s3649_s2, 6144, %s44_s21, [#allocation7], %s3146_s28, %s3146_s28, %s3147_s29  }
  0x36   :  { %s3093_s12 = scalar_lea.hbm %s3650_s3, 2048 }
  0x37   :  { %p3094_p10 = scmp.ne.s32.totalorder %s3650_s3, %s3093_s12  ;;  %p3097_p11 = scmp.lt.u32.totalorder %s3093_s12, %s3650_s3 }
  0x39   :  { %p3099_p12 = pnand %p3097_p11, %p3094_p10 }
  0x3b   :  { %3102 = shalt.err (!%p3099_p12)
}
  0x3c   :  { %s3103_s18 = scalar_lea.vmem %s3217_s23, 2048  ;;  %p3108_p0 = scmp.lt.s32.totalorder %s3217_s23, %s3217_s23 }
  0x3d   :  { %p3104_p13 = scmp.ne.s32.totalorder %s3217_s23, %s3103_s18  ;;  %p3109_p1 = scmp.lt.s32.totalorder %s3103_s18, %s3103_s18 }
  0x3f   :  { %p3110_p2 = por %p3109_p1, %p3108_p0 }
  0x41   :  { %p3111_p3 = pnand %p3110_p2, %p3104_p13 }
  0x43   :  { %3114 = shalt.err (!%p3111_p3)
}
  0x44   :  { %61 = dma.hbm_to_vmem [thread:$0]  %s3650_s3, 2048, %s3217_s23, [#allocation10], %s3149_s1, %s3149_s1, %s3150_s17  }
  0x45   :  { %3137 = dma.done.wait [#allocation4], 1024  }
  0x46   :  { %3138 = vsyncadd [#allocation4], 4294966272 }
  0x47   :  { %3139 = dma.done.wait [#allocation7], 12288  }
  0x48   :  { %3140 = vsyncadd [#allocation7], 4294955008 }
  0x49   :  { %3141 = dma.done.wait [#allocation10], 2048  }
  0x4a   :  { %3142 = vsyncadd [#allocation10], 4294965248  ;;  %v3153_v0 = vmov 0.0   ;;  %v90_v1 = vld [vmem:[#allocation6 + $0x8] sm:$0xff]  ;;  %v93_v2 = vld [vmem:[#allocation6 + $0x20] sm:$0xff]  ;;  %vm3155_vm0 = vmmov 0  }
  0x4b   :  { %201 = vmatprep.mubr.f32.mxu0 %v3153_v0  ;;  %v89_v3 = vld [vmem:[#allocation6] sm:$0xff]  ;;  %v2379_v4 = vpack.c.bf16 %v93_v2, %v90_v1  ;;  %v92_v5 = vld [vmem:[#allocation6 + $0x18] sm:$0xff]  ;;  %v99_v7 = vld [vmem:[#allocation6 + $0x50] sm:$0xff]  ;;  %s3156_s1 = smov [#allocation11]  }
  0x4c   :  { %v96_v6 = vld [vmem:[#allocation6 + $0x38] sm:$0xff]  ;;  %v2381_v8 = vpack.c.bf16 %v92_v5, %v89_v3  ;;  %v95_v10 = vld [vmem:[#allocation6 + $0x30] sm:$0xff]  ;;  %v98_v11 = vld [vmem:[#allocation6 + $0x48] sm:$0xff]  ;;  %s1815_s17 = sshll.u32 %s3156_s1, 4  ;;  %s1816_s17 = int_to_ptr.vmem [resolvable:$true] %s1815_s17 }
  0x4d   :  { %v2383_v9 = vpack.c.bf16 %v99_v7, %v96_v6  ;;  %v102_v12 = vld [vmem:[#allocation6 + $0x68] sm:$0xff]  ;;  %2380 = vmatprep.subr.bf16.mxu0 %v2379_v4  ;;  %v105_v13 = vld [vmem:[#allocation6 + $0x80] sm:$0xff]  ;;  %v2385_v14 = vpack.c.bf16 %v98_v11, %v95_v10  ;;  %v104_v17 = vld [vmem:[#allocation6 + $0x78] sm:$0xff]  ;;  %p3120_p5 = scmp.lt.s32.totalorder %s1816_s17, %s1816_s17 }
  0x4e   :  { %2382 = vmatpush1.bf16.msra.mxu0 %v2381_v8  ;;  %v2387_v15 = vpack.c.bf16 %v105_v13, %v102_v12  ;;  %v101_v16 = vld [vmem:[#allocation6 + $0x60] sm:$0xff]  ;;  %v108_v18 = vld [vmem:[#allocation6 + $0x98] sm:$0xff]  ;;  %v111_v19 = vld [vmem:[#allocation6 + $0xb0] sm:$0xff] }
  0x4f   :  { %2384 = vmatprep.subr.bf16.mxu0 %v2383_v9  ;;  %v2389_v20 = vpack.c.bf16 %v104_v17, %v101_v16  ;;  %v107_v21 = vld [vmem:[#allocation6 + $0x90] sm:$0xff]  ;;  %v2391_v22 = vpack.c.bf16 %v111_v19, %v108_v18  ;;  %v110_v23 = vld [vmem:[#allocation6 + $0xa8] sm:$0xff]  ;;  %v117_v27 = vld [vmem:[#allocation6 + $0xe0] sm:$0xff] }
  0x50   :  { %v91_v24 = vld [vmem:[#allocation6 + $0x10] sm:$0xff]  ;;  %v94_v25 = vld [vmem:[#allocation6 + $0x28] sm:$0xff]  ;;  %v97_v29 = vld [vmem:[#allocation6 + $0x40] sm:$0xff]  ;;  %v2393_v31 = vpack.c.bf16 %v110_v23, %v107_v21 }
  0x51   :  { %v114_v26 = vld [vmem:[#allocation6 + $0xc8] sm:$0xff]  ;;  %v2411_v28 = vpack.c.bf16 %v94_v25, %v91_v24  ;;  %v100_v30 = vld [vmem:[#allocation6 + $0x58] sm:$0xff]  ;;  %v113_v32 = vld [vmem:[#allocation6 + $0xc0] sm:$0xff] }
  0x52   :  { %2386 = vmatpush1.bf16.msra.mxu0 %v2385_v14  ;;  %v2415_v33 = vpack.c.bf16 %v100_v30, %v97_v29  ;;  %v2395_v34 = vpack.c.bf16 %v117_v27, %v114_v26  ;;  %v116_v35 = vld [vmem:[#allocation6 + $0xd8] sm:$0xff]  ;;  %v3255_v36 = vld [vmem:[#allocation3] sm:$0xff]  ;;  %v103_v37 = vld [vmem:[#allocation6 + $0x70] sm:$0xff] }
  0x53   :  { %2388 = vmatprep.subr.bf16.mxu0 %v2387_v15  ;;  %2412 = vmatprep.subr.bf16.mxu1 %v2411_v28  ;;  %v120_v38 = vld [vmem:[#allocation6 + $0xf8] sm:$0xff]  ;;  %v123_v39 = vld [vmem:[#allocation6 + $0x110] sm:$0xff]  ;;  %v106_v40 = vld [vmem:[#allocation6 + $0x88] sm:$0xff]  ;;  %v2397_v42 = vpack.c.bf16 %v116_v35, %v113_v32 }
  0x54   :  { %2414 = vmatpush3.bf16.msra.mxu1 %v2411_v28  ;;  %2052 = vmatprep.mubr.f32.mxu1 %v3255_v36  ;;  %v2419_v41 = vpack.c.bf16 %v106_v40, %v103_v37  ;;  %v109_v43 = vld [vmem:[#allocation6 + $0xa0] sm:$0xff]  ;;  %v112_v44 = vld [vmem:[#allocation6 + $0xb8] sm:$0xff]  ;;  %v2399_v45 = vpack.c.bf16 %v123_v39, %v120_v38  ;;  %v119_v46 = vld [vmem:[#allocation6 + $0xf0] sm:$0xff]  ;;  %v3154_v40 = vmov 0.0|0.0  }
  0x55   :  { %2416 = vmatprep.subr.bf16.mxu1 %v2415_v33  ;;  %v122_v47 = vld [vmem:[#allocation6 + $0x108] sm:$0xff]  ;;  %v129_v49 = vld [vmem:[#allocation6 + $0x140] sm:$0xff]  ;;  %v2423_v50 = vpack.c.bf16 %v112_v44, %v109_v43  ;;  %v115_v51 = vld [vmem:[#allocation6 + $0xd0] sm:$0xff] }
  0x56   :  { %2390 = vmatpush1.bf16.msra.mxu0 %v2389_v20  ;;  %v126_v48 = vld [vmem:[#allocation6 + $0x128] sm:$0xff]  ;;  %v2401_v53 = vpack.c.bf16 %v122_v47, %v119_v46  ;;  %v125_v55 = vld [vmem:[#allocation6 + $0x120] sm:$0xff]  ;;  %v128_v56 = vld [vmem:[#allocation6 + $0x138] sm:$0xff] }
  0x57   :  { %2392 = vmatprep.subr.bf16.mxu0 %v2391_v22  ;;  %v118_v52 = vld [vmem:[#allocation6 + $0xe8] sm:$0xff]  ;;  %v2403_v54 = vpack.c.bf16 %v129_v49, %v126_v48  ;;  %v132_v57 = vld [vmem:[#allocation6 + $0x158] sm:$0xff]  ;;  %v135_v58 = vld [vmem:[#allocation6 + $0x170] sm:$0xff]  ;;  %v2405_v62 = vpack.c.bf16 %v128_v56, %v125_v55 }
  0x58   :  { %2418 = vmatpush3.bf16.msra.mxu1 %v2415_v33  ;;  %v2427_v59 = vpack.c.bf16 %v118_v52, %v115_v51  ;;  %v121_v60 = vld [vmem:[#allocation6 + $0x100] sm:$0xff]  ;;  %v124_v61 = vld [vmem:[#allocation6 + $0x118] sm:$0xff]  ;;  %v2407_v63 = vpack.c.bf16 %v135_v58, %v132_v57  ;;  %v131_v1 = vld [vmem:[#allocation6 + $0x150] sm:$0xff] }
  0x59   :  { %2420 = vmatprep.subr.bf16.mxu1 %v2419_v41  ;;  %v134_v2 = vld [vmem:[#allocation6 + $0x168] sm:$0xff]  ;;  %v360_v4 = vld [vmem:[#allocation8 + $0x20] sm:$0xff]  ;;  %v2431_v5 = vpack.c.bf16 %v124_v61, %v121_v60  ;;  %v127_v6 = vld [vmem:[#allocation6 + $0x130] sm:$0xff] }
  0x5a   :  { %2394 = vmatpush1.bf16.msra.mxu0 %v2393_v31  ;;  %v357_v3 = vld [vmem:[#allocation8 + $0x8] sm:$0xff]  ;;  %v2409_v8 = vpack.c.bf16 %v134_v2, %v131_v1  ;;  %v356_v10 = vld [vmem:[#allocation8] sm:$0xff]  ;;  %v359_v11 = vld [vmem:[#allocation8 + $0x18] sm:$0xff] }
  0x5b   :  { %2396 = vmatprep.subr.bf16.mxu0 %v2395_v34  ;;  %v130_v7 = vld [vmem:[#allocation6 + $0x148] sm:$0xff]  ;;  %v3258_v9 = vpack.c.bf16 %v360_v4, %v357_v3  ;;  %v363_v12 = vld [vmem:[#allocation8 + $0x38] sm:$0xff]  ;;  %v366_v13 = vld [vmem:[#allocation8 + $0x50] sm:$0xff]  ;;  %v3260_v17 = vpack.c.bf16 %v359_v11, %v356_v10 }
  0x5c   :  { %2422 = vmatpush3.bf16.msra.mxu1 %v2419_v41  ;;  %v2435_v14 = vpack.c.bf16 %v130_v7, %v127_v6  ;;  %v133_v15 = vld [vmem:[#allocation6 + $0x160] sm:$0xff]  ;;  %v136_v16 = vld [vmem:[#allocation6 + $0x178] sm:$0xff]  ;;  %v3263_v18 = vpack.c.bf16 %v366_v13, %v363_v12  ;;  %v362_v19 = vld [vmem:[#allocation8 + $0x30] sm:$0xff] }
  0x5d   :  { %2424 = vmatprep.subr.bf16.mxu1 %v2423_v50  ;;  %v365_v20 = vld [vmem:[#allocation8 + $0x48] sm:$0xff]  ;;  %v372_v22 = vld [vmem:[#allocation8 + $0x80] sm:$0xff]  ;;  %v2439_v23 = vpack.c.bf16 %v136_v16, %v133_v15  ;;  %v371_v28 = vld [vmem:[#allocation8 + $0x78] sm:$0xff] }
  0x5e   :  { %2398 = vmatpush1.bf16.msra.mxu0 %v2397_v42  ;;  %v369_v21 = vld [vmem:[#allocation8 + $0x68] sm:$0xff]  ;;  %v3268_v25 = vpack.c.bf16 %v365_v20, %v362_v19  ;;  %v368_v27 = vld [vmem:[#allocation8 + $0x60] sm:$0xff]  ;;  %v375_v29 = vld [vmem:[#allocation8 + $0x98] sm:$0xff] }
  0x5f   :  { %2400 = vmatprep.subr.bf16.mxu0 %v2399_v45  ;;  %v82_v24 = vld [vmem:[#allocation3 + $0x8] sm:$0xff]  ;;  %v3271_v26 = vpack.c.bf16 %v372_v22, %v369_v21  ;;  %v378_v30 = vld [vmem:[#allocation8 + $0xb0] sm:$0xff]  ;;  %v3275_v34 = vpack.c.bf16 %v371_v28, %v368_v27  ;;  %v384_v39 = vld [vmem:[#allocation8 + $0xe0] sm:$0xff] }
  0x60   :  { %2426 = vmatpush3.bf16.msra.mxu1 %v2423_v50  ;;  %v358_v31 = vld [vmem:[#allocation8 + $0x10] sm:$0xff]  ;;  %v361_v32 = vld [vmem:[#allocation8 + $0x28] sm:$0xff]  ;;  %v3278_v35 = vpack.c.bf16 %v378_v30, %v375_v29  ;;  %v364_v42 = vld [vmem:[#allocation8 + $0x40] sm:$0xff] }
  0x61   :  { %2428 = vmatprep.subr.bf16.mxu1 %v2427_v59  ;;  %v83_v33 = vld [vmem:[#allocation3 + $0x10] sm:$0xff]  ;;  %v377_v37 = vld [vmem:[#allocation8 + $0xa8] sm:$0xff]  ;;  %v3281_v41 = vpack.c.bf16 %v361_v32, %v358_v31  ;;  %v367_v43 = vld [vmem:[#allocation8 + $0x58] sm:$0xff] }
  0x62   :  { %2402 = vmatpush1.bf16.msra.mxu0 %v2401_v53  ;;  %v381_v38 = vld [vmem:[#allocation8 + $0xc8] sm:$0xff]  ;;  %v84_v44 = vld [vmem:[#allocation3 + $0x18] sm:$0xff]  ;;  %v380_v47 = vld [vmem:[#allocation8 + $0xc0] sm:$0xff]  ;;  %v3291_v51 = vpack.c.bf16 %v367_v43, %v364_v42 }
  0x63   :  { %2404 = vmatprep.subr.bf16.mxu0 %v2403_v54  ;;  %v3288_v46 = vpack.c.bf16 %v384_v39, %v381_v38  ;;  %v383_v48 = vld [vmem:[#allocation8 + $0xd8] sm:$0xff]  ;;  %v390_v50 = vld [vmem:[#allocation8 + $0x110] sm:$0xff]  ;;  %v373_v53 = vld [vmem:[#allocation8 + $0x88] sm:$0xff] }
  0x64   :  { %2430 = vmatpush3.bf16.msra.mxu1 %v2427_v59  ;;  %v387_v49 = vld [vmem:[#allocation8 + $0xf8] sm:$0xff]  ;;  %v370_v52 = vld [vmem:[#allocation8 + $0x70] sm:$0xff]  ;;  %v85_v54 = vld [vmem:[#allocation3 + $0x20] sm:$0xff]  ;;  %v3296_v55 = vpack.c.bf16 %v383_v48, %v380_v47 }
  0x65   :  { %2432 = vmatprep.subr.bf16.mxu1 %v2431_v5  ;;  %v3299_v56 = vpack.c.bf16 %v390_v50, %v387_v49  ;;  %v386_v57 = vld [vmem:[#allocation8 + $0xf0] sm:$0xff]  ;;  %v389_v58 = vld [vmem:[#allocation8 + $0x108] sm:$0xff]  ;;  %v396_v60 = vld [vmem:[#allocation8 + $0x140] sm:$0xff]  ;;  %v3302_v61 = vpack.c.bf16 %v373_v53, %v370_v52 }
  0x66   :  { %2406 = vmatpush1.bf16.msra.mxu0 %v2405_v62  ;;  %v393_v59 = vld [vmem:[#allocation8 + $0x128] sm:$0xff]  ;;  %v376_v62 = vld [vmem:[#allocation8 + $0xa0] sm:$0xff]  ;;  %v3307_v2 = vpack.c.bf16 %v389_v58, %v386_v57  ;;  %v87_v3 = vld [vmem:[#allocation3 + $0x30] sm:$0xff] }
  0x67   :  { %2408 = vmatprep.subr.bf16.mxu0 %v2407_v63  ;;  %v379_v63 = vld [vmem:[#allocation8 + $0xb8] sm:$0xff]  ;;  %v86_v1 = vld [vmem:[#allocation3 + $0x28] sm:$0xff]  ;;  %v3310_v4 = vpack.c.bf16 %v396_v60, %v393_v59  ;;  %v382_v11 = vld [vmem:[#allocation8 + $0xd0] sm:$0xff] }
  0x68   :  { %2434 = vmatpush3.bf16.msra.mxu1 %v2431_v5  ;;  %v392_v5 = vld [vmem:[#allocation8 + $0x120] sm:$0xff]  ;;  %v395_v6 = vld [vmem:[#allocation8 + $0x138] sm:$0xff]  ;;  %v3313_v10 = vpack.c.bf16 %v379_v63, %v376_v62  ;;  %v385_v12 = vld [vmem:[#allocation8 + $0xe8] sm:$0xff] }
  0x69   :  { %2436 = vmatprep.subr.bf16.mxu1 %v2435_v14  ;;  %v399_v7 = vld [vmem:[#allocation8 + $0x158] sm:$0xff]  ;;  %v3318_v13 = vpack.c.bf16 %v395_v6, %v392_v5  ;;  %v398_v16 = vld [vmem:[#allocation8 + $0x150] sm:$0xff]  ;;  %v401_v19 = vld [vmem:[#allocation8 + $0x168] sm:$0xff]  ;;  %v3324_v20 = vpack.c.bf16 %v385_v12, %v382_v11 }
  0x6a   :  { %2410 = vmatpush1.bf16.msra.mxu0 %v2409_v8  ;;  %v402_v8 = vld [vmem:[#allocation8 + $0x170] sm:$0xff]  ;;  %v388_v21 = vld [vmem:[#allocation8 + $0x100] sm:$0xff]  ;;  %v391_v22 = vld [vmem:[#allocation8 + $0x118] sm:$0xff] }
  0x6b   :  { %2444 = vmatprep.subr.bf16.mxu0 %v3258_v9  ;;  %v3321_v15 = vpack.c.bf16 %v402_v8, %v399_v7  ;;  %v394_v27 = vld [vmem:[#allocation8 + $0x130] sm:$0xff]  ;;  %v397_v28 = vld [vmem:[#allocation8 + $0x148] sm:$0xff]  ;;  %v400_v30 = vld [vmem:[#allocation8 + $0x160] sm:$0xff] }
  0x6c   :  { %2438 = vmatpush3.bf16.msra.mxu1 %v2435_v14  ;;  %v88_v14 = vld [vmem:[#allocation3 + $0x38] sm:$0xff]  ;;  %v3342_v29 = vpack.c.bf16 %v397_v28, %v394_v27 }
  0x6d   :  { %202 = vmatmul.mubr.f32.vlgmr.msra.gmra.mrb[0].mxu0 %v3255_v36  ;;  %2440 = vmatprep.subr.bf16.mxu1 %v2439_v23  ;;  %v374_v36 = vld [vmem:[#allocation8 + $0x90] sm:$0xff]  ;;  %v403_v31 = vld [vmem:[#allocation8 + $0x178] sm:$0xff] }
  0x6e   :  { %2446 = vmatpush1.bf16.msra.mxu0 %v3260_v17  ;;  %207 = vmatprep.mubr.f32.mxu0 %v3153_v0  ;;  %v3285_v45 = vpack.c.bf16 %v377_v37, %v374_v36  ;;  %v3350_v32 = vpack.c.bf16 %v403_v31, %v400_v30 }
  0x6f   :  { %2448 = vmatprep.subr.bf16.mxu0 %v3263_v18 }
  0x70   :  { %2442 = vmatpush3.bf16.msra.mxu1 %v2439_v23  ;;  %v3331_v23 = vpack.c.bf16 %v401_v19, %v398_v16 }
  0x71   :  { %208 = vmatmul.mubr.f32.gmra.mrb[2].mxu0 %v82_v24  ;;  %2475 = vmatprep.subr.bf16.mxu1 %v3154_v40 }
  0x72   :  { %2450 = vmatpush1.bf16.msra.mxu0 %v3268_v25  ;;  %213 = vmatprep.mubr.f32.mxu0 %v3153_v0 }
  0x73   :  { %2452 = vmatprep.subr.bf16.mxu0 %v3271_v26  ;;  %2053 = vmatmul.mubr.f32.vlgmr.msra.gmra.mrb[0].mxu1 %v82_v24  ;;  %v3335_v24 = vpack.c.bf16 %v391_v22, %v388_v21 }
  0x74   :  { %2477 = vmatpush3.bf16.msra.mxu1 %v3281_v41  ;;  %2055 = vmatprep.mubr.f32.mxu1 %v83_v33 }
  0x75   :  { %214 = vmatmul.mubr.f32.gmra.mrb[4].mxu0 %v83_v33  ;;  %2478 = vmatprep.subr.bf16.mxu1 %v3154_v40 }
  0x76   :  { %2454 = vmatpush1.bf16.msra.mxu0 %v3275_v34  ;;  %219 = vmatprep.mubr.f32.mxu0 %v3153_v0 }
  0x77   :  { %2456 = vmatprep.subr.bf16.mxu0 %v3278_v35  ;;  %2056 = vmatmul.mubr.f32.gmra.mrb[2].mxu1 %v84_v44 }
  0x78   :  { %2480 = vmatpush3.bf16.msra.mxu1 %v3291_v51  ;;  %2058 = vmatprep.mubr.f32.mxu1 %v85_v54 }
  0x79   :  { %220 = vmatmul.mubr.f32.gmra.mrb[6].mxu0 %v84_v44  ;;  %2481 = vmatprep.subr.bf16.mxu1 %v3154_v40 }
  0x7a   :  { %2458 = vmatpush1.bf16.msra.mxu0 %v3285_v45  ;;  %225 = vmatprep.mubr.f32.mxu0 %v3153_v0 }
  0x7b   :  { %2460 = vmatprep.subr.bf16.mxu0 %v3288_v46  ;;  %2059 = vmatmul.mubr.f32.gmra.mrb[4].mxu1 %v86_v1 }
  0x7c   :  { %2483 = vmatpush3.bf16.msra.mxu1 %v3302_v61  ;;  %2061 = vmatprep.mubr.f32.mxu1 %v87_v3 }
  0x7d   :  { %226 = vmatmul.mubr.f32.gmra.mrb[8].mxu0 %v85_v54  ;;  %2484 = vmatprep.subr.bf16.mxu1 %v3154_v40 }
  0x7e   :  { %2462 = vmatpush1.bf16.msra.mxu0 %v3296_v55  ;;  %231 = vmatprep.mubr.f32.mxu0 %v3153_v0 }
  0x7f   :  { %2464 = vmatprep.subr.bf16.mxu0 %v3299_v56  ;;  %2062 = vmatmul.mubr.f32.gmra.mrb[6].mxu1 %v88_v14 }
  0x80   :  { %2486 = vmatpush3.bf16.msra.mxu1 %v3313_v10  ;;  %2096 = vmatprep.mubr.msk.f32.mxu1 %vm3155_vm0, %v3153_v0 }
  0x81   :  { %232 = vmatmul.mubr.f32.gmra.mrb[10].mxu0 %v86_v1  ;;  %2487 = vmatprep.subr.bf16.mxu1 %v3154_v40 }
  0x82   :  { %2466 = vmatpush1.bf16.msra.mxu0 %v3307_v2  ;;  %237 = vmatprep.mubr.f32.mxu0 %v3153_v0 }
  0x83   :  { %2468 = vmatprep.subr.bf16.mxu0 %v3310_v4 }
  0x84   :  { %2489 = vmatpush3.bf16.msra.mxu1 %v3324_v20 }
  0x85   :  { %238 = vmatmul.mubr.f32.gmra.mrb[12].mxu0 %v87_v3  ;;  %2490 = vmatprep.subr.bf16.mxu1 %v3154_v40 }
  0x86   :  { %2470 = vmatpush1.bf16.msra.mxu0 %v3318_v13  ;;  %243 = vmatprep.mubr.f32.mxu0 %v3153_v0 }
  0x87   :  { %2472 = vmatprep.subr.bf16.mxu0 %v3321_v15 }
  0x88   :  { %2492 = vmatpush3.bf16.msra.mxu1 %v3335_v24 }
  0x89   :  { %244 = vmatmul.mubr.f32.gmra.mrb[14].mxu0 %v88_v14  ;;  %2493 = vmatprep.subr.bf16.mxu1 %v3154_v40 }
  0x8a   :  { %2474 = vmatpush1.bf16.msra.mxu0 %v3331_v23  ;;  %468 = vmatprep.mubr.f32.mxu0 %v3153_v0 }
  0x8b   :  { %2500 = vmatprep.subr.bf16.mxu0 %v3258_v9 }
  0x8c   :  { %2495 = vmatpush3.bf16.msra.mxu1 %v3342_v29 }
  0x8d   :  { %469 = vmatmul.mubr.f32.vlgmr.msra.gmra.mrb[0].mxu0 %v3153_v0  ;;  %2496 = vmatprep.subr.bf16.mxu1 %v3154_v40 }
  0x8e   :  { %2502 = vmatpush1.bf16.msra.mxu0 %v3260_v17  ;;  %630 = vmatprep.mubr.f32.mxu0 %v3153_v0 }
  0x8f   :  { %2504 = vmatprep.subr.bf16.mxu0 %v3263_v18 }
  0x90   :  { %2498 = vmatpush3.bf16.msra.mxu1 %v3350_v32 }
  0x91   :  { %2531 = vmatprep.subr.bf16.mxu1 %v3154_v40 }
  0x92   :  { %2506 = vmatpush1.bf16.msra.mxu0 %v3268_v25 }
  0x93   :  { %2508 = vmatprep.subr.bf16.mxu0 %v3271_v26  ;;  %2097 = vmatmul.mubr.f32.vlgmr.msra.gmra.mrb[8].mxu1 %v3153_v0 }
  0x94   :  { %2533 = vmatpush3.bf16.msra.mxu1 %v3281_v41  ;;  %2131 = vmatprep.mubr.msk.f32.mxu1 %vm3155_vm0, %v3153_v0 }
  0x95   :  { %2534 = vmatprep.subr.bf16.mxu1 %v3154_v40 }
  0x96   :  { %2510 = vmatpush1.bf16.msra.mxu0 %v3275_v34 }
  0x97   :  { %2512 = vmatprep.subr.bf16.mxu0 %v3278_v35 }
  0x98   :  { %2536 = vmatpush3.bf16.msra.mxu1 %v3291_v51 }
  0x99   :  { %2537 = vmatprep.subr.bf16.mxu1 %v3154_v40 }
  0x9a   :  { %2514 = vmatpush1.bf16.msra.mxu0 %v3285_v45 }
  0x9b   :  { %2516 = vmatprep.subr.bf16.mxu0 %v3288_v46 }
  0x9c   :  { %2539 = vmatpush3.bf16.msra.mxu1 %v3302_v61 }
  0x9d   :  { %2540 = vmatprep.subr.bf16.mxu1 %v3154_v40 }
  0x9e   :  { %2518 = vmatpush1.bf16.msra.mxu0 %v3296_v55 }
  0x9f   :  { %2520 = vmatprep.subr.bf16.mxu0 %v3299_v56 }
  0xa0   :  { %2542 = vmatpush3.bf16.msra.mxu1 %v3313_v10 }
  0xa1   :  { %2543 = vmatprep.subr.bf16.mxu1 %v3154_v40 }
  0xa2   :  { %2522 = vmatpush1.bf16.msra.mxu0 %v3307_v2 }
  0xa3   :  { %2524 = vmatprep.subr.bf16.mxu0 %v3310_v4 }
  0xa4   :  { %2545 = vmatpush3.bf16.msra.mxu1 %v3324_v20 }
  0xa5   :  { %2546 = vmatprep.subr.bf16.mxu1 %v3154_v40 }
  0xa6   :  { %2526 = vmatpush1.bf16.msra.mxu0 %v3318_v13 }
  0xa7   :  { %2528 = vmatprep.subr.bf16.mxu0 %v3321_v15 }
  0xa8   :  { %2548 = vmatpush3.bf16.msra.mxu1 %v3335_v24 }
  0xa9   :  { %2549 = vmatprep.subr.bf16.mxu1 %v3154_v40 }
  0xaa   :  { %2530 = vmatpush1.bf16.msra.mxu0 %v3331_v23 }
  0xab   :  { %2556 = vmatprep.subr.bf16.mxu0 %v3258_v9 }
  0xac   :  { %2551 = vmatpush3.bf16.msra.mxu1 %v3342_v29 }
  0xad   :  { %2552 = vmatprep.subr.bf16.mxu1 %v3154_v40 }
  0xb0   :  { %2554 = vmatpush3.bf16.msra.mxu1 %v3350_v32 }
  0xb1   :  { %2587 = vmatprep.subr.bf16.mxu1 %v3154_v40 }
 0x146   :  { %v3388_v33 = vpop.f32.mrb[0].mxu1 }
 0x147   :  { %v316_v36 = vpop.f32.mrb[1].mxu1 }
 0x14a   :  { %v3390_v37 = vpop.f32.mrb[2].mxu1 }
 0x14b   :  { %v3392_v38 = vpop.f32.mrb[3].mxu1 }
 0x14e   :  { %v3394_v39 = vpop.f32.mrb[4].mxu1 }
 0x14f   :  { %v3396_v42 = vpop.f32.mrb[5].mxu1 }
 0x152   :  { %v3398_v43 = vpop.f32.mrb[6].mxu1 }
 0x153   :  { %v3400_v44 = vpop.f32.mrb[7].mxu1 }
 0x160   :  { %v470_v47 = vpop.f32.mrb[0].mxu0 }
 0x161   :  { %v472_v48 = vpop.f32.mrb[1].mxu0  ;;  %v1826_v50 = vmul.f32 -1.442695, %v470_v47 }
 0x162   :  { %v1827_v49 = vmul.f32 -1.442695, %v472_v48 }
 0x164   :  { %2943 = vpow2.f32 %v1827_v49 }
 0x165   :  { %2945 = vpow2.f32 %v1826_v50 }
 0x166   :  { %v541_v52 = vpop.f32.mrb[8].mxu1 }
 0x167   :  { %v2098_v53 = vpop.f32.mrb[9].mxu1 }
 0x16e   :  { %v2944_v54 = vpop.eup %2943 }
 0x16f   :  { %v554_v57 = vadd.f32 1.0, %v2944_v54  ;;  %v2946_v58 = vpop.eup %2945 }
 0x170   :  { %v553_v59 = vadd.f32 1.0, %v2946_v58 }
 0x171   :  { %2947 = vrcp.f32 %v554_v57 }
 0x172   :  { %2949 = vrcp.f32 %v553_v59 }
 0x17b   :  { %v2948_v60 = vpop.eup %2947 }
 0x17c   :  { %v559_v62 = vmul.f32 %v2948_v60, %v541_v52  ;;  %v2950_v1 = vpop.eup %2949 }
 0x17d   :  { %v563_v3 = vsub.f32 1.0, %v2950_v1  ;;  %v562_v6 = vmul.f32 0.0, %v2950_v1 }
 0x17e   :  { %v560_v63 = vadd.f32 %v559_v62, %v316_v36 }
 0x180   :  { %2951 = vtanh.f32 %v560_v63 }
 0x18a   :  { %v2952_v5 = vpop.eup %2951 }
 0x18b   :  { %v564_v7 = vmul.f32 %v2952_v5, %v563_v3 }
 0x18d   :  { %v565_v8 = vadd.f32 %v564_v7, %v562_v6 }
 0x18f   :  { %631 = vmatmul.mubr.f32.vlgmr.msra.gmra.mrb[2].mxu0 %v565_v8  ;;  %2132 = vmatmul.mubr.f32.vlgmr.msra.gmra.mrb[10].mxu1 %v565_v8 }
 0x190   :  { %2558 = vmatpush1.bf16.msra.mxu0 %v3260_v17  ;;  %2589 = vmatpush3.bf16.msra.mxu1 %v3281_v41 }
 0x191   :  { %2560 = vmatprep.subr.bf16.mxu0 %v3263_v18  ;;  %2590 = vmatprep.subr.bf16.mxu1 %v3154_v40 }
 0x192   :  { %792 = vmatprep.mubr.f32.mxu0 %v3153_v0  ;;  %2166 = vmatprep.mubr.msk.f32.mxu1 %vm3155_vm0, %v3153_v0 }
 0x194   :  { %2562 = vmatpush1.bf16.msra.mxu0 %v3268_v25  ;;  %2592 = vmatpush3.bf16.msra.mxu1 %v3291_v51 }
 0x195   :  { %2564 = vmatprep.subr.bf16.mxu0 %v3271_v26  ;;  %2593 = vmatprep.subr.bf16.mxu1 %v3154_v40 }
 0x198   :  { %2566 = vmatpush1.bf16.msra.mxu0 %v3275_v34  ;;  %2595 = vmatpush3.bf16.msra.mxu1 %v3302_v61 }
 0x199   :  { %2568 = vmatprep.subr.bf16.mxu0 %v3278_v35  ;;  %2596 = vmatprep.subr.bf16.mxu1 %v3154_v40 }
 0x19c   :  { %2570 = vmatpush1.bf16.msra.mxu0 %v3285_v45  ;;  %2598 = vmatpush3.bf16.msra.mxu1 %v3313_v10 }
 0x19d   :  { %2572 = vmatprep.subr.bf16.mxu0 %v3288_v46  ;;  %2599 = vmatprep.subr.bf16.mxu1 %v3154_v40 }
 0x1a0   :  { %2574 = vmatpush1.bf16.msra.mxu0 %v3296_v55  ;;  %2601 = vmatpush3.bf16.msra.mxu1 %v3324_v20 }
 0x1a1   :  { %2576 = vmatprep.subr.bf16.mxu0 %v3299_v56  ;;  %2602 = vmatprep.subr.bf16.mxu1 %v3154_v40 }
 0x1a4   :  { %2578 = vmatpush1.bf16.msra.mxu0 %v3307_v2  ;;  %2604 = vmatpush3.bf16.msra.mxu1 %v3335_v24 }
 0x1a5   :  { %2580 = vmatprep.subr.bf16.mxu0 %v3310_v4  ;;  %2605 = vmatprep.subr.bf16.mxu1 %v3154_v40 }
 0x1a8   :  { %2582 = vmatpush1.bf16.msra.mxu0 %v3318_v13  ;;  %2607 = vmatpush3.bf16.msra.mxu1 %v3342_v29 }
 0x1a9   :  { %2584 = vmatprep.subr.bf16.mxu0 %v3321_v15  ;;  %2608 = vmatprep.subr.bf16.mxu1 %v3154_v40 }
 0x1ac   :  { %2586 = vmatpush1.bf16.msra.mxu0 %v3331_v23  ;;  %2610 = vmatpush3.bf16.msra.mxu1 %v3350_v32 }
 0x1ad   :  { %2612 = vmatprep.subr.bf16.mxu0 %v3258_v9  ;;  %2643 = vmatprep.subr.bf16.mxu1 %v3154_v40 }
 0x262   :  { %v632_v11 = vpop.f32.mrb[2].mxu0  ;;  %v703_v12 = vpop.f32.mrb[10].mxu1 }
 0x263   :  { %v634_v14 = vpop.f32.mrb[3].mxu0  ;;  %v2133_v16 = vpop.f32.mrb[11].mxu1  ;;  %v1828_v21 = vmul.f32 -1.442695, %v632_v11 }
 0x264   :  { %v1829_v19 = vmul.f32 -1.442695, %v634_v14 }
 0x266   :  { %2953 = vpow2.f32 %v1829_v19 }
 0x267   :  { %2955 = vpow2.f32 %v1828_v21 }
 0x270   :  { %v2954_v22 = vpop.eup %2953 }
 0x271   :  { %v716_v27 = vadd.f32 1.0, %v2954_v22  ;;  %v2956_v28 = vpop.eup %2955 }
 0x272   :  { %v715_v30 = vadd.f32 1.0, %v2956_v28 }
 0x273   :  { %2957 = vrcp.f32 %v716_v27 }
 0x274   :  { %2959 = vrcp.f32 %v715_v30 }
 0x27d   :  { %v2958_v31 = vpop.eup %2957 }
 0x27e   :  { %v721_v36 = vmul.f32 %v2958_v31, %v703_v12  ;;  %v2960_v48 = vpop.eup %2959 }
 0x27f   :  { %v725_v49 = vsub.f32 1.0, %v2960_v48  ;;  %v724_v52 = vmul.f32 %v2960_v48, %v565_v8 }
 0x280   :  { %v722_v47 = vadd.f32 %v3388_v33, %v721_v36 }
 0x282   :  { %2961 = vtanh.f32 %v722_v47 }
 0x28c   :  { %v2962_v50 = vpop.eup %2961 }
 0x28d   :  { %v726_v53 = vmul.f32 %v2962_v50, %v725_v49 }
 0x28f   :  { %v727_v54 = vadd.f32 %v726_v53, %v724_v52 }
 0x291   :  { %793 = vmatmul.mubr.f32.vlgmr.msra.gmra.mrb[4].mxu0 %v727_v54  ;;  %2167 = vmatmul.mubr.f32.vlgmr.msra.gmra.mrb[12].mxu1 %v727_v54 }
 0x292   :  { %2614 = vmatpush1.bf16.msra.mxu0 %v3260_v17  ;;  %2645 = vmatpush3.bf16.msra.mxu1 %v3281_v41 }
 0x293   :  { %2616 = vmatprep.subr.bf16.mxu0 %v3263_v18  ;;  %2646 = vmatprep.subr.bf16.mxu1 %v3154_v40 }
 0x294   :  { %954 = vmatprep.mubr.f32.mxu0 %v3153_v0  ;;  %2201 = vmatprep.mubr.msk.f32.mxu1 %vm3155_vm0, %v3153_v0 }
 0x296   :  { %2618 = vmatpush1.bf16.msra.mxu0 %v3268_v25  ;;  %2648 = vmatpush3.bf16.msra.mxu1 %v3291_v51 }
 0x297   :  { %2620 = vmatprep.subr.bf16.mxu0 %v3271_v26  ;;  %2649 = vmatprep.subr.bf16.mxu1 %v3154_v40 }
 0x29a   :  { %2622 = vmatpush1.bf16.msra.mxu0 %v3275_v34  ;;  %2651 = vmatpush3.bf16.msra.mxu1 %v3302_v61 }
 0x29b   :  { %2624 = vmatprep.subr.bf16.mxu0 %v3278_v35  ;;  %2652 = vmatprep.subr.bf16.mxu1 %v3154_v40 }
 0x29e   :  { %2626 = vmatpush1.bf16.msra.mxu0 %v3285_v45  ;;  %2654 = vmatpush3.bf16.msra.mxu1 %v3313_v10 }
 0x29f   :  { %2628 = vmatprep.subr.bf16.mxu0 %v3288_v46  ;;  %2655 = vmatprep.subr.bf16.mxu1 %v3154_v40 }
 0x2a2   :  { %2630 = vmatpush1.bf16.msra.mxu0 %v3296_v55  ;;  %2657 = vmatpush3.bf16.msra.mxu1 %v3324_v20 }
 0x2a3   :  { %2632 = vmatprep.subr.bf16.mxu0 %v3299_v56  ;;  %2658 = vmatprep.subr.bf16.mxu1 %v3154_v40 }
 0x2a6   :  { %2634 = vmatpush1.bf16.msra.mxu0 %v3307_v2  ;;  %2660 = vmatpush3.bf16.msra.mxu1 %v3335_v24 }
 0x2a7   :  { %2636 = vmatprep.subr.bf16.mxu0 %v3310_v4  ;;  %2661 = vmatprep.subr.bf16.mxu1 %v3154_v40 }
 0x2aa   :  { %2638 = vmatpush1.bf16.msra.mxu0 %v3318_v13  ;;  %2663 = vmatpush3.bf16.msra.mxu1 %v3342_v29 }
 0x2ab   :  { %2640 = vmatprep.subr.bf16.mxu0 %v3321_v15  ;;  %2664 = vmatprep.subr.bf16.mxu1 %v3154_v40 }
 0x2ae   :  { %2642 = vmatpush1.bf16.msra.mxu0 %v3331_v23  ;;  %2666 = vmatpush3.bf16.msra.mxu1 %v3350_v32 }
 0x2af   :  { %2668 = vmatprep.subr.bf16.mxu0 %v3258_v9  ;;  %2699 = vmatprep.subr.bf16.mxu1 %v3154_v40 }
 0x364   :  { %v794_v33 = vpop.f32.mrb[4].mxu0  ;;  %v865_v57 = vpop.f32.mrb[12].mxu1 }
 0x365   :  { %v796_v58 = vpop.f32.mrb[5].mxu0  ;;  %v2168_v59 = vpop.f32.mrb[13].mxu1  ;;  %v1830_v62 = vmul.f32 -1.442695, %v794_v33 }
 0x366   :  { %v1831_v60 = vmul.f32 -1.442695, %v796_v58 }
 0x368   :  { %2963 = vpow2.f32 %v1831_v60 }
 0x369   :  { %2965 = vpow2.f32 %v1830_v62 }
 0x372   :  { %v2964_v63 = vpop.eup %2963 }
 0x373   :  { %v878_v1 = vadd.f32 1.0, %v2964_v63  ;;  %v2966_v3 = vpop.eup %2965 }
 0x374   :  { %v877_v5 = vadd.f32 1.0, %v2966_v3 }
 0x375   :  { %2967 = vrcp.f32 %v878_v1 }
 0x376   :  { %2969 = vrcp.f32 %v877_v5 }
 0x37f   :  { %v2968_v6 = vpop.eup %2967 }
 0x380   :  { %v883_v7 = vmul.f32 %v2968_v6, %v865_v57  ;;  %v2970_v11 = vpop.eup %2969 }
 0x381   :  { %v887_v12 = vsub.f32 1.0, %v2970_v11  ;;  %v886_v16 = vmul.f32 %v2970_v11, %v727_v54 }
 0x382   :  { %v884_v8 = vadd.f32 %v883_v7, %v3392_v38 }
 0x384   :  { %2971 = vtanh.f32 %v884_v8 }
 0x38e   :  { %v2972_v14 = vpop.eup %2971 }
 0x38f   :  { %v888_v19 = vmul.f32 %v2972_v14, %v887_v12 }
 0x391   :  { %v889_v21 = vadd.f32 %v888_v19, %v886_v16 }
 0x393   :  { %955 = vmatmul.mubr.f32.vlgmr.msra.gmra.mrb[6].mxu0 %v889_v21  ;;  %2202 = vmatmul.mubr.f32.vlgmr.msra.gmra.mrb[14].mxu1 %v889_v21 }
 0x394   :  { %2670 = vmatpush1.bf16.msra.mxu0 %v3260_v17  ;;  %2701 = vmatpush3.bf16.msra.mxu1 %v3281_v41 }
 0x395   :  { %2672 = vmatprep.subr.bf16.mxu0 %v3263_v18  ;;  %2702 = vmatprep.subr.bf16.mxu1 %v3154_v40 }
 0x396   :  { %1116 = vmatprep.mubr.f32.mxu0 %v3153_v0  ;;  %2236 = vmatprep.mubr.msk.f32.mxu1 %vm3155_vm0, %v3153_v0 }
 0x398   :  { %2674 = vmatpush1.bf16.msra.mxu0 %v3268_v25  ;;  %2704 = vmatpush3.bf16.msra.mxu1 %v3291_v51 }
 0x399   :  { %2676 = vmatprep.subr.bf16.mxu0 %v3271_v26  ;;  %2705 = vmatprep.subr.bf16.mxu1 %v3154_v40 }
 0x39c   :  { %2678 = vmatpush1.bf16.msra.mxu0 %v3275_v34  ;;  %2707 = vmatpush3.bf16.msra.mxu1 %v3302_v61 }
 0x39d   :  { %2680 = vmatprep.subr.bf16.mxu0 %v3278_v35  ;;  %2708 = vmatprep.subr.bf16.mxu1 %v3154_v40 }
 0x3a0   :  { %2682 = vmatpush1.bf16.msra.mxu0 %v3285_v45  ;;  %2710 = vmatpush3.bf16.msra.mxu1 %v3313_v10 }
 0x3a1   :  { %2684 = vmatprep.subr.bf16.mxu0 %v3288_v46  ;;  %2711 = vmatprep.subr.bf16.mxu1 %v3154_v40 }
 0x3a4   :  { %2686 = vmatpush1.bf16.msra.mxu0 %v3296_v55  ;;  %2713 = vmatpush3.bf16.msra.mxu1 %v3324_v20 }
 0x3a5   :  { %2688 = vmatprep.subr.bf16.mxu0 %v3299_v56  ;;  %2714 = vmatprep.subr.bf16.mxu1 %v3154_v40 }
 0x3a8   :  { %2690 = vmatpush1.bf16.msra.mxu0 %v3307_v2  ;;  %2716 = vmatpush3.bf16.msra.mxu1 %v3335_v24 }
 0x3a9   :  { %2692 = vmatprep.subr.bf16.mxu0 %v3310_v4  ;;  %2717 = vmatprep.subr.bf16.mxu1 %v3154_v40 }
 0x3ac   :  { %2694 = vmatpush1.bf16.msra.mxu0 %v3318_v13  ;;  %2719 = vmatpush3.bf16.msra.mxu1 %v3342_v29 }
 0x3ad   :  { %2696 = vmatprep.subr.bf16.mxu0 %v3321_v15  ;;  %2720 = vmatprep.subr.bf16.mxu1 %v3154_v40 }
 0x3b0   :  { %2698 = vmatpush1.bf16.msra.mxu0 %v3331_v23  ;;  %2722 = vmatpush3.bf16.msra.mxu1 %v3350_v32 }
 0x3b1   :  { %2724 = vmatprep.subr.bf16.mxu0 %v3258_v9  ;;  %2755 = vmatprep.subr.bf16.mxu1 %v3154_v40 }
 0x466   :  { %v956_v38 = vpop.f32.mrb[6].mxu0  ;;  %v1027_v22 = vpop.f32.mrb[14].mxu1 }
 0x467   :  { %v958_v27 = vpop.f32.mrb[7].mxu0  ;;  %v2203_v28 = vpop.f32.mrb[15].mxu1  ;;  %v1832_v31 = vmul.f32 -1.442695, %v956_v38 }
 0x468   :  { %v1833_v30 = vmul.f32 -1.442695, %v958_v27 }
 0x46a   :  { %2973 = vpow2.f32 %v1833_v30 }
 0x46b   :  { %2975 = vpow2.f32 %v1832_v31 }
 0x474   :  { %v2974_v36 = vpop.eup %2973 }
 0x475   :  { %v1040_v47 = vadd.f32 1.0, %v2974_v36  ;;  %v2976_v48 = vpop.eup %2975 }
 0x476   :  { %v1039_v49 = vadd.f32 1.0, %v2976_v48 }
 0x477   :  { %2977 = vrcp.f32 %v1040_v47 }
 0x478   :  { %2979 = vrcp.f32 %v1039_v49 }
 0x481   :  { %v2978_v50 = vpop.eup %2977 }
 0x482   :  { %v1045_v52 = vmul.f32 %v2978_v50, %v1027_v22  ;;  %v2980_v54 = vpop.eup %2979 }
 0x483   :  { %v1049_v33 = vsub.f32 1.0, %v2980_v54  ;;  %v1048_v58 = vmul.f32 %v2980_v54, %v889_v21 }
 0x484   :  { %v1046_v53 = vadd.f32 %v3390_v37, %v1045_v52 }
 0x486   :  { %2981 = vtanh.f32 %v1046_v53 }
 0x490   :  { %v2982_v57 = vpop.eup %2981 }
 0x491   :  { %v1050_v59 = vmul.f32 %v2982_v57, %v1049_v33 }
 0x493   :  { %v1051_v60 = vadd.f32 %v1050_v59, %v1048_v58 }
 0x495   :  { %1117 = vmatmul.mubr.f32.vlgmr.msra.gmra.mrb[8].mxu0 %v1051_v60  ;;  %2237 = vmatmul.mubr.f32.vlgmr.msra.gmra.mrb[16].mxu1 %v1051_v60 }
 0x496   :  { %2726 = vmatpush1.bf16.msra.mxu0 %v3260_v17  ;;  %2757 = vmatpush3.bf16.msra.mxu1 %v3281_v41 }
 0x497   :  { %2728 = vmatprep.subr.bf16.mxu0 %v3263_v18  ;;  %2758 = vmatprep.subr.bf16.mxu1 %v3154_v40 }
 0x498   :  { %1278 = vmatprep.mubr.f32.mxu0 %v3153_v0  ;;  %2271 = vmatprep.mubr.msk.f32.mxu1 %vm3155_vm0, %v3153_v0 }
 0x49a   :  { %2730 = vmatpush1.bf16.msra.mxu0 %v3268_v25  ;;  %2760 = vmatpush3.bf16.msra.mxu1 %v3291_v51 }
 0x49b   :  { %2732 = vmatprep.subr.bf16.mxu0 %v3271_v26  ;;  %2761 = vmatprep.subr.bf16.mxu1 %v3154_v40 }
 0x49e   :  { %2734 = vmatpush1.bf16.msra.mxu0 %v3275_v34  ;;  %2763 = vmatpush3.bf16.msra.mxu1 %v3302_v61 }
 0x49f   :  { %2736 = vmatprep.subr.bf16.mxu0 %v3278_v35  ;;  %2764 = vmatprep.subr.bf16.mxu1 %v3154_v40 }
 0x4a2   :  { %2738 = vmatpush1.bf16.msra.mxu0 %v3285_v45  ;;  %2766 = vmatpush3.bf16.msra.mxu1 %v3313_v10 }
 0x4a3   :  { %2740 = vmatprep.subr.bf16.mxu0 %v3288_v46  ;;  %2767 = vmatprep.subr.bf16.mxu1 %v3154_v40 }
 0x4a6   :  { %2742 = vmatpush1.bf16.msra.mxu0 %v3296_v55  ;;  %2769 = vmatpush3.bf16.msra.mxu1 %v3324_v20 }
 0x4a7   :  { %2744 = vmatprep.subr.bf16.mxu0 %v3299_v56  ;;  %2770 = vmatprep.subr.bf16.mxu1 %v3154_v40 }
 0x4aa   :  { %2746 = vmatpush1.bf16.msra.mxu0 %v3307_v2  ;;  %2772 = vmatpush3.bf16.msra.mxu1 %v3335_v24 }
 0x4ab   :  { %2748 = vmatprep.subr.bf16.mxu0 %v3310_v4  ;;  %2773 = vmatprep.subr.bf16.mxu1 %v3154_v40 }
 0x4ae   :  { %2750 = vmatpush1.bf16.msra.mxu0 %v3318_v13  ;;  %2775 = vmatpush3.bf16.msra.mxu1 %v3342_v29 }
 0x4af   :  { %2752 = vmatprep.subr.bf16.mxu0 %v3321_v15  ;;  %2776 = vmatprep.subr.bf16.mxu1 %v3154_v40 }
 0x4b2   :  { %2754 = vmatpush1.bf16.msra.mxu0 %v3331_v23  ;;  %2778 = vmatpush3.bf16.msra.mxu1 %v3350_v32 }
 0x4b3   :  { %2780 = vmatprep.subr.bf16.mxu0 %v3258_v9  ;;  %2811 = vmatprep.subr.bf16.mxu1 %v3154_v40 }
 0x568   :  { %v1118_v37 = vpop.f32.mrb[8].mxu0  ;;  %v1189_v62 = vpop.f32.mrb[16].mxu1 }
 0x569   :  { %v1120_v63 = vpop.f32.mrb[9].mxu0  ;;  %v2238_v1 = vpop.f32.mrb[17].mxu1  ;;  %v1834_v5 = vmul.f32 -1.442695, %v1118_v37 }
 0x56a   :  { %v1835_v3 = vmul.f32 -1.442695, %v1120_v63  ;;  %v1708_v63 = vld [vmem:[#allocation9 + $0x20] sm:$0xff]  ;;  %v1709_v1 = vld [vmem:[#allocation9 + $0x28] sm:$0xff] }
 0x56c   :  { %2983 = vpow2.f32 %v1835_v3  ;;  %v2898_v3 = vpack.c.bf16 %v1709_v1, %v1708_v63 }
 0x56d   :  { %2985 = vpow2.f32 %v1834_v5  ;;  %v1710_v5 = vld [vmem:[#allocation9 + $0x30] sm:$0xff] }
 0x576   :  { %v2984_v6 = vpop.eup %2983 }
 0x577   :  { %v1202_v7 = vadd.f32 1.0, %v2984_v6  ;;  %v2986_v8 = vpop.eup %2985 }
 0x578   :  { %v1201_v11 = vadd.f32 1.0, %v2986_v8  ;;  %v1713_v8 = vld [vmem:[#allocation9 + $0x48] sm:$0xff] }
 0x579   :  { %2987 = vrcp.f32 %v1202_v7  ;;  %v1712_v7 = vld [vmem:[#allocation9 + $0x40] sm:$0xff] }
 0x57a   :  { %2989 = vrcp.f32 %v1201_v11  ;;  %v2904_v11 = vpack.c.bf16 %v1713_v8, %v1712_v7 }
 0x583   :  { %v2988_v12 = vpop.eup %2987 }
 0x584   :  { %v1207_v14 = vmul.f32 %v2988_v12, %v1189_v62  ;;  %v2990_v19 = vpop.eup %2989  ;;  %v1714_v12 = vld [vmem:[#allocation9 + $0x50] sm:$0xff] }
 0x585   :  { %v1211_v21 = vsub.f32 1.0, %v2990_v19  ;;  %v1210_v22 = vmul.f32 %v2990_v19, %v1051_v60  ;;  %v1716_v19 = vld [vmem:[#allocation9 + $0x60] sm:$0xff] }
 0x586   :  { %v1208_v16 = vadd.f32 %v1207_v14, %v3396_v42  ;;  %v1715_v14 = vld [vmem:[#allocation9 + $0x58] sm:$0xff] }
 0x588   :  { %2991 = vtanh.f32 %v1208_v16  ;;  %v2907_v16 = vpack.c.bf16 %v1715_v14, %v1714_v12 }
 0x592   :  { %v2992_v38 = vpop.eup %2991 }
 0x593   :  { %v1212_v27 = vmul.f32 %v2992_v38, %v1211_v21  ;;  %v1717_v21 = vld [vmem:[#allocation9 + $0x68] sm:$0xff] }
 0x594   :  { %v2910_v38 = vpack.c.bf16 %v1717_v21, %v1716_v19 }
 0x595   :  { %v1213_v28 = vadd.f32 %v1212_v27, %v1210_v22  ;;  %v1718_v22 = vld [vmem:[#allocation9 + $0x70] sm:$0xff]  ;;  %v1719_v27 = vld [vmem:[#allocation9 + $0x78] sm:$0xff] }
 0x597   :  { %1279 = vmatmul.mubr.f32.vlgmr.msra.gmra.mrb[10].mxu0 %v1213_v28  ;;  %2272 = vmatmul.mubr.f32.vlgmr.msra.gmra.mrb[18].mxu1 %v1213_v28 }
 0x598   :  { %2782 = vmatpush1.bf16.msra.mxu0 %v3260_v17  ;;  %2813 = vmatpush3.bf16.msra.mxu1 %v3281_v41 }
 0x599   :  { %2784 = vmatprep.subr.bf16.mxu0 %v3263_v18  ;;  %2814 = vmatprep.subr.bf16.mxu1 %v3154_v40 }
 0x59a   :  { %1440 = vmatprep.mubr.f32.mxu0 %v3153_v0  ;;  %2306 = vmatprep.mubr.msk.f32.mxu1 %vm3155_vm0, %v3153_v0 }
 0x59c   :  { %2786 = vmatpush1.bf16.msra.mxu0 %v3268_v25  ;;  %2816 = vmatpush3.bf16.msra.mxu1 %v3291_v51 }
 0x59d   :  { %2788 = vmatprep.subr.bf16.mxu0 %v3271_v26  ;;  %2817 = vmatprep.subr.bf16.mxu1 %v3154_v40 }
 0x5a0   :  { %2790 = vmatpush1.bf16.msra.mxu0 %v3275_v34  ;;  %2819 = vmatpush3.bf16.msra.mxu1 %v3302_v61 }
 0x5a1   :  { %2792 = vmatprep.subr.bf16.mxu0 %v3278_v35  ;;  %2820 = vmatprep.subr.bf16.mxu1 %v3154_v40 }
 0x5a4   :  { %2794 = vmatpush1.bf16.msra.mxu0 %v3285_v45  ;;  %2822 = vmatpush3.bf16.msra.mxu1 %v3313_v10 }
 0x5a5   :  { %2796 = vmatprep.subr.bf16.mxu0 %v3288_v46  ;;  %2823 = vmatprep.subr.bf16.mxu1 %v3154_v40 }
 0x5a8   :  { %2798 = vmatpush1.bf16.msra.mxu0 %v3296_v55  ;;  %2825 = vmatpush3.bf16.msra.mxu1 %v3324_v20 }
 0x5a9   :  { %2800 = vmatprep.subr.bf16.mxu0 %v3299_v56  ;;  %2826 = vmatprep.subr.bf16.mxu1 %v3154_v40 }
 0x5ac   :  { %2802 = vmatpush1.bf16.msra.mxu0 %v3307_v2  ;;  %2828 = vmatpush3.bf16.msra.mxu1 %v3335_v24 }
 0x5ad   :  { %2804 = vmatprep.subr.bf16.mxu0 %v3310_v4  ;;  %2829 = vmatprep.subr.bf16.mxu1 %v3154_v40 }
 0x5b0   :  { %2806 = vmatpush1.bf16.msra.mxu0 %v3318_v13  ;;  %2831 = vmatpush3.bf16.msra.mxu1 %v3342_v29 }
 0x5b1   :  { %2808 = vmatprep.subr.bf16.mxu0 %v3321_v15  ;;  %2832 = vmatprep.subr.bf16.mxu1 %v3154_v40 }
 0x5b4   :  { %2810 = vmatpush1.bf16.msra.mxu0 %v3331_v23  ;;  %2834 = vmatpush3.bf16.msra.mxu1 %v3350_v32 }
 0x5b5   :  { %2836 = vmatprep.subr.bf16.mxu0 %v3258_v9  ;;  %2867 = vmatprep.subr.bf16.mxu1 %v3154_v40 }
 0x66a   :  { %v1280_v42 = vpop.f32.mrb[10].mxu0  ;;  %v1351_v30 = vpop.f32.mrb[18].mxu1 }
 0x66b   :  { %v1282_v31 = vpop.f32.mrb[11].mxu0  ;;  %v2273_v36 = vpop.f32.mrb[19].mxu1  ;;  %v1836_v48 = vmul.f32 -1.442695, %v1280_v42 }
 0x66c   :  { %v1837_v47 = vmul.f32 -1.442695, %v1282_v31 }
 0x66e   :  { %2993 = vpow2.f32 %v1837_v47 }
 0x66f   :  { %2995 = vpow2.f32 %v1836_v48 }
 0x678   :  { %v2994_v49 = vpop.eup %2993 }
 0x679   :  { %v1364_v50 = vadd.f32 1.0, %v2994_v49  ;;  %v2996_v52 = vpop.eup %2995 }
 0x67a   :  { %v1363_v53 = vadd.f32 1.0, %v2996_v52 }
 0x67b   :  { %2997 = vrcp.f32 %v1364_v50 }
 0x67c   :  { %2999 = vrcp.f32 %v1363_v53 }
 0x685   :  { %v2998_v54 = vpop.eup %2997 }
 0x686   :  { %v1369_v33 = vmul.f32 %v2998_v54, %v1351_v30  ;;  %v3000_v57 = vpop.eup %2999 }
 0x687   :  { %v1373_v58 = vsub.f32 1.0, %v3000_v57  ;;  %v1372_v60 = vmul.f32 %v3000_v57, %v1213_v28  ;;  %v2913_v28 = vpack.c.bf16 %v1719_v27, %v1718_v22 }
 0x688   :  { %v1370_v9 = vadd.f32 %v3394_v39, %v1369_v33  ;;  %v1707_v39 = vld [vmem:[#allocation9 + $0x18] sm:$0xff] }
 0x68a   :  { %3001 = vtanh.f32 %v1370_v9 }
 0x694   :  { %v3002_v59 = vpop.eup %3001 }
 0x695   :  { %v1374_v37 = vmul.f32 %v3002_v59, %v1373_v58 }
 0x697   :  { %v1375_v62 = vadd.f32 %v1374_v37, %v1372_v60 }
 0x699   :  { %1441 = vmatmul.mubr.f32.vlgmr.msra.gmra.mrb[12].mxu0 %v1375_v62  ;;  %2307 = vmatmul.mubr.f32.vlgmr.msra.gmra.mrb[20].mxu1 %v1375_v62 }
 0x69a   :  { %2838 = vmatpush1.bf16.msra.mxu0 %v3260_v17  ;;  %2869 = vmatpush3.bf16.msra.mxu1 %v3281_v41 }
 0x69b   :  { %2840 = vmatprep.subr.bf16.mxu0 %v3263_v18  ;;  %2870 = vmatprep.subr.bf16.mxu1 %v3154_v40 }
 0x69c   :  { %1602 = vmatprep.mubr.f32.mxu0 %v3153_v0  ;;  %2341 = vmatprep.mubr.msk.f32.mxu1 %vm3155_vm0, %v3153_v0 }
 0x69e   :  { %2842 = vmatpush1.bf16.msra.mxu0 %v3268_v25  ;;  %2872 = vmatpush3.bf16.msra.mxu1 %v3291_v51 }
 0x69f   :  { %2844 = vmatprep.subr.bf16.mxu0 %v3271_v26  ;;  %2873 = vmatprep.subr.bf16.mxu1 %v3154_v40 }
 0x6a2   :  { %2846 = vmatpush1.bf16.msra.mxu0 %v3275_v34  ;;  %2875 = vmatpush3.bf16.msra.mxu1 %v3302_v61 }
 0x6a3   :  { %2848 = vmatprep.subr.bf16.mxu0 %v3278_v35  ;;  %2876 = vmatprep.subr.bf16.mxu1 %v3154_v40 }
 0x6a6   :  { %2850 = vmatpush1.bf16.msra.mxu0 %v3285_v45  ;;  %2878 = vmatpush3.bf16.msra.mxu1 %v3313_v10 }
 0x6a7   :  { %2852 = vmatprep.subr.bf16.mxu0 %v3288_v46  ;;  %2879 = vmatprep.subr.bf16.mxu1 %v3154_v40 }
 0x6aa   :  { %2854 = vmatpush1.bf16.msra.mxu0 %v3296_v55  ;;  %2881 = vmatpush3.bf16.msra.mxu1 %v3324_v20 }
 0x6ab   :  { %2856 = vmatprep.subr.bf16.mxu0 %v3299_v56  ;;  %2882 = vmatprep.subr.bf16.mxu1 %v3154_v40 }
 0x6ae   :  { %2858 = vmatpush1.bf16.msra.mxu0 %v3307_v2  ;;  %2884 = vmatpush3.bf16.msra.mxu1 %v3335_v24  ;;  %v1705_v24 = vld [vmem:[#allocation9 + $0x8] sm:$0xff] }
 0x6af   :  { %2860 = vmatprep.subr.bf16.mxu0 %v3310_v4  ;;  %2885 = vmatprep.subr.bf16.mxu1 %v3154_v40 }
 0x6b2   :  { %2862 = vmatpush1.bf16.msra.mxu0 %v3318_v13  ;;  %2887 = vmatpush3.bf16.msra.mxu1 %v3342_v29 }
 0x6b3   :  { %2864 = vmatprep.subr.bf16.mxu0 %v3321_v15  ;;  %2888 = vmatprep.subr.bf16.mxu1 %v3154_v40 }
 0x6b6   :  { %2866 = vmatpush1.bf16.msra.mxu0 %v3331_v23  ;;  %2890 = vmatpush3.bf16.msra.mxu1 %v3350_v32  ;;  %v1704_v23 = vld [vmem:[#allocation9] sm:$0xff]  ;;  %v1706_v32 = vld [vmem:[#allocation9 + $0x10] sm:$0xff] }
 0x6b7   :  { %2891 = vmatprep.subr.bf16.mxu0 %v3154_v40  ;;  %v2892_v29 = vpack.c.bf16 %v1705_v24, %v1704_v23 }
 0x76c   :  { %v1442_v17 = vpop.f32.mrb[12].mxu0  ;;  %v1513_v18 = vpop.f32.mrb[20].mxu1 }
 0x76d   :  { %v1444_v25 = vpop.f32.mrb[13].mxu0  ;;  %v2308_v26 = vpop.f32.mrb[21].mxu1  ;;  %v1838_v35 = vmul.f32 -1.442695, %v1442_v17 }
 0x76e   :  { %v1839_v34 = vmul.f32 -1.442695, %v1444_v25 }
 0x770   :  { %3003 = vpow2.f32 %v1839_v34 }
 0x771   :  { %3005 = vpow2.f32 %v1838_v35 }
 0x77a   :  { %v3004_v41 = vpop.eup %3003 }
 0x77b   :  { %v1526_v45 = vadd.f32 1.0, %v3004_v41  ;;  %v3006_v46 = vpop.eup %3005 }
 0x77c   :  { %v1525_v51 = vadd.f32 1.0, %v3006_v46 }
 0x77d   :  { %3007 = vrcp.f32 %v1526_v45 }
 0x77e   :  { %3009 = vrcp.f32 %v1525_v51 }
 0x787   :  { %v3008_v55 = vpop.eup %3007 }
 0x788   :  { %v1531_v56 = vmul.f32 %v3008_v55, %v1513_v18  ;;  %v3010_v2 = vpop.eup %3009 }
 0x789   :  { %v1535_v4 = vsub.f32 1.0, %v3010_v2  ;;  %v1534_v13 = vmul.f32 %v3010_v2, %v1375_v62  ;;  %v1842_v62 = vld [vmem:[%s3651_s4] ss:$0 sm:$0xff]  ;;  %s3115_s4 = scalar_lea.vmem %s1816_s17, 128 }
 0x78a   :  { %v1532_v61 = vadd.f32 %v1531_v56, %v3400_v44  ;;  %v2895_v44 = vpack.c.bf16 %v1707_v39, %v1706_v32  ;;  %p3116_p4 = scmp.ne.s32.totalorder %s1816_s17, %s3115_s4  ;;  %p3121_p6 = scmp.lt.s32.totalorder %s3115_s4, %s3115_s4 }
 0x78c   :  { %3011 = vtanh.f32 %v1532_v61  ;;  %p3122_p7 = por %p3121_p6, %p3120_p5 }
 0x78e   :  { %p3123_p8 = pnand %p3122_p7, %p3116_p4 }
 0x796   :  { %v3012_v10 = vpop.eup %3011 }
 0x797   :  { %v1536_v15 = vmul.f32 %v3012_v10, %v1535_v4 }
 0x799   :  { %v3617_v20 = vadd.f32 %v1536_v15, %v1534_v13 }
 0x79b   :  { %1603 = vmatmul.mubr.f32.vlgmr.msra.gmra.mrb[14].mxu0 %v3617_v20  ;;  %2342 = vmatmul.mubr.f32.vlgmr.msra.gmra.mrb[22].mxu1 %v3617_v20 }
 0x79c   :  { %2376 = vmatprep.mubr.msk.f32.mxu0 %vm3155_vm0, %v3153_v0  ;;  %2893 = vmatpush3.bf16.msra.mxu0 %v2892_v29  ;;  %v1711_v0 = vld [vmem:[#allocation9 + $0x38] sm:$0xff] }
 0x79d   :  { %2894 = vmatprep.subr.bf16.mxu0 %v3154_v40  ;;  %v2901_v6 = vpack.c.bf16 %v1711_v0, %v1710_v5 }
 0x7a0   :  { %2896 = vmatpush3.bf16.msra.mxu0 %v2895_v44 }
 0x7a1   :  { %2897 = vmatprep.subr.bf16.mxu0 %v3154_v40 }
 0x7a4   :  { %2899 = vmatpush3.bf16.msra.mxu0 %v2898_v3 }
 0x7a5   :  { %2900 = vmatprep.subr.bf16.mxu0 %v3154_v40 }
 0x7a8   :  { %2902 = vmatpush3.bf16.msra.mxu0 %v2901_v6 }
 0x7a9   :  { %2903 = vmatprep.subr.bf16.mxu0 %v3154_v40 }
 0x7ac   :  { %2905 = vmatpush3.bf16.msra.mxu0 %v2904_v11 }
 0x7ad   :  { %2906 = vmatprep.subr.bf16.mxu0 %v3154_v40 }
 0x7b0   :  { %2908 = vmatpush3.bf16.msra.mxu0 %v2907_v16 }
 0x7b1   :  { %2909 = vmatprep.subr.bf16.mxu0 %v3154_v40 }
 0x7b4   :  { %2911 = vmatpush3.bf16.msra.mxu0 %v2910_v38 }
 0x7b5   :  { %2912 = vmatprep.subr.bf16.mxu0 %v3154_v40 }
 0x7b8   :  { %2914 = vmatpush3.bf16.msra.mxu0 %v2913_v28 }
 0x86e   :  { %v1604_v42 = vpop.f32.mrb[14].mxu0  ;;  %v1675_v30 = vpop.f32.mrb[22].mxu1 }
 0x86f   :  { %v1606_v31 = vpop.f32.mrb[15].mxu0  ;;  %v2343_v36 = vpop.f32.mrb[23].mxu1  ;;  %v1840_v48 = vmul.f32 -1.442695, %v1604_v42 }
 0x870   :  { %v1841_v47 = vmul.f32 -1.442695, %v1606_v31 }
 0x872   :  { %3013 = vpow2.f32 %v1841_v47 }
 0x873   :  { %3015 = vpow2.f32 %v1840_v48 }
 0x87c   :  { %v3014_v49 = vpop.eup %3013 }
 0x87d   :  { %v1688_v50 = vadd.f32 1.0, %v3014_v49  ;;  %v3016_v52 = vpop.eup %3015 }
 0x87e   :  { %v1687_v53 = vadd.f32 1.0, %v3016_v52 }
 0x87f   :  { %3017 = vrcp.f32 %v1688_v50 }
 0x880   :  { %3019 = vrcp.f32 %v1687_v53 }
 0x889   :  { %v3018_v54 = vpop.eup %3017 }
 0x88a   :  { %v1693_v33 = vmul.f32 %v3018_v54, %v1675_v30  ;;  %v3020_v40 = vpop.eup %3019 }
 0x88b   :  { %v1697_v57 = vsub.f32 1.0, %v3020_v40  ;;  %v1696_v59 = vmul.f32 %v3020_v40, %v3617_v20 }
 0x88c   :  { %v1694_v9 = vadd.f32 %v3398_v43, %v1693_v33 }
 0x88e   :  { %3021 = vtanh.f32 %v1694_v9 }
 0x898   :  { %v3022_v58 = vpop.eup %3021 }
 0x899   :  { %v1698_v60 = vmul.f32 %v3022_v58, %v1697_v57 }
 0x89b   :  { %v1699_v37 = vadd.f32 %v1698_v60, %v1696_v59 }
 0x89d   :  { %2377 = vmatmul.mubr.f32.vlgmr.msra.gmra.mrb[16].mxu0 %v1699_v37 }
 0x970   :  { %v1793_v17 = vpop.f32.mrb[16].mxu0 }
 0x971   :  { %v1794_v18 = vadd.f32 %v1842_v62, %v1793_v17  ;;  %v2378_v25 = vpop.f32.mrb[17].mxu0 }
 0x973   :  { %1797 = vmax.xlane.f32.xlu0 %v1794_v18 }
 0xa00   :  { %v1798_v26 = vpop.xlane.xlu0 %1797 }
 0xa01   :  { %v1799_v34 = vsub.f32 %v1794_v18, %v1798_v26 }
 0xa03   :  { %v1800_v43 = vmul.f32 1.442695, %v1799_v34 }
 0xa05   :  { %3023 = vpow2.f32 %v1800_v43 }
 0xa0f   :  { %v3024_v35 = vpop.eup %3023 }
 0xa10   :  { %1802 = vadd.xlane.f32.xlu0 %v3024_v35 }
 0xa9d   :  { %v1803_v41 = vpop.xlane.xlu0 %1802 }
 0xa9e   :  { %3025 = vlog2.f32 %v1803_v41 }
 0xaa8   :  { %v3026_v45 = vpop.eup %3025 }
 0xaa9   :  { %v1805_v46 = vmul.f32 0.6931472, %v3026_v45 }
 0xaab   :  { %v1806_v51 = vadd.f32 %v1805_v46, %v1798_v26 }
 0xaad   :  { %v1807_v55 = vsub.f32 %v1794_v18, %v1806_v51 }
 0xaaf   :  { %1808 = vst [vmem:[#allocation11] sm:$0xff] %v1807_v55 }
 0xab0   :  { %3126 = shalt.err (!%p3123_p8)
}
 0xab1   :  { %s3127_s21 = scalar_lea.hbm %s3652_s5, 128 }
 0xab2   :  { %p3128_p9 = scmp.ne.s32.totalorder %s3652_s5, %s3127_s21  ;;  %p3131_p10 = scmp.lt.u32.totalorder %s3127_s21, %s3652_s5 }
 0xab4   :  { %p3133_p11 = pnand %p3131_p10, %p3128_p9 }
 0xab6   :  { %3136 = shalt.err (!%p3133_p11)
}
 0xab7   :  { %1818 = dma.vmem_to_hbm [thread:$0]  %s1816_s17, 128, %s3652_s5, [#allocation5]  }
 0xab8   :  { %3143 = dma.done.wait [#allocation5], 128  }
 0xab9   :  { %3144 = vsyncadd [#allocation5], 4294967168 }
 0xaba   :  { %1822 = vsyncpa [#allocation4], 1 }
 0xabb   :  { %1823 = vsyncpa [#allocation7], 1 }
 0xabc   :  { %1824 = vsyncpa [#allocation10], 1 }
 0xabd   :  { %1825 = vsyncpa [#allocation5], 1 }

// kernel: tpu_custom_call.1
= control target key start
LH: loop header
LB: loop body
LE: loop exit
PB: predicated region body
PF: predicated region fallthrough
CT: control target
= control target key end

     0   :  { %10 = vsyncpa [#allocation4], 0  ;;  %s3647_s0 = inlined_call_operand.hbm [shape: f32[8,8,128], index: 0, kind: input, shape index: {}]   ;;  %s3648_s1 = inlined_call_operand.hbm [shape: f32[128,384], index: 1, kind: input, shape index: {}]   ;;  %s3649_s2 = inlined_call_operand.hbm [shape: f32[128,384], index: 2, kind: input, shape index: {}]   ;;  %s3650_s3 = inlined_call_operand.hbm [shape: f32[128,128], index: 3, kind: input, shape index: {}]   ;;  %s3651_s4 = inlined_call_operand.vmem [shape: f32[1,128], index: 4, kind: input, shape index: {}]   ;;  %s3652_s5 = inlined_call_operand.hbm [shape: f32[8,128], index: 5, kind: output, shape index: {}]  }
   0x1   :  { %11 = vsyncpa [#allocation7], 0 }
   0x2   :  { %12 = vsyncpa [#allocation10], 0 }
   0x3   :  { %13 = vsyncpa [#allocation5], 0  ;;  %s3145_s18 = smov [#allocation6]   ;;  %s3027_s22 = scalar_lea.hbm %s3648_s1, 6144 }
   0x4   :  { %s31_s19 = sshll.u32 %s3145_s18, 4  ;;  %p3028_p0 = scmp.ne.s32.totalorder %s3648_s1, %s3027_s22  ;;  %s32_s19 = int_to_ptr.vmem [resolvable:$true] %s31_s19 }
   0x5   :  { %p3031_p1 = scmp.lt.u32.totalorder %s3027_s22, %s3648_s1 }
   0x7   :  { %p3033_p2 = pnand %p3031_p1, %p3028_p0 }
   0x9   :  { %3036 = shalt.err (!%p3033_p2)
}
   0xa   :  { %s3037_s27 = scalar_lea.vmem %s32_s19, 6144  ;;  %p3042_p4 = scmp.lt.s32.totalorder %s32_s19, %s32_s19 }
   0xb   :  { %p3038_p3 = scmp.ne.s32.totalorder %s32_s19, %s3037_s27  ;;  %p3043_p5 = scmp.lt.s32.totalorder %s3037_s27, %s3037_s27 }
   0xd   :  { %p3044_p6 = por %p3043_p5, %p3042_p4 }
   0xf   :  { %p3045_p7 = pnand %p3044_p6, %p3038_p3 }
  0x11   :  { %3048 = shalt.err (!%p3045_p7)
}
  0x12   :  { %s3146_s28 = smov 384   ;;  %s3147_s29 = smov 24  }
  0x13   :  { %37 = dma.hbm_to_vmem [thread:$0]  %s3648_s1, 6144, %s32_s19, [#allocation7], %s3146_s28, %s3146_s28, %s3147_s29  }
  0x14   :  { %s3148_s7 = smov [#allocation3]   ;;  %s3049_s11 = scalar_lea.hbm %s3647_s0, 1024 }
  0x15   :  { %s19_s8 = sshll.u32 %s3148_s7, 4  ;;  %p3050_p8 = scmp.ne.s32.totalorder %s3647_s0, %s3049_s11  ;;  %s20_s8 = int_to_ptr.vmem [resolvable:$true] %s19_s8 }
  0x16   :  { %p3053_p9 = scmp.lt.u32.totalorder %s3049_s11, %s3647_s0 }
  0x18   :  { %p3055_p10 = pnand %p3053_p9, %p3050_p8 }
  0x1a   :  { %3058 = shalt.err (!%p3055_p10)
}
  0x1b   :  { %s3059_s16 = scalar_lea.vmem %s20_s8, 1024  ;;  %p3064_p12 = scmp.lt.s32.totalorder %s20_s8, %s20_s8 }
  0x1c   :  { %p3060_p11 = scmp.ne.s32.totalorder %s20_s8, %s3059_s16  ;;  %p3065_p13 = scmp.lt.s32.totalorder %s3059_s16, %s3059_s16 }
  0x1e   :  { %p3066_p0 = por %p3065_p13, %p3064_p12 }
  0x20   :  { %p3067_p1 = pnand %p3066_p0, %p3060_p11 }
  0x22   :  { %3070 = shalt.err (!%p3067_p1)
}
  0x23   :  { %s3149_s1 = smov 128   ;;  %s3150_s17 = smov 8  }
  0x24   :  { %25 = dma.hbm_to_vmem [thread:$0]  %s3647_s0, 1024, %s20_s8, [#allocation4], %s3149_s1, %s3149_s1, %s3150_s17  }
  0x25   :  { %s3151_s20 = smov [#allocation8]   ;;  %s3152_s22 = smov [#allocation9]  }
  0x26   :  { %s43_s21 = sshll.u32 %s3151_s20, 4  ;;  %s55_s23 = sshll.u32 %s3152_s22, 4  ;;  %s44_s21 = int_to_ptr.vmem [resolvable:$true] %s43_s21  ;;  %s3217_s23 = int_to_ptr.vmem [resolvable:$true] %s55_s23 }
  0x27   :  { %s3071_s26 = scalar_lea.hbm %s3649_s2, 6144 }
  0x28   :  { %p3072_p2 = scmp.ne.s32.totalorder %s3649_s2, %s3071_s26  ;;  %p3075_p3 = scmp.lt.u32.totalorder %s3071_s26, %s3649_s2 }
  0x2a   :  { %p3077_p4 = pnand %p3075_p3, %p3072_p2 }
  0x2c   :  { %3080 = shalt.err (!%p3077_p4)
}
  0x2d   :  { %s3081_s0 = scalar_lea.vmem %s44_s21, 6144  ;;  %p3086_p6 = scmp.lt.s32.totalorder %s44_s21, %s44_s21 }
  0x2e   :  { %p3082_p5 = scmp.ne.s32.totalorder %s44_s21, %s3081_s0  ;;  %p3087_p7 = scmp.lt.s32.totalorder %s3081_s0, %s3081_s0 }
  0x30   :  { %p3088_p8 = por %p3087_p7, %p3086_p6 }
  0x32   :  { %p3089_p9 = pnand %p3088_p8, %p3082_p5 }
  0x34   :  { %3092 = shalt.err (!%p3089_p9)
}
  0x35   :  { %49 = dma.hbm_to_vmem [thread:$0]  %s3649_s2, 6144, %s44_s21, [#allocation7], %s3146_s28, %s3146_s28, %s3147_s29  }
  0x36   :  { %s3093_s12 = scalar_lea.hbm %s3650_s3, 2048 }
  0x37   :  { %p3094_p10 = scmp.ne.s32.totalorder %s3650_s3, %s3093_s12  ;;  %p3097_p11 = scmp.lt.u32.totalorder %s3093_s12, %s3650_s3 }
  0x39   :  { %p3099_p12 = pnand %p3097_p11, %p3094_p10 }
  0x3b   :  { %3102 = shalt.err (!%p3099_p12)
}
  0x3c   :  { %s3103_s18 = scalar_lea.vmem %s3217_s23, 2048  ;;  %p3108_p0 = scmp.lt.s32.totalorder %s3217_s23, %s3217_s23 }
  0x3d   :  { %p3104_p13 = scmp.ne.s32.totalorder %s3217_s23, %s3103_s18  ;;  %p3109_p1 = scmp.lt.s32.totalorder %s3103_s18, %s3103_s18 }
  0x3f   :  { %p3110_p2 = por %p3109_p1, %p3108_p0 }
  0x41   :  { %p3111_p3 = pnand %p3110_p2, %p3104_p13 }
  0x43   :  { %3114 = shalt.err (!%p3111_p3)
}
  0x44   :  { %61 = dma.hbm_to_vmem [thread:$0]  %s3650_s3, 2048, %s3217_s23, [#allocation10], %s3149_s1, %s3149_s1, %s3150_s17  }
  0x45   :  { %3137 = dma.done.wait [#allocation4], 1024  }
  0x46   :  { %3138 = vsyncadd [#allocation4], 4294966272 }
  0x47   :  { %3139 = dma.done.wait [#allocation7], 12288  }
  0x48   :  { %3140 = vsyncadd [#allocation7], 4294955008 }
  0x49   :  { %3141 = dma.done.wait [#allocation10], 2048  }
  0x4a   :  { %3142 = vsyncadd [#allocation10], 4294965248  ;;  %v3153_v0 = vmov 0.0   ;;  %v90_v1 = vld [vmem:[#allocation6 + $0x8] sm:$0xff]  ;;  %v93_v2 = vld [vmem:[#allocation6 + $0x20] sm:$0xff]  ;;  %vm3155_vm0 = vmmov 0  }
  0x4b   :  { %201 = vmatprep.mubr.f32.mxu0 %v3153_v0  ;;  %v89_v3 = vld [vmem:[#allocation6] sm:$0xff]  ;;  %v2379_v4 = vpack.c.bf16 %v93_v2, %v90_v1  ;;  %v92_v5 = vld [vmem:[#allocation6 + $0x18] sm:$0xff]  ;;  %v99_v7 = vld [vmem:[#allocation6 + $0x50] sm:$0xff]  ;;  %s3156_s1 = smov [#allocation11]  }
  0x4c   :  { %v96_v6 = vld [vmem:[#allocation6 + $0x38] sm:$0xff]  ;;  %v2381_v8 = vpack.c.bf16 %v92_v5, %v89_v3  ;;  %v95_v10 = vld [vmem:[#allocation6 + $0x30] sm:$0xff]  ;;  %v98_v11 = vld [vmem:[#allocation6 + $0x48] sm:$0xff]  ;;  %s1815_s17 = sshll.u32 %s3156_s1, 4  ;;  %s1816_s17 = int_to_ptr.vmem [resolvable:$true] %s1815_s17 }
  0x4d   :  { %v2383_v9 = vpack.c.bf16 %v99_v7, %v96_v6  ;;  %v102_v12 = vld [vmem:[#allocation6 + $0x68] sm:$0xff]  ;;  %2380 = vmatprep.subr.bf16.mxu0 %v2379_v4  ;;  %v105_v13 = vld [vmem:[#allocation6 + $0x80] sm:$0xff]  ;;  %v2385_v14 = vpack.c.bf16 %v98_v11, %v95_v10  ;;  %v104_v17 = vld [vmem:[#allocation6 + $0x78] sm:$0xff]  ;;  %p3120_p5 = scmp.lt.s32.totalorder %s1816_s17, %s1816_s17 }
  0x4e   :  { %2382 = vmatpush1.bf16.msra.mxu0 %v2381_v8  ;;  %v2387_v15 = vpack.c.bf16 %v105_v13, %v102_v12  ;;  %v101_v16 = vld [vmem:[#allocation6 + $0x60] sm:$0xff]  ;;  %v108_v18 = vld [vmem:[#allocation6 + $0x98] sm:$0xff]  ;;  %v111_v19 = vld [vmem:[#allocation6 + $0xb0] sm:$0xff] }
  0x4f   :  { %2384 = vmatprep.subr.bf16.mxu0 %v2383_v9  ;;  %v2389_v20 = vpack.c.bf16 %v104_v17, %v101_v16  ;;  %v107_v21 = vld [vmem:[#allocation6 + $0x90] sm:$0xff]  ;;  %v2391_v22 = vpack.c.bf16 %v111_v19, %v108_v18  ;;  %v110_v23 = vld [vmem:[#allocation6 + $0xa8] sm:$0xff]  ;;  %v117_v27 = vld [vmem:[#allocation6 + $0xe0] sm:$0xff] }
  0x50   :  { %v91_v24 = vld [vmem:[#allocation6 + $0x10] sm:$0xff]  ;;  %v94_v25 = vld [vmem:[#allocation6 + $0x28] sm:$0xff]  ;;  %v97_v29 = vld [vmem:[#allocation6 + $0x40] sm:$0xff]  ;;  %v2393_v31 = vpack.c.bf16 %v110_v23, %v107_v21 }
  0x51   :  { %v114_v26 = vld [vmem:[#allocation6 + $0xc8] sm:$0xff]  ;;  %v2411_v28 = vpack.c.bf16 %v94_v25, %v91_v24  ;;  %v100_v30 = vld [vmem:[#allocation6 + $0x58] sm:$0xff]  ;;  %v113_v32 = vld [vmem:[#allocation6 + $0xc0] sm:$0xff] }
  0x52   :  { %2386 = vmatpush1.bf16.msra.mxu0 %v2385_v14  ;;  %v2415_v33 = vpack.c.bf16 %v100_v30, %v97_v29  ;;  %v2395_v34 = vpack.c.bf16 %v117_v27, %v114_v26  ;;  %v116_v35 = vld [vmem:[#allocation6 + $0xd8] sm:$0xff]  ;;  %v3255_v36 = vld [vmem:[#allocation3] sm:$0xff]  ;;  %v103_v37 = vld [vmem:[#allocation6 + $0x70] sm:$0xff] }
  0x53   :  { %2388 = vmatprep.subr.bf16.mxu0 %v2387_v15  ;;  %2412 = vmatprep.subr.bf16.mxu1 %v2411_v28  ;;  %v120_v38 = vld [vmem:[#allocation6 + $0xf8] sm:$0xff]  ;;  %v123_v39 = vld [vmem:[#allocation6 + $0x110] sm:$0xff]  ;;  %v106_v40 = vld [vmem:[#allocation6 + $0x88] sm:$0xff]  ;;  %v2397_v42 = vpack.c.bf16 %v116_v35, %v113_v32 }
  0x54   :  { %2414 = vmatpush3.bf16.msra.mxu1 %v2411_v28  ;;  %2052 = vmatprep.mubr.f32.mxu1 %v3255_v36  ;;  %v2419_v41 = vpack.c.bf16 %v106_v40, %v103_v37  ;;  %v109_v43 = vld [vmem:[#allocation6 + $0xa0] sm:$0xff]  ;;  %v112_v44 = vld [vmem:[#allocation6 + $0xb8] sm:$0xff]  ;;  %v2399_v45 = vpack.c.bf16 %v123_v39, %v120_v38  ;;  %v119_v46 = vld [vmem:[#allocation6 + $0xf0] sm:$0xff]  ;;  %v3154_v40 = vmov 0.0|0.0  }
  0x55   :  { %2416 = vmatprep.subr.bf16.mxu1 %v2415_v33  ;;  %v122_v47 = vld [vmem:[#allocation6 + $0x108] sm:$0xff]  ;;  %v129_v49 = vld [vmem:[#allocation6 + $0x140] sm:$0xff]  ;;  %v2423_v50 = vpack.c.bf16 %v112_v44, %v109_v43  ;;  %v115_v51 = vld [vmem:[#allocation6 + $0xd0] sm:$0xff] }
  0x56   :  { %2390 = vmatpush1.bf16.msra.mxu0 %v2389_v20  ;;  %v126_v48 = vld [vmem:[#allocation6 + $0x128] sm:$0xff]  ;;  %v2401_v53 = vpack.c.bf16 %v122_v47, %v119_v46  ;;  %v125_v55 = vld [vmem:[#allocation6 + $0x120] sm:$0xff]  ;;  %v128_v56 = vld [vmem:[#allocation6 + $0x138] sm:$0xff] }
  0x57   :  { %2392 = vmatprep.subr.bf16.mxu0 %v2391_v22  ;;  %v118_v52 = vld [vmem:[#allocation6 + $0xe8] sm:$0xff]  ;;  %v2403_v54 = vpack.c.bf16 %v129_v49, %v126_v48  ;;  %v132_v57 = vld [vmem:[#allocation6 + $0x158] sm:$0xff]  ;;  %v135_v58 = vld [vmem:[#allocation6 + $0x170] sm:$0xff]  ;;  %v2405_v62 = vpack.c.bf16 %v128_v56, %v125_v55 }
  0x58   :  { %2418 = vmatpush3.bf16.msra.mxu1 %v2415_v33  ;;  %v2427_v59 = vpack.c.bf16 %v118_v52, %v115_v51  ;;  %v121_v60 = vld [vmem:[#allocation6 + $0x100] sm:$0xff]  ;;  %v124_v61 = vld [vmem:[#allocation6 + $0x118] sm:$0xff]  ;;  %v2407_v63 = vpack.c.bf16 %v135_v58, %v132_v57  ;;  %v131_v1 = vld [vmem:[#allocation6 + $0x150] sm:$0xff] }
  0x59   :  { %2420 = vmatprep.subr.bf16.mxu1 %v2419_v41  ;;  %v134_v2 = vld [vmem:[#allocation6 + $0x168] sm:$0xff]  ;;  %v360_v4 = vld [vmem:[#allocation8 + $0x20] sm:$0xff]  ;;  %v2431_v5 = vpack.c.bf16 %v124_v61, %v121_v60  ;;  %v127_v6 = vld [vmem:[#allocation6 + $0x130] sm:$0xff] }
  0x5a   :  { %2394 = vmatpush1.bf16.msra.mxu0 %v2393_v31  ;;  %v357_v3 = vld [vmem:[#allocation8 + $0x8] sm:$0xff]  ;;  %v2409_v8 = vpack.c.bf16 %v134_v2, %v131_v1  ;;  %v356_v10 = vld [vmem:[#allocation8] sm:$0xff]  ;;  %v359_v11 = vld [vmem:[#allocation8 + $0x18] sm:$0xff] }
  0x5b   :  { %2396 = vmatprep.subr.bf16.mxu0 %v2395_v34  ;;  %v130_v7 = vld [vmem:[#allocation6 + $0x148] sm:$0xff]  ;;  %v3258_v9 = vpack.c.bf16 %v360_v4, %v357_v3  ;;  %v363_v12 = vld [vmem:[#allocation8 + $0x38] sm:$0xff]  ;;  %v366_v13 = vld [vmem:[#allocation8 + $0x50] sm:$0xff]  ;;  %v3260_v17 = vpack.c.bf16 %v359_v11, %v356_v10 }
  0x5c   :  { %2422 = vmatpush3.bf16.msra.mxu1 %v2419_v41  ;;  %v2435_v14 = vpack.c.bf16 %v130_v7, %v127_v6  ;;  %v133_v15 = vld [vmem:[#allocation6 + $0x160] sm:$0xff]  ;;  %v136_v16 = vld [vmem:[#allocation6 + $0x178] sm:$0xff]  ;;  %v3263_v18 = vpack.c.bf16 %v366_v13, %v363_v12  ;;  %v362_v19 = vld [vmem:[#allocation8 + $0x30] sm:$0xff] }
  0x5d   :  { %2424 = vmatprep.subr.bf16.mxu1 %v2423_v50  ;;  %v365_v20 = vld [vmem:[#allocation8 + $0x48] sm:$0xff]  ;;  %v372_v22 = vld [vmem:[#allocation8 + $0x80] sm:$0xff]  ;;  %v2439_v23 = vpack.c.bf16 %v136_v16, %v133_v15  ;;  %v371_v28 = vld [vmem:[#allocation8 + $0x78] sm:$0xff] }
  0x5e   :  { %2398 = vmatpush1.bf16.msra.mxu0 %v2397_v42  ;;  %v369_v21 = vld [vmem:[#allocation8 + $0x68] sm:$0xff]  ;;  %v3268_v25 = vpack.c.bf16 %v365_v20, %v362_v19  ;;  %v368_v27 = vld [vmem:[#allocation8 + $0x60] sm:$0xff]  ;;  %v375_v29 = vld [vmem:[#allocation8 + $0x98] sm:$0xff] }
  0x5f   :  { %2400 = vmatprep.subr.bf16.mxu0 %v2399_v45  ;;  %v82_v24 = vld [vmem:[#allocation3 + $0x8] sm:$0xff]  ;;  %v3271_v26 = vpack.c.bf16 %v372_v22, %v369_v21  ;;  %v378_v30 = vld [vmem:[#allocation8 + $0xb0] sm:$0xff]  ;;  %v3275_v34 = vpack.c.bf16 %v371_v28, %v368_v27  ;;  %v384_v39 = vld [vmem:[#allocation8 + $0xe0] sm:$0xff] }
  0x60   :  { %2426 = vmatpush3.bf16.msra.mxu1 %v2423_v50  ;;  %v358_v31 = vld [vmem:[#allocation8 + $0x10] sm:$0xff]  ;;  %v361_v32 = vld [vmem:[#allocation8 + $0x28] sm:$0xff]  ;;  %v3278_v35 = vpack.c.bf16 %v378_v30, %v375_v29  ;;  %v364_v42 = vld [vmem:[#allocation8 + $0x40] sm:$0xff] }
  0x61   :  { %2428 = vmatprep.subr.bf16.mxu1 %v2427_v59  ;;  %v83_v33 = vld [vmem:[#allocation3 + $0x10] sm:$0xff]  ;;  %v377_v37 = vld [vmem:[#allocation8 + $0xa8] sm:$0xff]  ;;  %v3281_v41 = vpack.c.bf16 %v361_v32, %v358_v31  ;;  %v367_v43 = vld [vmem:[#allocation8 + $0x58] sm:$0xff] }
  0x62   :  { %2402 = vmatpush1.bf16.msra.mxu0 %v2401_v53  ;;  %v381_v38 = vld [vmem:[#allocation8 + $0xc8] sm:$0xff]  ;;  %v84_v44 = vld [vmem:[#allocation3 + $0x18] sm:$0xff]  ;;  %v380_v47 = vld [vmem:[#allocation8 + $0xc0] sm:$0xff]  ;;  %v3291_v51 = vpack.c.bf16 %v367_v43, %v364_v42 }
  0x63   :  { %2404 = vmatprep.subr.bf16.mxu0 %v2403_v54  ;;  %v3288_v46 = vpack.c.bf16 %v384_v39, %v381_v38  ;;  %v383_v48 = vld [vmem:[#allocation8 + $0xd8] sm:$0xff]  ;;  %v390_v50 = vld [vmem:[#allocation8 + $0x110] sm:$0xff]  ;;  %v373_v53 = vld [vmem:[#allocation8 + $0x88] sm:$0xff] }
  0x64   :  { %2430 = vmatpush3.bf16.msra.mxu1 %v2427_v59  ;;  %v387_v49 = vld [vmem:[#allocation8 + $0xf8] sm:$0xff]  ;;  %v370_v52 = vld [vmem:[#allocation8 + $0x70] sm:$0xff]  ;;  %v85_v54 = vld [vmem:[#allocation3 + $0x20] sm:$0xff]  ;;  %v3296_v55 = vpack.c.bf16 %v383_v48, %v380_v47 }
  0x65   :  { %2432 = vmatprep.subr.bf16.mxu1 %v2431_v5  ;;  %v3299_v56 = vpack.c.bf16 %v390_v50, %v387_v49  ;;  %v386_v57 = vld [vmem:[#allocation8 + $0xf0] sm:$0xff]  ;;  %v389_v58 = vld [vmem:[#allocation8 + $0x108] sm:$0xff]  ;;  %v396_v60 = vld [vmem:[#allocation8 + $0x140] sm:$0xff]  ;;  %v3302_v61 = vpack.c.bf16 %v373_v53, %v370_v52 }
  0x66   :  { %2406 = vmatpush1.bf16.msra.mxu0 %v2405_v62  ;;  %v393_v59 = vld [vmem:[#allocation8 + $0x128] sm:$0xff]  ;;  %v376_v62 = vld [vmem:[#allocation8 + $0xa0] sm:$0xff]  ;;  %v3307_v2 = vpack.c.bf16 %v389_v58, %v386_v57  ;;  %v87_v3 = vld [vmem:[#allocation3 + $0x30] sm:$0xff] }
  0x67   :  { %2408 = vmatprep.subr.bf16.mxu0 %v2407_v63  ;;  %v379_v63 = vld [vmem:[#allocation8 + $0xb8] sm:$0xff]  ;;  %v86_v1 = vld [vmem:[#allocation3 + $0x28] sm:$0xff]  ;;  %v3310_v4 = vpack.c.bf16 %v396_v60, %v393_v59  ;;  %v382_v11 = vld [vmem:[#allocation8 + $0xd0] sm:$0xff] }
  0x68   :  { %2434 = vmatpush3.bf16.msra.mxu1 %v2431_v5  ;;  %v392_v5 = vld [vmem:[#allocation8 + $0x120] sm:$0xff]  ;;  %v395_v6 = vld [vmem:[#allocation8 + $0x138] sm:$0xff]  ;;  %v3313_v10 = vpack.c.bf16 %v379_v63, %v376_v62  ;;  %v385_v12 = vld [vmem:[#allocation8 + $0xe8] sm:$0xff] }
  0x69   :  { %2436 = vmatprep.subr.bf16.mxu1 %v2435_v14  ;;  %v399_v7 = vld [vmem:[#allocation8 + $0x158] sm:$0xff]  ;;  %v3318_v13 = vpack.c.bf16 %v395_v6, %v392_v5  ;;  %v398_v16 = vld [vmem:[#allocation8 + $0x150] sm:$0xff]  ;;  %v401_v19 = vld [vmem:[#allocation8 + $0x168] sm:$0xff]  ;;  %v3324_v20 = vpack.c.bf16 %v385_v12, %v382_v11 }
  0x6a   :  { %2410 = vmatpush1.bf16.msra.mxu0 %v2409_v8  ;;  %v402_v8 = vld [vmem:[#allocation8 + $0x170] sm:$0xff]  ;;  %v388_v21 = vld [vmem:[#allocation8 + $0x100] sm:$0xff]  ;;  %v391_v22 = vld [vmem:[#allocation8 + $0x118] sm:$0xff] }
  0x6b   :  { %2444 = vmatprep.subr.bf16.mxu0 %v3258_v9  ;;  %v3321_v15 = vpack.c.bf16 %v402_v8, %v399_v7  ;;  %v394_v27 = vld [vmem:[#allocation8 + $0x130] sm:$0xff]  ;;  %v397_v28 = vld [vmem:[#allocation8 + $0x148] sm:$0xff]  ;;  %v400_v30 = vld [vmem:[#allocation8 + $0x160] sm:$0xff] }
  0x6c   :  { %2438 = vmatpush3.bf16.msra.mxu1 %v2435_v14  ;;  %v88_v14 = vld [vmem:[#allocation3 + $0x38] sm:$0xff]  ;;  %v3342_v29 = vpack.c.bf16 %v397_v28, %v394_v27 }
  0x6d   :  { %202 = vmatmul.mubr.f32.vlgmr.msra.gmra.mrb[0].mxu0 %v3255_v36  ;;  %2440 = vmatprep.subr.bf16.mxu1 %v2439_v23  ;;  %v374_v36 = vld [vmem:[#allocation8 + $0x90] sm:$0xff]  ;;  %v403_v31 = vld [vmem:[#allocation8 + $0x178] sm:$0xff] }
  0x6e   :  { %2446 = vmatpush1.bf16.msra.mxu0 %v3260_v17  ;;  %207 = vmatprep.mubr.f32.mxu0 %v3153_v0  ;;  %v3285_v45 = vpack.c.bf16 %v377_v37, %v374_v36  ;;  %v3350_v32 = vpack.c.bf16 %v403_v31, %v400_v30 }
  0x6f   :  { %2448 = vmatprep.subr.bf16.mxu0 %v3263_v18 }
  0x70   :  { %2442 = vmatpush3.bf16.msra.mxu1 %v2439_v23  ;;  %v3331_v23 = vpack.c.bf16 %v401_v19, %v398_v16 }
  0x71   :  { %208 = vmatmul.mubr.f32.gmra.mrb[2].mxu0 %v82_v24  ;;  %2475 = vmatprep.subr.bf16.mxu1 %v3154_v40 }
  0x72   :  { %2450 = vmatpush1.bf16.msra.mxu0 %v3268_v25  ;;  %213 = vmatprep.mubr.f32.mxu0 %v3153_v0 }
  0x73   :  { %2452 = vmatprep.subr.bf16.mxu0 %v3271_v26  ;;  %2053 = vmatmul.mubr.f32.vlgmr.msra.gmra.mrb[0].mxu1 %v82_v24  ;;  %v3335_v24 = vpack.c.bf16 %v391_v22, %v388_v21 }
  0x74   :  { %2477 = vmatpush3.bf16.msra.mxu1 %v3281_v41  ;;  %2055 = vmatprep.mubr.f32.mxu1 %v83_v33 }
  0x75   :  { %214 = vmatmul.mubr.f32.gmra.mrb[4].mxu0 %v83_v33  ;;  %2478 = vmatprep.subr.bf16.mxu1 %v3154_v40 }
  0x76   :  { %2454 = vmatpush1.bf16.msra.mxu0 %v3275_v34  ;;  %219 = vmatprep.mubr.f32.mxu0 %v3153_v0 }
  0x77   :  { %2456 = vmatprep.subr.bf16.mxu0 %v3278_v35  ;;  %2056 = vmatmul.mubr.f32.gmra.mrb[2].mxu1 %v84_v44 }
  0x78   :  { %2480 = vmatpush3.bf16.msra.mxu1 %v3291_v51  ;;  %2058 = vmatprep.mubr.f32.mxu1 %v85_v54 }
  0x79   :  { %220 = vmatmul.mubr.f32.gmra.mrb[6].mxu0 %v84_v44  ;;  %2481 = vmatprep.subr.bf16.mxu1 %v3154_v40 }
  0x7a   :  { %2458 = vmatpush1.bf16.msra.mxu0 %v3285_v45  ;;  %225 = vmatprep.mubr.f32.mxu0 %v3153_v0 }
  0x7b   :  { %2460 = vmatprep.subr.bf16.mxu0 %v3288_v46  ;;  %2059 = vmatmul.mubr.f32.gmra.mrb[4].mxu1 %v86_v1 }
  0x7c   :  { %2483 = vmatpush3.bf16.msra.mxu1 %v3302_v61  ;;  %2061 = vmatprep.mubr.f32.mxu1 %v87_v3 }
  0x7d   :  { %226 = vmatmul.mubr.f32.gmra.mrb[8].mxu0 %v85_v54  ;;  %2484 = vmatprep.subr.bf16.mxu1 %v3154_v40 }
  0x7e   :  { %2462 = vmatpush1.bf16.msra.mxu0 %v3296_v55  ;;  %231 = vmatprep.mubr.f32.mxu0 %v3153_v0 }
  0x7f   :  { %2464 = vmatprep.subr.bf16.mxu0 %v3299_v56  ;;  %2062 = vmatmul.mubr.f32.gmra.mrb[6].mxu1 %v88_v14 }
  0x80   :  { %2486 = vmatpush3.bf16.msra.mxu1 %v3313_v10  ;;  %2096 = vmatprep.mubr.msk.f32.mxu1 %vm3155_vm0, %v3153_v0 }
  0x81   :  { %232 = vmatmul.mubr.f32.gmra.mrb[10].mxu0 %v86_v1  ;;  %2487 = vmatprep.subr.bf16.mxu1 %v3154_v40 }
  0x82   :  { %2466 = vmatpush1.bf16.msra.mxu0 %v3307_v2  ;;  %237 = vmatprep.mubr.f32.mxu0 %v3153_v0 }
  0x83   :  { %2468 = vmatprep.subr.bf16.mxu0 %v3310_v4 }
  0x84   :  { %2489 = vmatpush3.bf16.msra.mxu1 %v3324_v20 }
  0x85   :  { %238 = vmatmul.mubr.f32.gmra.mrb[12].mxu0 %v87_v3  ;;  %2490 = vmatprep.subr.bf16.mxu1 %v3154_v40 }
  0x86   :  { %2470 = vmatpush1.bf16.msra.mxu0 %v3318_v13  ;;  %243 = vmatprep.mubr.f32.mxu0 %v3153_v0 }
  0x87   :  { %2472 = vmatprep.subr.bf16.mxu0 %v3321_v15 }
  0x88   :  { %2492 = vmatpush3.bf16.msra.mxu1 %v3335_v24 }
  0x89   :  { %244 = vmatmul.mubr.f32.gmra.mrb[14].mxu0 %v88_v14  ;;  %2493 = vmatprep.subr.bf16.mxu1 %v3154_v40 }
  0x8a   :  { %2474 = vmatpush1.bf16.msra.mxu0 %v3331_v23  ;;  %468 = vmatprep.mubr.f32.mxu0 %v3153_v0 }
  0x8b   :  { %2500 = vmatprep.subr.bf16.mxu0 %v3258_v9 }
  0x8c   :  { %2495 = vmatpush3.bf16.msra.mxu1 %v3342_v29 }
  0x8d   :  { %469 = vmatmul.mubr.f32.vlgmr.msra.gmra.mrb[0].mxu0 %v3153_v0  ;;  %2496 = vmatprep.subr.bf16.mxu1 %v3154_v40 }
  0x8e   :  { %2502 = vmatpush1.bf16.msra.mxu0 %v3260_v17  ;;  %630 = vmatprep.mubr.f32.mxu0 %v3153_v0 }
  0x8f   :  { %2504 = vmatprep.subr.bf16.mxu0 %v3263_v18 }
  0x90   :  { %2498 = vmatpush3.bf16.msra.mxu1 %v3350_v32 }
  0x91   :  { %2531 = vmatprep.subr.bf16.mxu1 %v3154_v40 }
  0x92   :  { %2506 = vmatpush1.bf16.msra.mxu0 %v3268_v25 }
  0x93   :  { %2508 = vmatprep.subr.bf16.mxu0 %v3271_v26  ;;  %2097 = vmatmul.mubr.f32.vlgmr.msra.gmra.mrb[8].mxu1 %v3153_v0 }
  0x94   :  { %2533 = vmatpush3.bf16.msra.mxu1 %v3281_v41  ;;  %2131 = vmatprep.mubr.msk.f32.mxu1 %vm3155_vm0, %v3153_v0 }
  0x95   :  { %2534 = vmatprep.subr.bf16.mxu1 %v3154_v40 }
  0x96   :  { %2510 = vmatpush1.bf16.msra.mxu0 %v3275_v34 }
  0x97   :  { %2512 = vmatprep.subr.bf16.mxu0 %v3278_v35 }
  0x98   :  { %2536 = vmatpush3.bf16.msra.mxu1 %v3291_v51 }
  0x99   :  { %2537 = vmatprep.subr.bf16.mxu1 %v3154_v40 }
  0x9a   :  { %2514 = vmatpush1.bf16.msra.mxu0 %v3285_v45 }
  0x9b   :  { %2516 = vmatprep.subr.bf16.mxu0 %v3288_v46 }
  0x9c   :  { %2539 = vmatpush3.bf16.msra.mxu1 %v3302_v61 }
  0x9d   :  { %2540 = vmatprep.subr.bf16.mxu1 %v3154_v40 }
  0x9e   :  { %2518 = vmatpush1.bf16.msra.mxu0 %v3296_v55 }
  0x9f   :  { %2520 = vmatprep.subr.bf16.mxu0 %v3299_v56 }
  0xa0   :  { %2542 = vmatpush3.bf16.msra.mxu1 %v3313_v10 }
  0xa1   :  { %2543 = vmatprep.subr.bf16.mxu1 %v3154_v40 }
  0xa2   :  { %2522 = vmatpush1.bf16.msra.mxu0 %v3307_v2 }
  0xa3   :  { %2524 = vmatprep.subr.bf16.mxu0 %v3310_v4 }
  0xa4   :  { %2545 = vmatpush3.bf16.msra.mxu1 %v3324_v20 }
  0xa5   :  { %2546 = vmatprep.subr.bf16.mxu1 %v3154_v40 }
  0xa6   :  { %2526 = vmatpush1.bf16.msra.mxu0 %v3318_v13 }
  0xa7   :  { %2528 = vmatprep.subr.bf16.mxu0 %v3321_v15 }
  0xa8   :  { %2548 = vmatpush3.bf16.msra.mxu1 %v3335_v24 }
  0xa9   :  { %2549 = vmatprep.subr.bf16.mxu1 %v3154_v40 }
  0xaa   :  { %2530 = vmatpush1.bf16.msra.mxu0 %v3331_v23 }
  0xab   :  { %2556 = vmatprep.subr.bf16.mxu0 %v3258_v9 }
  0xac   :  { %2551 = vmatpush3.bf16.msra.mxu1 %v3342_v29 }
  0xad   :  { %2552 = vmatprep.subr.bf16.mxu1 %v3154_v40 }
  0xb0   :  { %2554 = vmatpush3.bf16.msra.mxu1 %v3350_v32 }
  0xb1   :  { %2587 = vmatprep.subr.bf16.mxu1 %v3154_v40 }
 0x146   :  { %v3388_v33 = vpop.f32.mrb[0].mxu1 }
 0x147   :  { %v316_v36 = vpop.f32.mrb[1].mxu1 }
 0x14a   :  { %v3390_v37 = vpop.f32.mrb[2].mxu1 }
 0x14b   :  { %v3392_v38 = vpop.f32.mrb[3].mxu1 }
 0x14e   :  { %v3394_v39 = vpop.f32.mrb[4].mxu1 }
 0x14f   :  { %v3396_v42 = vpop.f32.mrb[5].mxu1 }
 0x152   :  { %v3398_v43 = vpop.f32.mrb[6].mxu1 }
 0x153   :  { %v3400_v44 = vpop.f32.mrb[7].mxu1 }
 0x160   :  { %v470_v47 = vpop.f32.mrb[0].mxu0 }
 0x161   :  { %v472_v48 = vpop.f32.mrb[1].mxu0  ;;  %v1826_v50 = vmul.f32 -1.442695, %v470_v47 }
 0x162   :  { %v1827_v49 = vmul.f32 -1.442695, %v472_v48 }
 0x164   :  { %2943 = vpow2.f32 %v1827_v49 }
 0x165   :  { %2945 = vpow2.f32 %v1826_v50 }
 0x166   :  { %v541_v52 = vpop.f32.mrb[8].mxu1 }
 0x167   :  { %v2098_v53 = vpop.f32.mrb[9].mxu1 }
 0x16e   :  { %v2944_v54 = vpop.eup %2943 }
 0x16f   :  { %v554_v57 = vadd.f32 1.0, %v2944_v54  ;;  %v2946_v58 = vpop.eup %2945 }
 0x170   :  { %v553_v59 = vadd.f32 1.0, %v2946_v58 }
 0x171   :  { %2947 = vrcp.f32 %v554_v57 }
 0x172   :  { %2949 = vrcp.f32 %v553_v59 }
 0x17b   :  { %v2948_v60 = vpop.eup %2947 }
 0x17c   :  { %v559_v62 = vmul.f32 %v2948_v60, %v541_v52  ;;  %v2950_v1 = vpop.eup %2949 }
 0x17d   :  { %v563_v3 = vsub.f32 1.0, %v2950_v1  ;;  %v562_v6 = vmul.f32 0.0, %v2950_v1 }
 0x17e   :  { %v560_v63 = vadd.f32 %v559_v62, %v316_v36 }
 0x180   :  { %2951 = vtanh.f32 %v560_v63 }
 0x18a   :  { %v2952_v5 = vpop.eup %2951 }
 0x18b   :  { %v564_v7 = vmul.f32 %v2952_v5, %v563_v3 }
 0x18d   :  { %v565_v8 = vadd.f32 %v564_v7, %v562_v6 }
 0x18f   :  { %631 = vmatmul.mubr.f32.vlgmr.msra.gmra.mrb[2].mxu0 %v565_v8  ;;  %2132 = vmatmul.mubr.f32.vlgmr.msra.gmra.mrb[10].mxu1 %v565_v8 }
 0x190   :  { %2558 = vmatpush1.bf16.msra.mxu0 %v3260_v17  ;;  %2589 = vmatpush3.bf16.msra.mxu1 %v3281_v41 }
 0x191   :  { %2560 = vmatprep.subr.bf16.mxu0 %v3263_v18  ;;  %2590 = vmatprep.subr.bf16.mxu1 %v3154_v40 }
 0x192   :  { %792 = vmatprep.mubr.f32.mxu0 %v3153_v0  ;;  %2166 = vmatprep.mubr.msk.f32.mxu1 %vm3155_vm0, %v3153_v0 }
 0x194   :  { %2562 = vmatpush1.bf16.msra.mxu0 %v3268_v25  ;;  %2592 = vmatpush3.bf16.msra.mxu1 %v3291_v51 }
 0x195   :  { %2564 = vmatprep.subr.bf16.mxu0 %v3271_v26  ;;  %2593 = vmatprep.subr.bf16.mxu1 %v3154_v40 }
 0x198   :  { %2566 = vmatpush1.bf16.msra.mxu0 %v3275_v34  ;;  %2595 = vmatpush3.bf16.msra.mxu1 %v3302_v61 }
 0x199   :  { %2568 = vmatprep.subr.bf16.mxu0 %v3278_v35  ;;  %2596 = vmatprep.subr.bf16.mxu1 %v3154_v40 }
 0x19c   :  { %2570 = vmatpush1.bf16.msra.mxu0 %v3285_v45  ;;  %2598 = vmatpush3.bf16.msra.mxu1 %v3313_v10 }
 0x19d   :  { %2572 = vmatprep.subr.bf16.mxu0 %v3288_v46  ;;  %2599 = vmatprep.subr.bf16.mxu1 %v3154_v40 }
 0x1a0   :  { %2574 = vmatpush1.bf16.msra.mxu0 %v3296_v55  ;;  %2601 = vmatpush3.bf16.msra.mxu1 %v3324_v20 }
 0x1a1   :  { %2576 = vmatprep.subr.bf16.mxu0 %v3299_v56  ;;  %2602 = vmatprep.subr.bf16.mxu1 %v3154_v40 }
 0x1a4   :  { %2578 = vmatpush1.bf16.msra.mxu0 %v3307_v2  ;;  %2604 = vmatpush3.bf16.msra.mxu1 %v3335_v24 }
 0x1a5   :  { %2580 = vmatprep.subr.bf16.mxu0 %v3310_v4  ;;  %2605 = vmatprep.subr.bf16.mxu1 %v3154_v40 }
 0x1a8   :  { %2582 = vmatpush1.bf16.msra.mxu0 %v3318_v13  ;;  %2607 = vmatpush3.bf16.msra.mxu1 %v3342_v29 }
 0x1a9   :  { %2584 = vmatprep.subr.bf16.mxu0 %v3321_v15  ;;  %2608 = vmatprep.subr.bf16.mxu1 %v3154_v40 }
 0x1ac   :  { %2586 = vmatpush1.bf16.msra.mxu0 %v3331_v23  ;;  %2610 = vmatpush3.bf16.msra.mxu1 %v3350_v32 }
 0x1ad   :  { %2612 = vmatprep.subr.bf16.mxu0 %v3258_v9  ;;  %2643 = vmatprep.subr.bf16.mxu1 %v3154_v40 }
 0x262   :  { %v632_v11 = vpop.f32.mrb[2].mxu0  ;;  %v703_v12 = vpop.f32.mrb[10].mxu1 }
 0x263   :  { %v634_v14 = vpop.f32.mrb[3].mxu0  ;;  %v2133_v16 = vpop.f32.mrb[11].mxu1  ;;  %v1828_v21 = vmul.f32 -1.442695, %v632_v11 }
 0x264   :  { %v1829_v19 = vmul.f32 -1.442695, %v634_v14 }
 0x266   :  { %2953 = vpow2.f32 %v1829_v19 }
 0x267   :  { %2955 = vpow2.f32 %v1828_v21 }
 0x270   :  { %v2954_v22 = vpop.eup %2953 }
 0x271   :  { %v716_v27 = vadd.f32 1.0, %v2954_v22  ;;  %v2956_v28 = vpop.eup %2955 }
 0x272   :  { %v715_v30 = vadd.f32 1.0, %v2956_v28 }
 0x273   :  { %2957 = vrcp.f32 %v716_v27 }
 0x274   :  { %2959 = vrcp.f32 %v715_v30 }
 0x27d   :  { %v2958_v31 = vpop.eup %2957 }
 0x27e   :  { %v721_v36 = vmul.f32 %v2958_v31, %v703_v12  ;;  %v2960_v48 = vpop.eup %2959 }
 0x27f   :  { %v725_v49 = vsub.f32 1.0, %v2960_v48  ;;  %v724_v52 = vmul.f32 %v2960_v48, %v565_v8 }
 0x280   :  { %v722_v47 = vadd.f32 %v3388_v33, %v721_v36 }
 0x282   :  { %2961 = vtanh.f32 %v722_v47 }
 0x28c   :  { %v2962_v50 = vpop.eup %2961 }
 0x28d   :  { %v726_v53 = vmul.f32 %v2962_v50, %v725_v49 }
 0x28f   :  { %v727_v54 = vadd.f32 %v726_v53, %v724_v52 }
 0x291   :  { %793 = vmatmul.mubr.f32.vlgmr.msra.gmra.mrb[4].mxu0 %v727_v54  ;;  %2167 = vmatmul.mubr.f32.vlgmr.msra.gmra.mrb[12].mxu1 %v727_v54 }
 0x292   :  { %2614 = vmatpush1.bf16.msra.mxu0 %v3260_v17  ;;  %2645 = vmatpush3.bf16.msra.mxu1 %v3281_v41 }
 0x293   :  { %2616 = vmatprep.subr.bf16.mxu0 %v3263_v18  ;;  %2646 = vmatprep.subr.bf16.mxu1 %v3154_v40 }
 0x294   :  { %954 = vmatprep.mubr.f32.mxu0 %v3153_v0  ;;  %2201 = vmatprep.mubr.msk.f32.mxu1 %vm3155_vm0, %v3153_v0 }
 0x296   :  { %2618 = vmatpush1.bf16.msra.mxu0 %v3268_v25  ;;  %2648 = vmatpush3.bf16.msra.mxu1 %v3291_v51 }
 0x297   :  { %2620 = vmatprep.subr.bf16.mxu0 %v3271_v26  ;;  %2649 = vmatprep.subr.bf16.mxu1 %v3154_v40 }
 0x29a   :  { %2622 = vmatpush1.bf16.msra.mxu0 %v3275_v34  ;;  %2651 = vmatpush3.bf16.msra.mxu1 %v3302_v61 }
 0x29b   :  { %2624 = vmatprep.subr.bf16.mxu0 %v3278_v35  ;;  %2652 = vmatprep.subr.bf16.mxu1 %v3154_v40 }
 0x29e   :  { %2626 = vmatpush1.bf16.msra.mxu0 %v3285_v45  ;;  %2654 = vmatpush3.bf16.msra.mxu1 %v3313_v10 }
 0x29f   :  { %2628 = vmatprep.subr.bf16.mxu0 %v3288_v46  ;;  %2655 = vmatprep.subr.bf16.mxu1 %v3154_v40 }
 0x2a2   :  { %2630 = vmatpush1.bf16.msra.mxu0 %v3296_v55  ;;  %2657 = vmatpush3.bf16.msra.mxu1 %v3324_v20 }
 0x2a3   :  { %2632 = vmatprep.subr.bf16.mxu0 %v3299_v56  ;;  %2658 = vmatprep.subr.bf16.mxu1 %v3154_v40 }
 0x2a6   :  { %2634 = vmatpush1.bf16.msra.mxu0 %v3307_v2  ;;  %2660 = vmatpush3.bf16.msra.mxu1 %v3335_v24 }
 0x2a7   :  { %2636 = vmatprep.subr.bf16.mxu0 %v3310_v4  ;;  %2661 = vmatprep.subr.bf16.mxu1 %v3154_v40 }
 0x2aa   :  { %2638 = vmatpush1.bf16.msra.mxu0 %v3318_v13  ;;  %2663 = vmatpush3.bf16.msra.mxu1 %v3342_v29 }
 0x2ab   :  { %2640 = vmatprep.subr.bf16.mxu0 %v3321_v15  ;;  %2664 = vmatprep.subr.bf16.mxu1 %v3154_v40 }
 0x2ae   :  { %2642 = vmatpush1.bf16.msra.mxu0 %v3331_v23  ;;  %2666 = vmatpush3.bf16.msra.mxu1 %v3350_v32 }
 0x2af   :  { %2668 = vmatprep.subr.bf16.mxu0 %v3258_v9  ;;  %2699 = vmatprep.subr.bf16.mxu1 %v3154_v40 }
 0x364   :  { %v794_v33 = vpop.f32.mrb[4].mxu0  ;;  %v865_v57 = vpop.f32.mrb[12].mxu1 }
 0x365   :  { %v796_v58 = vpop.f32.mrb[5].mxu0  ;;  %v2168_v59 = vpop.f32.mrb[13].mxu1  ;;  %v1830_v62 = vmul.f32 -1.442695, %v794_v33 }
 0x366   :  { %v1831_v60 = vmul.f32 -1.442695, %v796_v58 }
 0x368   :  { %2963 = vpow2.f32 %v1831_v60 }
 0x369   :  { %2965 = vpow2.f32 %v1830_v62 }
 0x372   :  { %v2964_v63 = vpop.eup %2963 }
 0x373   :  { %v878_v1 = vadd.f32 1.0, %v2964_v63  ;;  %v2966_v3 = vpop.eup %2965 }
 0x374   :  { %v877_v5 = vadd.f32 1.0, %v2966_v3 }
 0x375   :  { %2967 = vrcp.f32 %v878_v1 }
 0x376   :  { %2969 = vrcp.f32 %v877_v5 }
 0x37f   :  { %v2968_v6 = vpop.eup %2967 }
 0x380   :  { %v883_v7 = vmul.f32 %v2968_v6, %v865_v57  ;;  %v2970_v11 = vpop.eup %2969 }
 0x381   :  { %v887_v12 = vsub.f32 1.0, %v2970_v11  ;;  %v886_v16 = vmul.f32 %v2970_v11, %v727_v54 }
 0x382   :  { %v884_v8 = vadd.f32 %v883_v7, %v3392_v38 }
 0x384   :  { %2971 = vtanh.f32 %v884_v8 }
 0x38e   :  { %v2972_v14 = vpop.eup %2971 }
 0x38f   :  { %v888_v19 = vmul.f32 %v2972_v14, %v887_v12 }
 0x391   :  { %v889_v21 = vadd.f32 %v888_v19, %v886_v16 }
 0x393   :  { %955 = vmatmul.mubr.f32.vlgmr.msra.gmra.mrb[6].mxu0 %v889_v21  ;;  %2202 = vmatmul.mubr.f32.vlgmr.msra.gmra.mrb[14].mxu1 %v889_v21 }
 0x394   :  { %2670 = vmatpush1.bf16.msra.mxu0 %v3260_v17  ;;  %2701 = vmatpush3.bf16.msra.mxu1 %v3281_v41 }
 0x395   :  { %2672 = vmatprep.subr.bf16.mxu0 %v3263_v18  ;;  %2702 = vmatprep.subr.bf16.mxu1 %v3154_v40 }
 0x396   :  { %1116 = vmatprep.mubr.f32.mxu0 %v3153_v0  ;;  %2236 = vmatprep.mubr.msk.f32.mxu1 %vm3155_vm0, %v3153_v0 }
 0x398   :  { %2674 = vmatpush1.bf16.msra.mxu0 %v3268_v25  ;;  %2704 = vmatpush3.bf16.msra.mxu1 %v3291_v51 }
 0x399   :  { %2676 = vmatprep.subr.bf16.mxu0 %v3271_v26  ;;  %2705 = vmatprep.subr.bf16.mxu1 %v3154_v40 }
 0x39c   :  { %2678 = vmatpush1.bf16.msra.mxu0 %v3275_v34  ;;  %2707 = vmatpush3.bf16.msra.mxu1 %v3302_v61 }
 0x39d   :  { %2680 = vmatprep.subr.bf16.mxu0 %v3278_v35  ;;  %2708 = vmatprep.subr.bf16.mxu1 %v3154_v40 }
 0x3a0   :  { %2682 = vmatpush1.bf16.msra.mxu0 %v3285_v45  ;;  %2710 = vmatpush3.bf16.msra.mxu1 %v3313_v10 }
 0x3a1   :  { %2684 = vmatprep.subr.bf16.mxu0 %v3288_v46  ;;  %2711 = vmatprep.subr.bf16.mxu1 %v3154_v40 }
 0x3a4   :  { %2686 = vmatpush1.bf16.msra.mxu0 %v3296_v55  ;;  %2713 = vmatpush3.bf16.msra.mxu1 %v3324_v20 }
 0x3a5   :  { %2688 = vmatprep.subr.bf16.mxu0 %v3299_v56  ;;  %2714 = vmatprep.subr.bf16.mxu1 %v3154_v40 }
 0x3a8   :  { %2690 = vmatpush1.bf16.msra.mxu0 %v3307_v2  ;;  %2716 = vmatpush3.bf16.msra.mxu1 %v3335_v24 }
 0x3a9   :  { %2692 = vmatprep.subr.bf16.mxu0 %v3310_v4  ;;  %2717 = vmatprep.subr.bf16.mxu1 %v3154_v40 }
 0x3ac   :  { %2694 = vmatpush1.bf16.msra.mxu0 %v3318_v13  ;;  %2719 = vmatpush3.bf16.msra.mxu1 %v3342_v29 }
 0x3ad   :  { %2696 = vmatprep.subr.bf16.mxu0 %v3321_v15  ;;  %2720 = vmatprep.subr.bf16.mxu1 %v3154_v40 }
 0x3b0   :  { %2698 = vmatpush1.bf16.msra.mxu0 %v3331_v23  ;;  %2722 = vmatpush3.bf16.msra.mxu1 %v3350_v32 }
 0x3b1   :  { %2724 = vmatprep.subr.bf16.mxu0 %v3258_v9  ;;  %2755 = vmatprep.subr.bf16.mxu1 %v3154_v40 }
 0x466   :  { %v956_v38 = vpop.f32.mrb[6].mxu0  ;;  %v1027_v22 = vpop.f32.mrb[14].mxu1 }
 0x467   :  { %v958_v27 = vpop.f32.mrb[7].mxu0  ;;  %v2203_v28 = vpop.f32.mrb[15].mxu1  ;;  %v1832_v31 = vmul.f32 -1.442695, %v956_v38 }
 0x468   :  { %v1833_v30 = vmul.f32 -1.442695, %v958_v27 }
 0x46a   :  { %2973 = vpow2.f32 %v1833_v30 }
 0x46b   :  { %2975 = vpow2.f32 %v1832_v31 }
 0x474   :  { %v2974_v36 = vpop.eup %2973 }
 0x475   :  { %v1040_v47 = vadd.f32 1.0, %v2974_v36  ;;  %v2976_v48 = vpop.eup %2975 }
 0x476   :  { %v1039_v49 = vadd.f32 1.0, %v2976_v48 }
 0x477   :  { %2977 = vrcp.f32 %v1040_v47 }
 0x478   :  { %2979 = vrcp.f32 %v1039_v49 }
 0x481   :  { %v2978_v50 = vpop.eup %2977 }
 0x482   :  { %v1045_v52 = vmul.f32 %v2978_v50, %v1027_v22  ;;  %v2980_v54 = vpop.eup %2979 }
 0x483   :  { %v1049_v33 = vsub.f32 1.0, %v2980_v54  ;;  %v1048_v58 = vmul.f32 %v2980_v54, %v889_v21 }
 0x484   :  { %v1046_v53 = vadd.f32 %v3390_v37, %v1045_v52 }
 0x486   :  { %2981 = vtanh.f32 %v1046_v53 }
 0x490   :  { %v2982_v57 = vpop.eup %2981 }
 0x491   :  { %v1050_v59 = vmul.f32 %v2982_v57, %v1049_v33 }
 0x493   :  { %v1051_v60 = vadd.f32 %v1050_v59, %v1048_v58 }
 0x495   :  { %1117 = vmatmul.mubr.f32.vlgmr.msra.gmra.mrb[8].mxu0 %v1051_v60  ;;  %2237 = vmatmul.mubr.f32.vlgmr.msra.gmra.mrb[16].mxu1 %v1051_v60 }
 0x496   :  { %2726 = vmatpush1.bf16.msra.mxu0 %v3260_v17  ;;  %2757 = vmatpush3.bf16.msra.mxu1 %v3281_v41 }
 0x497   :  { %2728 = vmatprep.subr.bf16.mxu0 %v3263_v18  ;;  %2758 = vmatprep.subr.bf16.mxu1 %v3154_v40 }
 0x498   :  { %1278 = vmatprep.mubr.f32.mxu0 %v3153_v0  ;;  %2271 = vmatprep.mubr.msk.f32.mxu1 %vm3155_vm0, %v3153_v0 }
 0x49a   :  { %2730 = vmatpush1.bf16.msra.mxu0 %v3268_v25  ;;  %2760 = vmatpush3.bf16.msra.mxu1 %v3291_v51 }
 0x49b   :  { %2732 = vmatprep.subr.bf16.mxu0 %v3271_v26  ;;  %2761 = vmatprep.subr.bf16.mxu1 %v3154_v40 }
 0x49e   :  { %2734 = vmatpush1.bf16.msra.mxu0 %v3275_v34  ;;  %2763 = vmatpush3.bf16.msra.mxu1 %v3302_v61 }
 0x49f   :  { %2736 = vmatprep.subr.bf16.mxu0 %v3278_v35  ;;  %2764 = vmatprep.subr.bf16.mxu1 %v3154_v40 }
 0x4a2   :  { %2738 = vmatpush1.bf16.msra.mxu0 %v3285_v45  ;;  %2766 = vmatpush3.bf16.msra.mxu1 %v3313_v10 }
 0x4a3   :  { %2740 = vmatprep.subr.bf16.mxu0 %v3288_v46  ;;  %2767 = vmatprep.subr.bf16.mxu1 %v3154_v40 }
 0x4a6   :  { %2742 = vmatpush1.bf16.msra.mxu0 %v3296_v55  ;;  %2769 = vmatpush3.bf16.msra.mxu1 %v3324_v20 }
 0x4a7   :  { %2744 = vmatprep.subr.bf16.mxu0 %v3299_v56  ;;  %2770 = vmatprep.subr.bf16.mxu1 %v3154_v40 }
 0x4aa   :  { %2746 = vmatpush1.bf16.msra.mxu0 %v3307_v2  ;;  %2772 = vmatpush3.bf16.msra.mxu1 %v3335_v24 }
 0x4ab   :  { %2748 = vmatprep.subr.bf16.mxu0 %v3310_v4  ;;  %2773 = vmatprep.subr.bf16.mxu1 %v3154_v40 }
 0x4ae   :  { %2750 = vmatpush1.bf16.msra.mxu0 %v3318_v13  ;;  %2775 = vmatpush3.bf16.msra.mxu1 %v3342_v29 }
 0x4af   :  { %2752 = vmatprep.subr.bf16.mxu0 %v3321_v15  ;;  %2776 = vmatprep.subr.bf16.mxu1 %v3154_v40 }
 0x4b2   :  { %2754 = vmatpush1.bf16.msra.mxu0 %v3331_v23  ;;  %2778 = vmatpush3.bf16.msra.mxu1 %v3350_v32 }
 0x4b3   :  { %2780 = vmatprep.subr.bf16.mxu0 %v3258_v9  ;;  %2811 = vmatprep.subr.bf16.mxu1 %v3154_v40 }
 0x568   :  { %v1118_v37 = vpop.f32.mrb[8].mxu0  ;;  %v1189_v62 = vpop.f32.mrb[16].mxu1 }
 0x569   :  { %v1120_v63 = vpop.f32.mrb[9].mxu0  ;;  %v2238_v1 = vpop.f32.mrb[17].mxu1  ;;  %v1834_v5 = vmul.f32 -1.442695, %v1118_v37 }
 0x56a   :  { %v1835_v3 = vmul.f32 -1.442695, %v1120_v63  ;;  %v1708_v63 = vld [vmem:[#allocation9 + $0x20] sm:$0xff]  ;;  %v1709_v1 = vld [vmem:[#allocation9 + $0x28] sm:$0xff] }
 0x56c   :  { %2983 = vpow2.f32 %v1835_v3  ;;  %v2898_v3 = vpack.c.bf16 %v1709_v1, %v1708_v63 }
 0x56d   :  { %2985 = vpow2.f32 %v1834_v5  ;;  %v1710_v5 = vld [vmem:[#allocation9 + $0x30] sm:$0xff] }
 0x576   :  { %v2984_v6 = vpop.eup %2983 }
 0x577   :  { %v1202_v7 = vadd.f32 1.0, %v2984_v6  ;;  %v2986_v8 = vpop.eup %2985 }
 0x578   :  { %v1201_v11 = vadd.f32 1.0, %v2986_v8  ;;  %v1713_v8 = vld [vmem:[#allocation9 + $0x48] sm:$0xff] }
 0x579   :  { %2987 = vrcp.f32 %v1202_v7  ;;  %v1712_v7 = vld [vmem:[#allocation9 + $0x40] sm:$0xff] }
 0x57a   :  { %2989 = vrcp.f32 %v1201_v11  ;;  %v2904_v11 = vpack.c.bf16 %v1713_v8, %v1712_v7 }
 0x583   :  { %v2988_v12 = vpop.eup %2987 }
 0x584   :  { %v1207_v14 = vmul.f32 %v2988_v12, %v1189_v62  ;;  %v2990_v19 = vpop.eup %2989  ;;  %v1714_v12 = vld [vmem:[#allocation9 + $0x50] sm:$0xff] }
 0x585   :  { %v1211_v21 = vsub.f32 1.0, %v2990_v19  ;;  %v1210_v22 = vmul.f32 %v2990_v19, %v1051_v60  ;;  %v1716_v19 = vld [vmem:[#allocation9 + $0x60] sm:$0xff] }
 0x586   :  { %v1208_v16 = vadd.f32 %v1207_v14, %v3396_v42  ;;  %v1715_v14 = vld [vmem:[#allocation9 + $0x58] sm:$0xff] }
 0x588   :  { %2991 = vtanh.f32 %v1208_v16  ;;  %v2907_v16 = vpack.c.bf16 %v1715_v14, %v1714_v12 }
 0x592   :  { %v2992_v38 = vpop.eup %2991 }
 0x593   :  { %v1212_v27 = vmul.f32 %v2992_v38, %v1211_v21  ;;  %v1717_v21 = vld [vmem:[#allocation9 + $0x68] sm:$0xff] }
 0x594   :  { %v2910_v38 = vpack.c.bf16 %v1717_v21, %v1716_v19 }
 0x595   :  { %v1213_v28 = vadd.f32 %v1212_v27, %v1210_v22  ;;  %v1718_v22 = vld [vmem:[#allocation9 + $0x70] sm:$0xff]  ;;  %v1719_v27 = vld [vmem:[#allocation9 + $0x78] sm:$0xff] }
 0x597   :  { %1279 = vmatmul.mubr.f32.vlgmr.msra.gmra.mrb[10].mxu0 %v1213_v28  ;;  %2272 = vmatmul.mubr.f32.vlgmr.msra.gmra.mrb[18].mxu1 %v1213_v28 }
 0x598   :  { %2782 = vmatpush1.bf16.msra.mxu0 %v3260_v17  ;;  %2813 = vmatpush3.bf16.msra.mxu1 %v3281_v41 }
 0x599   :  { %2784 = vmatprep.subr.bf16.mxu0 %v3263_v18  ;;  %2814 = vmatprep.subr.bf16.mxu1 %v3154_v40 }
 0x59a   :  { %1440 = vmatprep.mubr.f32.mxu0 %v3153_v0  ;;  %2306 = vmatprep.mubr.msk.f32.mxu1 %vm3155_vm0, %v3153_v0 }
 0x59c   :  { %2786 = vmatpush1.bf16.msra.mxu0 %v3268_v25  ;;  %2816 = vmatpush3.bf16.msra.mxu1 %v3291_v51 }
 0x59d   :  { %2788 = vmatprep.subr.bf16.mxu0 %v3271_v26  ;;  %2817 = vmatprep.subr.bf16.mxu1 %v3154_v40 }
 0x5a0   :  { %2790 = vmatpush1.bf16.msra.mxu0 %v3275_v34  ;;  %2819 = vmatpush3.bf16.msra.mxu1 %v3302_v61 }
 0x5a1   :  { %2792 = vmatprep.subr.bf16.mxu0 %v3278_v35  ;;  %2820 = vmatprep.subr.bf16.mxu1 %v3154_v40 }
 0x5a4   :  { %2794 = vmatpush1.bf16.msra.mxu0 %v3285_v45  ;;  %2822 = vmatpush3.bf16.msra.mxu1 %v3313_v10 }
 0x5a5   :  { %2796 = vmatprep.subr.bf16.mxu0 %v3288_v46  ;;  %2823 = vmatprep.subr.bf16.mxu1 %v3154_v40 }
 0x5a8   :  { %2798 = vmatpush1.bf16.msra.mxu0 %v3296_v55  ;;  %2825 = vmatpush3.bf16.msra.mxu1 %v3324_v20 }
 0x5a9   :  { %2800 = vmatprep.subr.bf16.mxu0 %v3299_v56  ;;  %2826 = vmatprep.subr.bf16.mxu1 %v3154_v40 }
 0x5ac   :  { %2802 = vmatpush1.bf16.msra.mxu0 %v3307_v2  ;;  %2828 = vmatpush3.bf16.msra.mxu1 %v3335_v24 }
 0x5ad   :  { %2804 = vmatprep.subr.bf16.mxu0 %v3310_v4  ;;  %2829 = vmatprep.subr.bf16.mxu1 %v3154_v40 }
 0x5b0   :  { %2806 = vmatpush1.bf16.msra.mxu0 %v3318_v13  ;;  %2831 = vmatpush3.bf16.msra.mxu1 %v3342_v29 }
 0x5b1   :  { %2808 = vmatprep.subr.bf16.mxu0 %v3321_v15  ;;  %2832 = vmatprep.subr.bf16.mxu1 %v3154_v40 }
 0x5b4   :  { %2810 = vmatpush1.bf16.msra.mxu0 %v3331_v23  ;;  %2834 = vmatpush3.bf16.msra.mxu1 %v3350_v32 }
 0x5b5   :  { %2836 = vmatprep.subr.bf16.mxu0 %v3258_v9  ;;  %2867 = vmatprep.subr.bf16.mxu1 %v3154_v40 }
 0x66a   :  { %v1280_v42 = vpop.f32.mrb[10].mxu0  ;;  %v1351_v30 = vpop.f32.mrb[18].mxu1 }
 0x66b   :  { %v1282_v31 = vpop.f32.mrb[11].mxu0  ;;  %v2273_v36 = vpop.f32.mrb[19].mxu1  ;;  %v1836_v48 = vmul.f32 -1.442695, %v1280_v42 }
 0x66c   :  { %v1837_v47 = vmul.f32 -1.442695, %v1282_v31 }
 0x66e   :  { %2993 = vpow2.f32 %v1837_v47 }
 0x66f   :  { %2995 = vpow2.f32 %v1836_v48 }
 0x678   :  { %v2994_v49 = vpop.eup %2993 }
 0x679   :  { %v1364_v50 = vadd.f32 1.0, %v2994_v49  ;;  %v2996_v52 = vpop.eup %2995 }
 0x67a   :  { %v1363_v53 = vadd.f32 1.0, %v2996_v52 }
 0x67b   :  { %2997 = vrcp.f32 %v1364_v50 }
 0x67c   :  { %2999 = vrcp.f32 %v1363_v53 }
 0x685   :  { %v2998_v54 = vpop.eup %2997 }
 0x686   :  { %v1369_v33 = vmul.f32 %v2998_v54, %v1351_v30  ;;  %v3000_v57 = vpop.eup %2999 }
 0x687   :  { %v1373_v58 = vsub.f32 1.0, %v3000_v57  ;;  %v1372_v60 = vmul.f32 %v3000_v57, %v1213_v28  ;;  %v2913_v28 = vpack.c.bf16 %v1719_v27, %v1718_v22 }
 0x688   :  { %v1370_v9 = vadd.f32 %v3394_v39, %v1369_v33  ;;  %v1707_v39 = vld [vmem:[#allocation9 + $0x18] sm:$0xff] }
 0x68a   :  { %3001 = vtanh.f32 %v1370_v9 }
 0x694   :  { %v3002_v59 = vpop.eup %3001 }
 0x695   :  { %v1374_v37 = vmul.f32 %v3002_v59, %v1373_v58 }
 0x697   :  { %v1375_v62 = vadd.f32 %v1374_v37, %v1372_v60 }
 0x699   :  { %1441 = vmatmul.mubr.f32.vlgmr.msra.gmra.mrb[12].mxu0 %v1375_v62  ;;  %2307 = vmatmul.mubr.f32.vlgmr.msra.gmra.mrb[20].mxu1 %v1375_v62 }
 0x69a   :  { %2838 = vmatpush1.bf16.msra.mxu0 %v3260_v17  ;;  %2869 = vmatpush3.bf16.msra.mxu1 %v3281_v41 }
 0x69b   :  { %2840 = vmatprep.subr.bf16.mxu0 %v3263_v18  ;;  %2870 = vmatprep.subr.bf16.mxu1 %v3154_v40 }
 0x69c   :  { %1602 = vmatprep.mubr.f32.mxu0 %v3153_v0  ;;  %2341 = vmatprep.mubr.msk.f32.mxu1 %vm3155_vm0, %v3153_v0 }
 0x69e   :  { %2842 = vmatpush1.bf16.msra.mxu0 %v3268_v25  ;;  %2872 = vmatpush3.bf16.msra.mxu1 %v3291_v51 }
 0x69f   :  { %2844 = vmatprep.subr.bf16.mxu0 %v3271_v26  ;;  %2873 = vmatprep.subr.bf16.mxu1 %v3154_v40 }
 0x6a2   :  { %2846 = vmatpush1.bf16.msra.mxu0 %v3275_v34  ;;  %2875 = vmatpush3.bf16.msra.mxu1 %v3302_v61 }
 0x6a3   :  { %2848 = vmatprep.subr.bf16.mxu0 %v3278_v35  ;;  %2876 = vmatprep.subr.bf16.mxu1 %v3154_v40 }
 0x6a6   :  { %2850 = vmatpush1.bf16.msra.mxu0 %v3285_v45  ;;  %2878 = vmatpush3.bf16.msra.mxu1 %v3313_v10 }
 0x6a7   :  { %2852 = vmatprep.subr.bf16.mxu0 %v3288_v46  ;;  %2879 = vmatprep.subr.bf16.mxu1 %v3154_v40 }
 0x6aa   :  { %2854 = vmatpush1.bf16.msra.mxu0 %v3296_v55  ;;  %2881 = vmatpush3.bf16.msra.mxu1 %v3324_v20 }
 0x6ab   :  { %2856 = vmatprep.subr.bf16.mxu0 %v3299_v56  ;;  %2882 = vmatprep.subr.bf16.mxu1 %v3154_v40 }
 0x6ae   :  { %2858 = vmatpush1.bf16.msra.mxu0 %v3307_v2  ;;  %2884 = vmatpush3.bf16.msra.mxu1 %v3335_v24  ;;  %v1705_v24 = vld [vmem:[#allocation9 + $0x8] sm:$0xff] }
 0x6af   :  { %2860 = vmatprep.subr.bf16.mxu0 %v3310_v4  ;;  %2885 = vmatprep.subr.bf16.mxu1 %v3154_v40 }
 0x6b2   :  { %2862 = vmatpush1.bf16.msra.mxu0 %v3318_v13  ;;  %2887 = vmatpush3.bf16.msra.mxu1 %v3342_v29 }
 0x6b3   :  { %2864 = vmatprep.subr.bf16.mxu0 %v3321_v15  ;;  %2888 = vmatprep.subr.bf16.mxu1 %v3154_v40 }
 0x6b6   :  { %2866 = vmatpush1.bf16.msra.mxu0 %v3331_v23  ;;  %2890 = vmatpush3.bf16.msra.mxu1 %v3350_v32  ;;  %v1704_v23 = vld [vmem:[#allocation9] sm:$0xff]  ;;  %v1706_v32 = vld [vmem:[#allocation9 + $0x10] sm:$0xff] }
 0x6b7   :  { %2891 = vmatprep.subr.bf16.mxu0 %v3154_v40  ;;  %v2892_v29 = vpack.c.bf16 %v1705_v24, %v1704_v23 }
 0x76c   :  { %v1442_v17 = vpop.f32.mrb[12].mxu0  ;;  %v1513_v18 = vpop.f32.mrb[20].mxu1 }
 0x76d   :  { %v1444_v25 = vpop.f32.mrb[13].mxu0  ;;  %v2308_v26 = vpop.f32.mrb[21].mxu1  ;;  %v1838_v35 = vmul.f32 -1.442695, %v1442_v17 }
 0x76e   :  { %v1839_v34 = vmul.f32 -1.442695, %v1444_v25 }
 0x770   :  { %3003 = vpow2.f32 %v1839_v34 }
 0x771   :  { %3005 = vpow2.f32 %v1838_v35 }
 0x77a   :  { %v3004_v41 = vpop.eup %3003 }
 0x77b   :  { %v1526_v45 = vadd.f32 1.0, %v3004_v41  ;;  %v3006_v46 = vpop.eup %3005 }
 0x77c   :  { %v1525_v51 = vadd.f32 1.0, %v3006_v46 }
 0x77d   :  { %3007 = vrcp.f32 %v1526_v45 }
 0x77e   :  { %3009 = vrcp.f32 %v1525_v51 }
 0x787   :  { %v3008_v55 = vpop.eup %3007 }
 0x788   :  { %v1531_v56 = vmul.f32 %v3008_v55, %v1513_v18  ;;  %v3010_v2 = vpop.eup %3009 }
 0x789   :  { %v1535_v4 = vsub.f32 1.0, %v3010_v2  ;;  %v1534_v13 = vmul.f32 %v3010_v2, %v1375_v62  ;;  %v1842_v62 = vld [vmem:[%s3651_s4] ss:$0 sm:$0xff]  ;;  %s3115_s4 = scalar_lea.vmem %s1816_s17, 128 }
 0x78a   :  { %v1532_v61 = vadd.f32 %v1531_v56, %v3400_v44  ;;  %v2895_v44 = vpack.c.bf16 %v1707_v39, %v1706_v32  ;;  %p3116_p4 = scmp.ne.s32.totalorder %s1816_s17, %s3115_s4  ;;  %p3121_p6 = scmp.lt.s32.totalorder %s3115_s4, %s3115_s4 }
 0x78c   :  { %3011 = vtanh.f32 %v1532_v61  ;;  %p3122_p7 = por %p3121_p6, %p3120_p5 }
 0x78e   :  { %p3123_p8 = pnand %p3122_p7, %p3116_p4 }
 0x796   :  { %v3012_v10 = vpop.eup %3011 }
 0x797   :  { %v1536_v15 = vmul.f32 %v3012_v10, %v1535_v4 }
 0x799   :  { %v3617_v20 = vadd.f32 %v1536_v15, %v1534_v13 }
 0x79b   :  { %1603 = vmatmul.mubr.f32.vlgmr.msra.gmra.mrb[14].mxu0 %v3617_v20  ;;  %2342 = vmatmul.mubr.f32.vlgmr.msra.gmra.mrb[22].mxu1 %v3617_v20 }
 0x79c   :  { %2376 = vmatprep.mubr.msk.f32.mxu0 %vm3155_vm0, %v3153_v0  ;;  %2893 = vmatpush3.bf16.msra.mxu0 %v2892_v29  ;;  %v1711_v0 = vld [vmem:[#allocation9 + $0x38] sm:$0xff] }
 0x79d   :  { %2894 = vmatprep.subr.bf16.mxu0 %v3154_v40  ;;  %v2901_v6 = vpack.c.bf16 %v1711_v0, %v1710_v5 }
 0x7a0   :  { %2896 = vmatpush3.bf16.msra.mxu0 %v2895_v44 }
 0x7a1   :  { %2897 = vmatprep.subr.bf16.mxu0 %v3154_v40 }
 0x7a4   :  { %2899 = vmatpush3.bf16.msra.mxu0 %v2898_v3 }
 0x7a5   :  { %2900 = vmatprep.subr.bf16.mxu0 %v3154_v40 }
 0x7a8   :  { %2902 = vmatpush3.bf16.msra.mxu0 %v2901_v6 }
 0x7a9   :  { %2903 = vmatprep.subr.bf16.mxu0 %v3154_v40 }
 0x7ac   :  { %2905 = vmatpush3.bf16.msra.mxu0 %v2904_v11 }
 0x7ad   :  { %2906 = vmatprep.subr.bf16.mxu0 %v3154_v40 }
 0x7b0   :  { %2908 = vmatpush3.bf16.msra.mxu0 %v2907_v16 }
 0x7b1   :  { %2909 = vmatprep.subr.bf16.mxu0 %v3154_v40 }
 0x7b4   :  { %2911 = vmatpush3.bf16.msra.mxu0 %v2910_v38 }
 0x7b5   :  { %2912 = vmatprep.subr.bf16.mxu0 %v3154_v40 }
 0x7b8   :  { %2914 = vmatpush3.bf16.msra.mxu0 %v2913_v28 }
 0x86e   :  { %v1604_v42 = vpop.f32.mrb[14].mxu0  ;;  %v1675_v30 = vpop.f32.mrb[22].mxu1 }
 0x86f   :  { %v1606_v31 = vpop.f32.mrb[15].mxu0  ;;  %v2343_v36 = vpop.f32.mrb[23].mxu1  ;;  %v1840_v48 = vmul.f32 -1.442695, %v1604_v42 }
 0x870   :  { %v1841_v47 = vmul.f32 -1.442695, %v1606_v31 }
 0x872   :  { %3013 = vpow2.f32 %v1841_v47 }
 0x873   :  { %3015 = vpow2.f32 %v1840_v48 }
 0x87c   :  { %v3014_v49 = vpop.eup %3013 }
 0x87d   :  { %v1688_v50 = vadd.f32 1.0, %v3014_v49  ;;  %v3016_v52 = vpop.eup %3015 }
 0x87e   :  { %v1687_v53 = vadd.f32 1.0, %v3016_v52 }
 0x87f   :  { %3017 = vrcp.f32 %v1688_v50 }
 0x880   :  { %3019 = vrcp.f32 %v1687_v53 }
 0x889   :  { %v3018_v54 = vpop.eup %3017 }
 0x88a   :  { %v1693_v33 = vmul.f32 %v3018_v54, %v1675_v30  ;;  %v3020_v40 = vpop.eup %3019 }
 0x88b   :  { %v1697_v57 = vsub.f32 1.0, %v3020_v40  ;;  %v1696_v59 = vmul.f32 %v3020_v40, %v3617_v20 }
 0x88c   :  { %v1694_v9 = vadd.f32 %v3398_v43, %v1693_v33 }
 0x88e   :  { %3021 = vtanh.f32 %v1694_v9 }
 0x898   :  { %v3022_v58 = vpop.eup %3021 }
 0x899   :  { %v1698_v60 = vmul.f32 %v3022_v58, %v1697_v57 }
 0x89b   :  { %v1699_v37 = vadd.f32 %v1698_v60, %v1696_v59 }
 0x89d   :  { %2377 = vmatmul.mubr.f32.vlgmr.msra.gmra.mrb[16].mxu0 %v1699_v37 }
 0x970   :  { %v1793_v17 = vpop.f32.mrb[16].mxu0 }
 0x971   :  { %v1794_v18 = vadd.f32 %v1842_v62, %v1793_v17  ;;  %v2378_v25 = vpop.f32.mrb[17].mxu0 }
 0x973   :  { %1797 = vmax.xlane.f32.xlu0 %v1794_v18 }
 0xa00   :  { %v1798_v26 = vpop.xlane.xlu0 %1797 }
 0xa01   :  { %v1799_v34 = vsub.f32 %v1794_v18, %v1798_v26 }
 0xa03   :  { %v1800_v43 = vmul.f32 1.442695, %v1799_v34 }
 0xa05   :  { %3023 = vpow2.f32 %v1800_v43 }
 0xa0f   :  { %v3024_v35 = vpop.eup %3023 }
 0xa10   :  { %1802 = vadd.xlane.f32.xlu0 %v3024_v35 }
 0xa9d   :  { %v1803_v41 = vpop.xlane.xlu0 %1802 }
 0xa9e   :  { %3025 = vlog2.f32 %v1803_v41 }
 0xaa8   :  { %v3026_v45 = vpop.eup %3025 }
 0xaa9   :  { %v1805_v46 = vmul.f32 0.6931472, %v3026_v45 }
 0xaab   :  { %v1806_v51 = vadd.f32 %v1805_v46, %v1798_v26 }
 0xaad   :  { %v1807_v55 = vsub.f32 %v1794_v18, %v1806_v51 }
 0xaaf   :  { %1808 = vst [vmem:[#allocation11] sm:$0xff] %v1807_v55 }
 0xab0   :  { %3126 = shalt.err (!%p3123_p8)
}
 0xab1   :  { %s3127_s21 = scalar_lea.hbm %s3652_s5, 128 }
 0xab2   :  { %p3128_p9 = scmp.ne.s32.totalorder %s3652_s5, %s3127_s21  ;;  %p3131_p10 = scmp.lt.u32.totalorder %s3127_s21, %s3652_s5 }
 0xab4   :  { %p3133_p11 = pnand %p3131_p10, %p3128_p9 }
 0xab6   :  { %3136 = shalt.err (!%p3133_p11)
}
 0xab7   :  { %1818 = dma.vmem_to_hbm [thread:$0]  %s1816_s17, 128, %s3652_s5, [#allocation5]  }
 0xab8   :  { %3143 = dma.done.wait [#allocation5], 128  }
 0xab9   :  { %3144 = vsyncadd [#allocation5], 4294967168 }
 0xaba   :  { %1822 = vsyncpa [#allocation4], 1 }
 0xabb   :  { %1823 = vsyncpa [#allocation7], 1 }
 0xabc   :  { %1824 = vsyncpa [#allocation10], 1 }
 0xabd   :  { %1825 = vsyncpa [#allocation5], 1 }

</bundles_post_ra>
